<compile_context>
chip_gen: v7x
topology: tpu7x:2x2x1
jax: 0.10.0
libtpu: 0.0.40
codegen_flags: <defaults>
</compile_context>

<pallas_src>
import functools

import jax
import jax.numpy as jnp
from jax.experimental import pallas as pl
from jax.experimental.pallas import tpu as pltpu


# ----------------------------------------------------------------------------
# Pallas kernel: fused 3x3 conv (stride 1, pad 1) + bias + ReLU
# ----------------------------------------------------------------------------
def _conv3x3_bias_relu_kernel(x_ref, w_ref, b_ref, o_ref, *, H, W, Cin,
                              pad_output):
    """One (image, Cout-tile) step.

    x_ref : (1, H+2, W+2, Cin)  bf16, zero-padded NHWC image.
    w_ref : (9*Cin, co_tile)    bf16, rows ordered (kh, kw, cin).
    b_ref : (1, co_tile)        f32.
    o_ref : (1, H+2, W+2, co)   bf16 zero-padded layout (pad_output=True, conv1)
            (1, H,   W,   co)   f32 exact result        (pad_output=False, conv2)
    """
    Wp = W + 2
    co = o_ref.shape[-1]

    # Build the im2col patch slab once in VMEM: (H*W, 9*Cin).
    # kh is an aligned leading-axis ref slice (free); the kw shift is handled
    # as part of the patch build, not as 9 separate dot inputs.
    cols = []
    for kh in range(3):
        xs = x_ref[0, kh:kh + H]                  # (H, Wp, Cin)
        for kw in range(3):
            cols.append(xs[:, kw:kw + W, :])      # (H, W, Cin)
    patch = jnp.concatenate(cols, axis=-1).reshape(H * W, 9 * Cin)

    # Single MXU dot, K = 9*Cin, f32 accumulation, fused bias + ReLU epilogue.
    y = jnp.dot(patch, w_ref[...], preferred_element_type=jnp.float32)
    y = jnp.maximum(y + b_ref[...], 0.0)
    y = y.reshape(H, W, co).astype(o_ref.dtype)

    if pad_output:
        # Emit directly in the next conv's zero-padded layout: zero borders are
        # written in-kernel so no XLA pad/cast pass is needed between layers.
        zc = jnp.zeros((H, 1, co), o_ref.dtype)
        zr = jnp.zeros((1, Wp, co), o_ref.dtype)
        y = jnp.concatenate([zc, y, zc], axis=1)  # (H, Wp, co)
        y = jnp.concatenate([zr, y, zr], axis=0)  # (Hp, Wp, co)
    o_ref[0] = y


def conv3x3_bias_relu(xpad, w, b, *, pad_output, out_dtype):
    """PyTorch Conv2d(Cin, Cout, 3, padding=1) + bias + ReLU.

    xpad: (N, H+2, W+2, Cin) bf16 zero-padded NHWC activations.
    w:    (Cout, Cin, 3, 3) OIHW float; b: (Cout,) float.
    Returns (N, H+2, W+2, Cout) bf16 zero-padded if pad_output (ready to feed
    the next 3x3 conv directly) else (N, H, W, Cout) out_dtype.
    """
    N, Hp, Wp, Cin = xpad.shape
    H, W = Hp - 2, Wp - 2
    Cout = w.shape[0]
    assert w.shape == (Cout, Cin, 3, 3)

    wmat = jnp.transpose(w, (2, 3, 1, 0)).reshape(9 * Cin, Cout)
    wmat = wmat.astype(jnp.bfloat16)
    brow = b.reshape(1, Cout).astype(jnp.float32)

    # Lane-dense Cout tiling, capped at 256 (MXU width; smaller output block +
    # more Cout grid steps for the megacore).  NOTE: for Cout < 128 (early
    # U-Net stages / this test) the lane dim is under-filled and stores are
    # masked; acceptable at these tiny sizes.
    co_tile = 256 if Cout % 256 == 0 else Cout
    grid = (N, Cout // co_tile)

    if pad_output:
        out_shape = jax.ShapeDtypeStruct((N, Hp, Wp, Cout), out_dtype)
        out_spec = pl.BlockSpec((1, Hp, Wp, co_tile), lambda n, j: (n, 0, 0, j))
    else:
        out_shape = jax.ShapeDtypeStruct((N, H, W, Cout), out_dtype)
        out_spec = pl.BlockSpec((1, H, W, co_tile), lambda n, j: (n, 0, 0, j))

    return pl.pallas_call(
        functools.partial(_conv3x3_bias_relu_kernel,
                          H=H, W=W, Cin=Cin, pad_output=pad_output),
        out_shape=out_shape,
        grid_spec=pltpu.PrefetchScalarGridSpec(
            num_scalar_prefetch=0,
            grid=grid,
            in_specs=[
                pl.BlockSpec((1, Hp, Wp, Cin), lambda n, j: (n, 0, 0, 0)),
                pl.BlockSpec((9 * Cin, co_tile), lambda n, j: (0, j)),
                pl.BlockSpec((1, co_tile), lambda n, j: (0, j)),
            ],
            out_specs=out_spec,
        ),
        compiler_params=pltpu.CompilerParams(
            dimension_semantics=("parallel", "parallel"),
            vmem_limit_bytes=48 * 1024 * 1024),
    )(xpad, wmat, brow)


# ----------------------------------------------------------------------------
# up_conv: parameters + forward (NCHW in / NCHW out, matching PyTorch)
# ----------------------------------------------------------------------------
def init_up_conv(key, ch_in, ch_out):
    k1, k2, k3, k4 = jax.random.split(key, 4)
    return {
        "w1": 0.1 * jax.random.normal(k1, (ch_out, ch_in, 3, 3), jnp.float32),
        "b1": 0.1 * jax.random.normal(k2, (ch_out,), jnp.float32),
        "w2": 0.1 * jax.random.normal(k3, (ch_out, ch_out, 3, 3), jnp.float32),
        "b2": 0.1 * jax.random.normal(k4, (ch_out,), jnp.float32),
    }


@jax.jit
def up_conv_forward(params, x_nchw):
    # NCHW -> zero-padded NHWC bf16 in one fused XLA pass (transpose+cast+pad).
    x = jnp.transpose(x_nchw, (0, 2, 3, 1)).astype(jnp.bfloat16)
    x = jnp.pad(x, ((0, 0), (1, 1), (1, 1), (0, 0)))
    # conv1 emits conv2's padded bf16 input layout directly: no inter-layer glue.
    h = conv3x3_bias_relu(x, params["w1"], params["b1"],
                          pad_output=True, out_dtype=jnp.bfloat16)
    y = conv3x3_bias_relu(h, params["w2"], params["b2"],
                          pad_output=False, out_dtype=jnp.float32)
    return jnp.transpose(y, (0, 3, 1, 2))            # NHWC -> NCHW


# ----------------------------------------------------------------------------
# Pure-JAX reference (XLA conv, f32) for numerical sanity check
# ----------------------------------------------------------------------------
def reference_forward(params, x_nchw):
    def conv(x, w, b):
        y = jax.lax.conv_general_dilated(
            x, w, window_strides=(1, 1), padding=[(1, 1), (1, 1)],
            dimension_numbers=("NCHW", "OIHW", "NCHW"),
            precision=jax.lax.Precision.HIGHEST)
        return jnp.maximum(y + b.reshape(1, -1, 1, 1), 0.0)

    x = conv(x_nchw, params["w1"], params["b1"])
    x = conv(x, params["w2"], params["b2"])
    return x


if __name__ == "__main__":
    key = jax.random.PRNGKey(0)
    key, xkey = jax.random.split(key)

    batch, ch_in, ch_out, H, W = 2, 4, 8, 16, 16
    x = jax.random.normal(xkey, (batch, ch_in, H, W), jnp.float32)
    params = init_up_conv(key, ch_in, ch_out)

    out = jax.block_until_ready(up_conv_forward(params, x))
    ref = jax.block_until_ready(reference_forward(params, x))

    assert out.shape == ref.shape == (batch, ch_out, H, W), (out.shape, ref.shape)
    assert bool(jnp.all(jnp.isfinite(out)))
    # bf16 operands with f32 accumulation vs. the f32 reference.
    assert jnp.allclose(out, ref, atol=3e-2, rtol=3e-2), (
        float(jnp.max(jnp.abs(out - ref))))

    print("KERNEL_OK")
</pallas_src>

<mosaic_0001>
module attributes {stable_mosaic.version = 11 : i64} {
  func.func @_conv3x3_bias_relu_kernel(%arg0: i32, %arg1: i32, %arg2: memref<1x18x18x4xbf16, #tpu.memory_space<vmem>>, %arg3: memref<36x8xbf16, #tpu.memory_space<vmem>>, %arg4: memref<1x8xf32, #tpu.memory_space<vmem>>, %arg5: memref<1x18x18x8xbf16, #tpu.memory_space<vmem>>) attributes {dimension_semantics = [#tpu.dimension_semantics<parallel>, #tpu.dimension_semantics<parallel>], iteration_bounds = array<i64: 2, 1>, scalar_prefetch = 0 : i64, scratch_operands = 0 : i64, tpu.core_type = #tpu.core_type<tc>, window_params = [{transform_indices = @transform_0, window_bounds = array<i64: 1, 18, 18, 4>}, {transform_indices = @transform_1, window_bounds = array<i64: 36, 8>}, {transform_indices = @transform_2, window_bounds = array<i64: 1, 8>}, {transform_indices = @transform_3, window_bounds = array<i64: 1, 18, 18, 8>}]} {
    %c0 = arith.constant 0 : index
    %c0_0 = arith.constant 0 : index
    %c0_1 = arith.constant 0 : index
    %c0_2 = arith.constant 0 : index
    %0 = vector.load %arg2[%c0, %c0_0, %c0_1, %c0_2] : memref<1x18x18x4xbf16, #tpu.memory_space<vmem>>, vector<1x16x18x4xbf16>
    %1 = vector.shape_cast %0 : vector<1x16x18x4xbf16> to vector<16x18x4xbf16>
    %2 = vector.extract_strided_slice %1 {offsets = [0, 0, 0], sizes = [16, 16, 4], strides = [1, 1, 1]} : vector<16x18x4xbf16> to vector<16x16x4xbf16>
    %3 = vector.extract_strided_slice %1 {offsets = [0, 1, 0], sizes = [16, 16, 4], strides = [1, 1, 1]} : vector<16x18x4xbf16> to vector<16x16x4xbf16>
    %4 = vector.extract_strided_slice %1 {offsets = [0, 2, 0], sizes = [16, 16, 4], strides = [1, 1, 1]} : vector<16x18x4xbf16> to vector<16x16x4xbf16>
    %c0_3 = arith.constant 0 : index
    %c1 = arith.constant 1 : index
    %c0_4 = arith.constant 0 : index
    %c0_5 = arith.constant 0 : index
    %5 = vector.load %arg2[%c0_3, %c1, %c0_4, %c0_5] : memref<1x18x18x4xbf16, #tpu.memory_space<vmem>>, vector<1x16x18x4xbf16>
    %6 = vector.shape_cast %5 : vector<1x16x18x4xbf16> to vector<16x18x4xbf16>
    %7 = vector.extract_strided_slice %6 {offsets = [0, 0, 0], sizes = [16, 16, 4], strides = [1, 1, 1]} : vector<16x18x4xbf16> to vector<16x16x4xbf16>
    %8 = vector.extract_strided_slice %6 {offsets = [0, 1, 0], sizes = [16, 16, 4], strides = [1, 1, 1]} : vector<16x18x4xbf16> to vector<16x16x4xbf16>
    %9 = vector.extract_strided_slice %6 {offsets = [0, 2, 0], sizes = [16, 16, 4], strides = [1, 1, 1]} : vector<16x18x4xbf16> to vector<16x16x4xbf16>
    %c0_6 = arith.constant 0 : index
    %c2 = arith.constant 2 : index
    %c0_7 = arith.constant 0 : index
    %c0_8 = arith.constant 0 : index
    %10 = vector.load %arg2[%c0_6, %c2, %c0_7, %c0_8] : memref<1x18x18x4xbf16, #tpu.memory_space<vmem>>, vector<1x16x18x4xbf16>
    %11 = vector.shape_cast %10 : vector<1x16x18x4xbf16> to vector<16x18x4xbf16>
    %12 = vector.extract_strided_slice %11 {offsets = [0, 0, 0], sizes = [16, 16, 4], strides = [1, 1, 1]} : vector<16x18x4xbf16> to vector<16x16x4xbf16>
    %13 = vector.extract_strided_slice %11 {offsets = [0, 1, 0], sizes = [16, 16, 4], strides = [1, 1, 1]} : vector<16x18x4xbf16> to vector<16x16x4xbf16>
    %14 = vector.extract_strided_slice %11 {offsets = [0, 2, 0], sizes = [16, 16, 4], strides = [1, 1, 1]} : vector<16x18x4xbf16> to vector<16x16x4xbf16>
    %15 = tpu.concatenate %2, %3, %4, %7, %8, %9, %12, %13, %14 in 2 : vector<16x16x4xbf16>, vector<16x16x4xbf16>, vector<16x16x4xbf16>, vector<16x16x4xbf16>, vector<16x16x4xbf16>, vector<16x16x4xbf16>, vector<16x16x4xbf16>, vector<16x16x4xbf16>, vector<16x16x4xbf16> -> vector<16x16x36xbf16>
    %16 = vector.shape_cast %15 : vector<16x16x36xbf16> to vector<256x36xbf16>
    %c0_9 = arith.constant 0 : index
    %c0_10 = arith.constant 0 : index
    %17 = vector.load %arg3[%c0_9, %c0_10] : memref<36x8xbf16, #tpu.memory_space<vmem>>, vector<36x8xbf16>
    %cst = arith.constant dense<0.000000e+00> : vector<256x8xf32>
    %18 = tpu.matmul %16, %17, %cst {dimension_numbers = #tpu.dot_dimension_numbers<[1], [0], [0], [1], [0, 0, 1, 1], [], []>} : vector<256x36xbf16>, vector<36x8xbf16>, vector<256x8xf32> -> vector<256x8xf32>
    %c0_11 = arith.constant 0 : index
    %c0_12 = arith.constant 0 : index
    %19 = vector.load %arg4[%c0_11, %c0_12] : memref<1x8xf32, #tpu.memory_space<vmem>>, vector<1x8xf32>
    %20 = vector.broadcast %19 : vector<1x8xf32> to vector<256x8xf32>
    %21 = arith.addf %18, %20 : vector<256x8xf32>
    %cst_13 = arith.constant 0.000000e+00 : f32
    %22 = vector.broadcast %cst_13 : f32 to vector<256x8xf32>
    %23 = arith.maximumf %21, %22 : vector<256x8xf32>
    %24 = vector.shape_cast %23 : vector<256x8xf32> to vector<16x16x8xf32>
    %25 = arith.truncf %24 : vector<16x16x8xf32> to vector<16x16x8xbf16>
    %cst_14 = arith.constant 0.000000e+00 : bf16
    %26 = vector.broadcast %cst_14 : bf16 to vector<16x1x8xbf16>
    %cst_15 = arith.constant 0.000000e+00 : bf16
    %27 = vector.broadcast %cst_15 : bf16 to vector<1x18x8xbf16>
    %28 = tpu.concatenate %26, %25, %26 in 1 : vector<16x1x8xbf16>, vector<16x16x8xbf16>, vector<16x1x8xbf16> -> vector<16x18x8xbf16>
    %29 = tpu.concatenate %27, %28, %27 in 0 : vector<1x18x8xbf16>, vector<16x18x8xbf16>, vector<1x18x8xbf16> -> vector<18x18x8xbf16>
    %c0_16 = arith.constant 0 : index
    %c0_17 = arith.constant 0 : index
    %c0_18 = arith.constant 0 : index
    %c0_19 = arith.constant 0 : index
    %30 = vector.load %arg5[%c0_16, %c0_17, %c0_18, %c0_19] : memref<1x18x18x8xbf16, #tpu.memory_space<vmem>>, vector<1x18x18x8xbf16>
    %31 = vector.shape_cast %30 : vector<1x18x18x8xbf16> to vector<18x18x8xbf16>
    %32 = vector.shape_cast %29 : vector<18x18x8xbf16> to vector<1x18x18x8xbf16>
    tpu.vector_store %arg5[%c0_16, %c0_17, %c0_18, %c0_19], %32 {strides = array<i32>} : memref<1x18x18x8xbf16, #tpu.memory_space<vmem>>, vector<1x18x18x8xbf16>,
    return
  }
  func.func @transform_0(%arg0: i32, %arg1: i32) -> (i32, i32, i32, i32) {
    %c0_i32 = arith.constant 0 : i32
    %c0_i32_0 = arith.constant 0 : i32
    %c0_i32_1 = arith.constant 0 : i32
    %c0_i32_2 = arith.constant 0 : i32
    return %arg0, %c0_i32, %c0_i32_0, %c0_i32_1 : i32, i32, i32, i32
  }
  func.func @transform_1(%arg0: i32, %arg1: i32) -> (i32, i32) {
    %c0_i32 = arith.constant 0 : i32
    %c0_i32_0 = arith.constant 0 : i32
    return %c0_i32, %arg1 : i32, i32
  }
  func.func @transform_2(%arg0: i32, %arg1: i32) -> (i32, i32) {
    %c0_i32 = arith.constant 0 : i32
    %c0_i32_0 = arith.constant 0 : i32
    return %c0_i32, %arg1 : i32, i32
  }
  func.func @transform_3(%arg0: i32, %arg1: i32) -> (i32, i32, i32, i32) {
    %c0_i32 = arith.constant 0 : i32
    %c0_i32_0 = arith.constant 0 : i32
    %c0_i32_1 = arith.constant 0 : i32
    return %arg0, %c0_i32, %c0_i32_0, %arg1 : i32, i32, i32, i32
  }
}

module attributes {stable_mosaic.version = 11 : i64} {
  func.func @_conv3x3_bias_relu_kernel(%arg0: i32, %arg1: i32, %arg2: memref<1x18x18x8xbf16, #tpu.memory_space<vmem>>, %arg3: memref<72x8xbf16, #tpu.memory_space<vmem>>, %arg4: memref<1x8xf32, #tpu.memory_space<vmem>>, %arg5: memref<1x16x16x8xf32, #tpu.memory_space<vmem>>) attributes {dimension_semantics = [#tpu.dimension_semantics<parallel>, #tpu.dimension_semantics<parallel>], iteration_bounds = array<i64: 2, 1>, scalar_prefetch = 0 : i64, scratch_operands = 0 : i64, tpu.core_type = #tpu.core_type<tc>, window_params = [{transform_indices = @transform_0, window_bounds = array<i64: 1, 18, 18, 8>}, {transform_indices = @transform_1, window_bounds = array<i64: 72, 8>}, {transform_indices = @transform_2, window_bounds = array<i64: 1, 8>}, {transform_indices = @transform_3, window_bounds = array<i64: 1, 16, 16, 8>}]} {
    %c0 = arith.constant 0 : index
    %c0_0 = arith.constant 0 : index
    %c0_1 = arith.constant 0 : index
    %c0_2 = arith.constant 0 : index
    %0 = vector.load %arg2[%c0, %c0_0, %c0_1, %c0_2] : memref<1x18x18x8xbf16, #tpu.memory_space<vmem>>, vector<1x16x18x8xbf16>
    %1 = vector.shape_cast %0 : vector<1x16x18x8xbf16> to vector<16x18x8xbf16>
    %2 = vector.extract_strided_slice %1 {offsets = [0, 0, 0], sizes = [16, 16, 8], strides = [1, 1, 1]} : vector<16x18x8xbf16> to vector<16x16x8xbf16>
    %3 = vector.extract_strided_slice %1 {offsets = [0, 1, 0], sizes = [16, 16, 8], strides = [1, 1, 1]} : vector<16x18x8xbf16> to vector<16x16x8xbf16>
    %4 = vector.extract_strided_slice %1 {offsets = [0, 2, 0], sizes = [16, 16, 8], strides = [1, 1, 1]} : vector<16x18x8xbf16> to vector<16x16x8xbf16>
    %c0_3 = arith.constant 0 : index
    %c1 = arith.constant 1 : index
    %c0_4 = arith.constant 0 : index
    %c0_5 = arith.constant 0 : index
    %5 = vector.load %arg2[%c0_3, %c1, %c0_4, %c0_5] : memref<1x18x18x8xbf16, #tpu.memory_space<vmem>>, vector<1x16x18x8xbf16>
    %6 = vector.shape_cast %5 : vector<1x16x18x8xbf16> to vector<16x18x8xbf16>
    %7 = vector.extract_strided_slice %6 {offsets = [0, 0, 0], sizes = [16, 16, 8], strides = [1, 1, 1]} : vector<16x18x8xbf16> to vector<16x16x8xbf16>
    %8 = vector.extract_strided_slice %6 {offsets = [0, 1, 0], sizes = [16, 16, 8], strides = [1, 1, 1]} : vector<16x18x8xbf16> to vector<16x16x8xbf16>
    %9 = vector.extract_strided_slice %6 {offsets = [0, 2, 0], sizes = [16, 16, 8], strides = [1, 1, 1]} : vector<16x18x8xbf16> to vector<16x16x8xbf16>
    %c0_6 = arith.constant 0 : index
    %c2 = arith.constant 2 : index
    %c0_7 = arith.constant 0 : index
    %c0_8 = arith.constant 0 : index
    %10 = vector.load %arg2[%c0_6, %c2, %c0_7, %c0_8] : memref<1x18x18x8xbf16, #tpu.memory_space<vmem>>, vector<1x16x18x8xbf16>
    %11 = vector.shape_cast %10 : vector<1x16x18x8xbf16> to vector<16x18x8xbf16>
    %12 = vector.extract_strided_slice %11 {offsets = [0, 0, 0], sizes = [16, 16, 8], strides = [1, 1, 1]} : vector<16x18x8xbf16> to vector<16x16x8xbf16>
    %13 = vector.extract_strided_slice %11 {offsets = [0, 1, 0], sizes = [16, 16, 8], strides = [1, 1, 1]} : vector<16x18x8xbf16> to vector<16x16x8xbf16>
    %14 = vector.extract_strided_slice %11 {offsets = [0, 2, 0], sizes = [16, 16, 8], strides = [1, 1, 1]} : vector<16x18x8xbf16> to vector<16x16x8xbf16>
    %15 = tpu.concatenate %2, %3, %4, %7, %8, %9, %12, %13, %14 in 2 : vector<16x16x8xbf16>, vector<16x16x8xbf16>, vector<16x16x8xbf16>, vector<16x16x8xbf16>, vector<16x16x8xbf16>, vector<16x16x8xbf16>, vector<16x16x8xbf16>, vector<16x16x8xbf16>, vector<16x16x8xbf16> -> vector<16x16x72xbf16>
    %16 = vector.shape_cast %15 : vector<16x16x72xbf16> to vector<256x72xbf16>
    %c0_9 = arith.constant 0 : index
    %c0_10 = arith.constant 0 : index
    %17 = vector.load %arg3[%c0_9, %c0_10] : memref<72x8xbf16, #tpu.memory_space<vmem>>, vector<72x8xbf16>
    %cst = arith.constant dense<0.000000e+00> : vector<256x8xf32>
    %18 = tpu.matmul %16, %17, %cst {dimension_numbers = #tpu.dot_dimension_numbers<[1], [0], [0], [1], [0, 0, 1, 1], [], []>} : vector<256x72xbf16>, vector<72x8xbf16>, vector<256x8xf32> -> vector<256x8xf32>
    %c0_11 = arith.constant 0 : index
    %c0_12 = arith.constant 0 : index
    %19 = vector.load %arg4[%c0_11, %c0_12] : memref<1x8xf32, #tpu.memory_space<vmem>>, vector<1x8xf32>
    %20 = vector.broadcast %19 : vector<1x8xf32> to vector<256x8xf32>
    %21 = arith.addf %18, %20 : vector<256x8xf32>
    %cst_13 = arith.constant 0.000000e+00 : f32
    %22 = vector.broadcast %cst_13 : f32 to vector<256x8xf32>
    %23 = arith.maximumf %21, %22 : vector<256x8xf32>
    %24 = vector.shape_cast %23 : vector<256x8xf32> to vector<16x16x8xf32>
    %c0_14 = arith.constant 0 : index
    %c0_15 = arith.constant 0 : index
    %c0_16 = arith.constant 0 : index
    %c0_17 = arith.constant 0 : index
    %25 = vector.load %arg5[%c0_14, %c0_15, %c0_16, %c0_17] : memref<1x16x16x8xf32, #tpu.memory_space<vmem>>, vector<1x16x16x8xf32>
    %26 = vector.shape_cast %25 : vector<1x16x16x8xf32> to vector<16x16x8xf32>
    %27 = vector.shape_cast %24 : vector<16x16x8xf32> to vector<1x16x16x8xf32>
    tpu.vector_store %arg5[%c0_14, %c0_15, %c0_16, %c0_17], %27 {strides = array<i32>} : memref<1x16x16x8xf32, #tpu.memory_space<vmem>>, vector<1x16x16x8xf32>,
    return
  }
  func.func @transform_0(%arg0: i32, %arg1: i32) -> (i32, i32, i32, i32) {
    %c0_i32 = arith.constant 0 : i32
    %c0_i32_0 = arith.constant 0 : i32
    %c0_i32_1 = arith.constant 0 : i32
    %c0_i32_2 = arith.constant 0 : i32
    return %arg0, %c0_i32, %c0_i32_0, %c0_i32_1 : i32, i32, i32, i32
  }
  func.func @transform_1(%arg0: i32, %arg1: i32) -> (i32, i32) {
    %c0_i32 = arith.constant 0 : i32
    %c0_i32_0 = arith.constant 0 : i32
    return %c0_i32, %arg1 : i32, i32
  }
  func.func @transform_2(%arg0: i32, %arg1: i32) -> (i32, i32) {
    %c0_i32 = arith.constant 0 : i32
    %c0_i32_0 = arith.constant 0 : i32
    return %c0_i32, %arg1 : i32, i32
  }
  func.func @transform_3(%arg0: i32, %arg1: i32) -> (i32, i32, i32, i32) {
    %c0_i32 = arith.constant 0 : i32
    %c0_i32_0 = arith.constant 0 : i32
    %c0_i32_1 = arith.constant 0 : i32
    return %arg0, %c0_i32, %c0_i32_0, %arg1 : i32, i32, i32, i32
  }
}

</mosaic_0001>

<bundles_post_ra>
// kernel: up_conv_forward.3
= control target key start
LH: loop header
LB: loop body
LE: loop exit
PB: predicated region body
PF: predicated region fallthrough
CT: control target
= control target key end

     0   :  { %s2905_s12 = smov 0   ;;  %s2907_s13 = smov 0   ;;  %s4087_s0 = inlined_call_operand.vmem [shape: bf16[2,18,18,8], index: 0, kind: input, shape index: {}]   ;;  %s4088_s1 = inlined_call_operand.vmem [shape: bf16[72,8], index: 1, kind: input, shape index: {}]   ;;  %s4089_s2 = inlined_call_operand.vmem [shape: f32[1,8], index: 2, kind: input, shape index: {}]   ;;  %s4090_s3 = inlined_call_operand.vmem [shape: f32[2,16,16,8], index: 3, kind: output, shape index: {}]  }
   0x1   :  { %s2909_s14 = smov 0  }
   0x2 LB: > { %s25_s15 = sadd.s32 1, %s2871_s13  ;;  %p2411_p0 = scmp.ge.s32.totalorder %s2875_s14, 1  ;;  %s2875_s14 = sphi %s2909_s14, %s13_s14   ;;  %s2871_s13 = sphi %s2907_s13, %s4092_s13   ;;  %s2867_s12 = sphi %s2905_s12, %s4091_s12  }
   0x3   : > { %p27_p1 = scmp.ge.s32.totalorder %s25_s15, 2  ;;  %p168_p2 = scmp.lt.s32.totalorder %s2875_s14, 3 }
   0x5   : > { %s4094_s15 = smov (%p27_p1, %s25_s15), 0  ;;  %p169_p3 = pnand %p2411_p0, %p168_p2 }
   0x6   : > { %p202_p4 = scmp.lt.s32.totalorder (!%p169_p3), %s2867_s12, 1  ;;  %vm722_vm0 = vcmask (!%p169_p3), 1046528   ;;  %s2877_s20 = smov (!%p169_p3), 24   ;;  %vm497_vm1 = vsmask.f32 (!%p169_p3), 7424  ;;  %vm2071_vm2 = vcmask (!%p169_p3), 1043456  }
   0x7   : > { %172 = sbr.rel (%p169_p3) target bundleno = 608 (0x260), region = 32  ;;  %s2878_s21 = smov (!%p169_p3), 16   ;;  %vm1731_vm3 = vcmask (!%p169_p3), 64512   ;;  %vm1764_vm4 = vcmask (!%p169_p3), 130048   ;;  %vm1797_vm5 = vcmask (!%p169_p3), 195584   ;;  %vm1830_vm6 = vcmask (!%p169_p3), 261120  }
   0x8   : > { %s2879_s22 = smov (!%p169_p3), 8   ;;  %s2880_s23 = smov (!%p169_p3), 32   ;;  %vm1863_vm7 = vcmask (!%p169_p3), 326656   ;;  %vm1896_vm8 = vcmask (!%p169_p3), 392192   ;;  %vm1929_vm9 = vcmask (!%p169_p3), 457728   ;;  %vm1962_vm10 = vcmask (!%p169_p3), 523264  }
   0x9   : > { %s2881_s24 = smov (!%p169_p3), 40   ;;  %s2882_s25 = smov (!%p169_p3), 48   ;;  %vm2038_vm11 = vcmask (!%p169_p3), 588800  }
   0xa   : > { %s2883_s26 = smov (!%p169_p3), 56   ;;  %s2884_s27 = smov (!%p169_p3), 64  }
   0xe   : > { %s4096_s12 = smov (!%p202_p4, %s2867_s12), 1 }
   0xf   : > { %s2707_s16 = smul.u32 216, %s4096_s12  ;;  %s2631_s17 = sshll.u32 %s4096_s12, 8 }
  0x11   : > { %s2929_s19 = scalar_lea.vmem %s4087_s0, %s2707_s16 }
  0x12   : > { %v2932_v0 = vld [vmem:[%s2929_s19 + $0x6c] sm:$0xff]   ;;  %v2942_v2 = vld [vmem:[%s2929_s19 + $0x60] sm:$0xff]   ;;  %v2743_v3 = vld [vmem:[%s2929_s19 + $0x68] ss:$0 sps:$4 sm:$0x11]  }
  0x13   : > { %v2935_v1 = vld [vmem:[%s2929_s19 + $0xc] sm:$0xff]   ;;  %899 = vrot.lane.b32.xlu1 %v2932_v0, %s2877_s20  ;;  %v2744_v4 = vld [vmem:[%s2929_s19] sm:$0xff]   ;;  %v1060_v5 = vshrl.u32 %v2932_v0, 16  ;;  %v747_v6 = vrot.slane %v2942_v2, 1  ;;  %v748_v7 = vrot.slane %v2743_v3, 1  ;;  %v2961_v36 = vld [vmem:[%s2929_s19 + $0x78] sm:$0xff]  }
  0x14   : > { %883 = vrot.lane.b32.xlu0 %v2935_v1, %s2877_s20  ;;  %v2745_v8 = vld [vmem:[%s2929_s19 + $0x8] ss:$0 sps:$4 sm:$0x11]   ;;  %v2746_v9 = vld [vmem:[%s2929_s19 + $0x6c] sm:$0xff]   ;;  %v723_v10 = vrot.slane %v2744_v4, 1  ;;  %v499_v22 = vshrl.u32 %v2744_v4, 16 }
  0x15   : > { %v2748_v11 = vld [vmem:[%s2929_s19 + $0xc] sm:$0xff]   ;;  %v749_v12 = vsel %vm722_vm0, %v747_v6, %v748_v7  ;;  %v724_v13 = vrot.slane %v2745_v8, 1  ;;  %v2747_v14 = vld [vmem:[%s2929_s19 + $0x74] ss:$0 sps:$4 sm:$0x11]   ;;  %v750_v15 = vrot.slane %v2746_v9, 1 }
  0x16   : > { %v726_v16 = vrot.slane %v2748_v11, 1  ;;  %v751_v18 = vrot.slane %v2747_v14, 1  ;;  %v2749_v19 = vld [vmem:[%s2929_s19 + $0x14] ss:$0 sps:$4 sm:$0x11]   ;;  %v511_v20 = vshrl.u32 %v2748_v11, 16 }
  0x17   : > { %787 = vrot.lane.b32.xlu1 %v749_v12, %s2878_s21  ;;  %v725_v17 = vsel %vm722_vm0, %v723_v10, %v724_v13  ;;  %v513_v21 = vshll.u32 %v2748_v11, 16  ;;  %v501_v23 = vshll.u32 %v2744_v4, 16  ;;  %v727_v25 = vrot.slane %v2749_v19, 1  ;;  %v2752_v44 = vld [vmem:[%s2929_s19 + $0x74] ss:$0 sps:$4 sm:$0x11]  }
  0x18   : > { %771 = vrot.lane.b32.xlu0 %v725_v17, %s2878_s21  ;;  %v752_v24 = vsel %vm722_vm0, %v750_v15, %v751_v18  ;;  %v518_v26 = vshll.u32 %v2749_v19, 16  ;;  %v506_v27 = vshll.u32 %v2745_v8, 16  ;;  %v607_v30 = vshrl.u32 %v2746_v9, 16  ;;  %v2753_v49 = vld [vmem:[%s2929_s19 + $0x14] ss:$0 sps:$4 sm:$0x11]  }
  0x19   : > { %v515_v28 = vrot.slane %v513_v21, 1  ;;  %v503_v29 = vrot.slane %v501_v23, 1  ;;  %v609_v31 = vshll.u32 %v2746_v9, 16  ;;  %v728_v32 = vsel %vm722_vm0, %v726_v16, %v727_v25  ;;  %v2973_v52 = vld [vmem:[%s2929_s19 + $0x18] sm:$0xff]  }
  0x1a   : > { %v520_v33 = vrot.slane %v518_v26, 1  ;;  %v508_v34 = vrot.slane %v506_v27, 1  ;;  %v614_v35 = vshll.u32 %v2747_v14, 16  ;;  %v595_v40 = vshrl.u32 %v2942_v2, 16  ;;  %v3003_v26 = vld [vmem:[%s2929_s19 + $0x78] sm:$0xff]  }
  0x1b   : > { %789 = vrot.lane.b32.xlu1 %v752_v24, %s2878_s21  ;;  %v516_v37 = vor.u32 %v515_v28, %v511_v20  ;;  %v504_v38 = vor.u32 %v503_v29, %v499_v22  ;;  %v611_v39 = vrot.slane %v609_v31, 1  ;;  %v597_v42 = vshll.u32 %v2942_v2, 16  ;;  %v2754_v58 = vld [vmem:[%s2929_s19 + $0x80] ss:$0 sps:$4 sm:$0x11]  }
  0x1c   : > { %773 = vrot.lane.b32.xlu0 %v728_v32, %s2878_s21  ;;  %v616_v41 = vrot.slane %v614_v35, 1  ;;  %v602_v43 = vshll.u32 %v2743_v3, 16  ;;  %v1062_v48 = vshll.u32 %v2932_v0, 16  ;;  %v1067_v53 = vshll.u32 %v2752_v44, 16  ;;  %v3023_v35 = vld [vmem:[%s2929_s19 + $0x24] sm:$0xff]  }
  0x1d   : > { %v521_v45 = vsel %vm497_vm1, %v516_v37, %v520_v33  ;;  %v509_v46 = vsel %vm497_vm1, %v504_v38, %v508_v34  ;;  %v612_v47 = vor.u32 %v611_v39, %v607_v30  ;;  %v599_v50 = vrot.slane %v597_v42, 1  ;;  %v2755_v62 = vld [vmem:[%s2929_s19 + $0x20] ss:$0 sps:$4 sm:$0x11]   ;;  %v3018_v33 = vld [vmem:[%s2929_s19 + $0x84] sm:$0xff]  }
  0x1e   : > { %v604_v51 = vrot.slane %v602_v43, 1  ;;  %v1064_v55 = vrot.slane %v1062_v48, 1  ;;  %v966_v56 = vshll.u32 %v2935_v1, 16  ;;  %v971_v57 = vshll.u32 %v2753_v49, 16 }
  0x1f   : > { %692 = vrot.lane.b32.xlu1 %v521_v45, %s2879_s22  ;;  %v617_v54 = vsel %vm497_vm1, %v612_v47, %v616_v41  ;;  %v600_v59 = vor.u32 %v599_v50, %v595_v40  ;;  %v964_v60 = vshrl.u32 %v2935_v1, 16  ;;  %v1074_v61 = vshll.u32 %v2961_v36, 16  ;;  %v3015_v32 = vld [vmem:[%s2929_s19 + $0x80] ss:$0 sps:$4 sm:$0x11]   ;;  %v3047_v50 = vld [vmem:[%s2929_s19 + $0x78] sm:$0xff]  }
  0x20   : > { %690 = vrot.lane.b32.xlu0 %v509_v46, %s2879_s22  ;;  %v1069_v63 = vrot.slane %v1067_v53, 1  ;;  %v968_v2 = vrot.slane %v966_v56, 1  ;;  %v973_v4 = vrot.slane %v971_v57, 1  ;;  %v1072_v6 = vshrl.u32 %v2961_v36, 16 }
  0x21   : > { %v605_v3 = vsel %vm497_vm1, %v600_v59, %v604_v51  ;;  %v978_v7 = vshll.u32 %v2973_v52, 16  ;;  %v1065_v8 = vor.u32 %v1064_v55, %v1060_v5  ;;  %v1076_v9 = vrot.slane %v1074_v61, 1  ;;  %v3054_v55 = vld [vmem:[%s2929_s19 + $0x18] sm:$0xff]  }
  0x22   : > { %v1079_v10 = vshll.u32 %v2754_v58, 16  ;;  %v969_v11 = vor.u32 %v968_v2, %v964_v60  ;;  %v976_v12 = vshrl.u32 %v2973_v52, 16  ;;  %v983_v14 = vshll.u32 %v2755_v62, 16 }
  0x23   : > { %708 = vrot.lane.b32.xlu1 %v617_v54, %s2879_s22  ;;  %v980_v13 = vrot.slane %v978_v7, 1  ;;  %v1070_v15 = vsel %vm497_vm1, %v1065_v8, %v1069_v63  ;;  %v1077_v16 = vor.u32 %v1076_v9, %v1072_v6  ;;  %v1211_v21 = vrot.slane %v2932_v0, 1  ;;  %v3064_v63 = vld [vmem:[%s2929_s19 + $0x20] ss:$0 sps:$4 sm:$0x11]  }
  0x24   : > { %706 = vrot.lane.b32.xlu0 %v605_v3, %s2879_s22  ;;  %v1081_v17 = vrot.slane %v1079_v10, 1  ;;  %v974_v5 = vsel %vm497_vm1, %v969_v11, %v973_v4  ;;  %v985_v19 = vrot.slane %v983_v14, 1  ;;  %v1212_v22 = vrot.slane %v2752_v44, 1  ;;  %v3037_v44 = vld [vmem:[%s2929_s19 + $0x8c] ss:$0 sps:$4 sm:$0x11]  }
  0x25   : > { %v981_v18 = vor.u32 %v980_v13, %v976_v12  ;;  %v1187_v24 = vrot.slane %v2935_v1, 1  ;;  %v1188_v25 = vrot.slane %v2753_v49, 1  ;;  %v1214_v28 = vrot.slane %v2961_v36, 1  ;;  %v3012_v1 = vld [vmem:[%s2929_s19 + $0x18] sm:$0xff]  }
  0x26   : > { %v1082_v20 = vsel %vm497_vm1, %v1077_v16, %v1081_v17  ;;  %v1213_v27 = vsel %vm722_vm0, %v1211_v21, %v1212_v22  ;;  %v1215_v0 = vrot.slane %v2754_v58, 1  ;;  %v1190_v30 = vrot.slane %v2973_v52, 1  ;;  %v3044_v49 = vld [vmem:[%s2929_s19 + $0x2c] ss:$0 sps:$4 sm:$0x11]  }
  0x27   : > { %901 = vrot.lane.b32.xlu1 %v2961_v36, %s2877_s20  ;;  %v986_v23 = vsel %vm497_vm1, %v981_v18, %v985_v19  ;;  %v1189_v29 = vsel %vm722_vm0, %v1187_v24, %v1188_v25  ;;  %v1191_v31 = vrot.slane %v2755_v62, 1  ;;  %v1526_v34 = vshll.u32 %v3003_v26, 16  ;;  %v3026_v36 = vld [vmem:[%s2929_s19 + $0x20] ss:$0 sps:$4 sm:$0x11]   ;;  %v3084_v18 = vld [vmem:[%s2929_s19 + $0x84] sm:$0xff]  }
  0x28   : > { %885 = vrot.lane.b32.xlu0 %v2973_v52, %s2877_s20  ;;  %v1216_v37 = vsel %vm722_vm0, %v1214_v28, %v1215_v0  ;;  %v1430_v39 = vshll.u32 %v3012_v1, 16  ;;  %v1524_v40 = vshrl.u32 %v3003_v26, 16  ;;  %v1531_v42 = vshll.u32 %v3015_v32, 16  ;;  %v3061_v62 = vld [vmem:[%s2929_s19 + $0x80] ss:$0 sps:$4 sm:$0x11]  }
  0x29   : > { %v1192_v38 = vsel %vm722_vm0, %v1190_v30, %v1191_v31  ;;  %v1528_v41 = vrot.slane %v1526_v34, 1  ;;  %v1435_v43 = vshll.u32 %v3026_v36, 16  ;;  %v1538_v45 = vshll.u32 %v3018_v33, 16  ;;  %v2769_v28 = vld [vmem:[%s2929_s19 + $0x8c] ss:$0 sps:$4 sm:$0x11]  }
  0x2a   : > { %v1442_v46 = vshll.u32 %v3023_v35, 16  ;;  %v1428_v47 = vshrl.u32 %v3012_v1, 16  ;;  %v1432_v48 = vrot.slane %v1430_v39, 1  ;;  %v1533_v52 = vrot.slane %v1531_v42, 1 }
  0x2b   : > { %1171 = vrot.lane.b32.xlu1 %v1070_v15, %s2880_s23  ;;  %v1529_v51 = vor.u32 %v1528_v41, %v1524_v40  ;;  %v1536_v53 = vshrl.u32 %v3018_v33, 16  ;;  %v1440_v54 = vshrl.u32 %v3023_v35, 16  ;;  %v1437_v56 = vrot.slane %v1435_v43, 1  ;;  %v2771_v31 = vld [vmem:[%s2929_s19 + $0x2c] ss:$0 sps:$4 sm:$0x11]  }
  0x2c   : > { %1155 = vrot.lane.b32.xlu0 %v974_v5, %s2880_s23  ;;  %v1540_v57 = vrot.slane %v1538_v45, 1  ;;  %v1543_v58 = vshll.u32 %v3037_v44, 16  ;;  %v1444_v59 = vrot.slane %v1442_v46, 1  ;;  %v1433_v60 = vor.u32 %v1432_v48, %v1428_v47 }
  0x2d   : > { %v1447_v61 = vshll.u32 %v3044_v49, 16  ;;  %v1534_v2 = vsel %vm497_vm1, %v1529_v51, %v1533_v52  ;;  %v621_v6 = vshll.u32 %v3047_v50, 16  ;;  %v525_v10 = vshll.u32 %v3054_v55, 16 }
  0x2e   : > { %v1541_v3 = vor.u32 %v1540_v57, %v1536_v53  ;;  %v1545_v4 = vrot.slane %v1543_v58, 1  ;;  %v1438_v7 = vsel %vm497_vm1, %v1433_v60, %v1437_v56  ;;  %v1445_v8 = vor.u32 %v1444_v59, %v1440_v54  ;;  %v3123_v58 = vld [vmem:[%s2929_s19 + $0x84] sm:$0xff]  }
  0x2f   : > { %1173 = vrot.lane.b32.xlu1 %v1082_v20, %s2880_s23  ;;  %v1449_v9 = vrot.slane %v1447_v61, 1  ;;  %v1675_v11 = vrot.slane %v3003_v26, 1  ;;  %v1676_v12 = vrot.slane %v3015_v32, 1  ;;  %v626_v13 = vshll.u32 %v3061_v62, 16  ;;  %v3127_v59 = vld [vmem:[%s2929_s19 + $0x24] sm:$0xff]  }
  0x30   : > { %1157 = vrot.lane.b32.xlu0 %v986_v23, %s2880_s23  ;;  %v530_v14 = vshll.u32 %v3064_v63, 16  ;;  %v1546_v15 = vsel %vm497_vm1, %v1541_v3, %v1545_v4  ;;  %v1651_v16 = vrot.slane %v3012_v1, 1  ;;  %v619_v17 = vshrl.u32 %v3047_v50, 16  ;;  %v3090_v23 = vld [vmem:[%s2929_s19 + $0x24] sm:$0xff]   ;;  %v3138_v3 = vld [vmem:[%s2929_s19 + $0x90] sm:$0xff]  }
  0x31   : > { %v623_v5 = vrot.slane %v621_v6, 1  ;;  %v1450_v19 = vsel %vm497_vm1, %v1445_v8, %v1449_v9  ;;  %v1652_v20 = vrot.slane %v3026_v36, 1  ;;  %v523_v21 = vshrl.u32 %v3054_v55, 16  ;;  %v3146_v8 = vld [vmem:[%s2929_s19 + $0x2c] ss:$0 sps:$4 sm:$0x11]  }
  0x32   : > { %v527_v22 = vrot.slane %v525_v10, 1  ;;  %v628_v24 = vrot.slane %v626_v13, 1  ;;  %v532_v25 = vrot.slane %v530_v14, 1  ;;  %v633_v0 = vshll.u32 %v3084_v18, 16  ;;  %v3150_v10 = vld [vmem:[%s2929_s19 + $0x30] sm:$0xff]  }
  0x33   : > { %1251 = vrot.lane.b32.xlu1 %v1213_v27, %s2881_s24  ;;  %v624_v27 = vor.u32 %v623_v5, %v619_v17  ;;  %v1678_v32 = vrot.slane %v3018_v33, 1  ;;  %v1679_v34 = vrot.slane %v3037_v44, 1  ;;  %v1654_v36 = vrot.slane %v3023_v35, 1  ;;  %v3161_v5 = vld [vmem:[%s2929_s19 + $0x98] ss:$0 sps:$4 sm:$0x11]  }
  0x34   : > { %1235 = vrot.lane.b32.xlu0 %v1189_v29, %s2881_s24  ;;  %v1653_v29 = vsel %vm722_vm0, %v1651_v16, %v1652_v20  ;;  %v528_v30 = vor.u32 %v527_v22, %v523_v21  ;;  %v631_v39 = vshrl.u32 %v3084_v18, 16  ;;  %v635_v40 = vrot.slane %v633_v0, 1  ;;  %v2804_v16 = vld [vmem:[%s4088_s1] sm:$0xff]   ;;  %v3169_v20 = vld [vmem:[%s2929_s19 + $0x38] ss:$0 sps:$4 sm:$0x11]  }
  0x35   : > { %v638_v41 = vshll.u32 %v2769_v28, 16  ;;  %v535_v43 = vshrl.u32 %v3090_v23, 16  ;;  %v753_v52 = vrot.slane %v3047_v50, 1  ;;  %v754_v53 = vrot.slane %v3061_v62, 1  ;;  %2653 = vmatprep.subr.bf16.mxu0 %v2804_v16  ;;  %2695 = vmatprep.subr.bf16.mxu1 %v2804_v16  ;;  %v2806_v22 = vld [vmem:[%s4088_s1 + $0x10] sm:$0xff]  }
  0x36   : > { %v533_v42 = vsel %vm497_vm1, %v528_v30, %v532_v25  ;;  %v636_v44 = vor.u32 %v635_v40, %v631_v39  ;;  %v729_v56 = vrot.slane %v3054_v55, 1  ;;  %v730_v57 = vrot.slane %v3064_v63, 1  ;;  %2654 = vmatpush3.bf16.msra.mxu0 %v2804_v16  ;;  %2700 = vmatpush3.bf16.msra.mxu1 %v2804_v16  ;;  %v2809_v39 = vld [vmem:[%s4088_s1 + $0x18] sm:$0xff]  }
  0x37   : > { %1253 = vrot.lane.b32.xlu1 %v1216_v37, %s2881_s24  ;;  %v1655_v37 = vrot.slane %v3044_v49, 1  ;;  %v640_v46 = vrot.slane %v638_v41, 1  ;;  %v755_v50 = vsel %vm722_vm0, %v753_v52, %v754_v53  ;;  %v756_v60 = vrot.slane %v3084_v18, 1  ;;  %v3215_v53 = vld [vmem:[%s2929_s19 + $0x30] sm:$0xff]  }
  0x38   : > { %1237 = vrot.lane.b32.xlu0 %v1192_v38, %s2881_s24  ;;  %v629_v38 = vsel %vm497_vm1, %v624_v27, %v628_v24  ;;  %v757_v61 = vrot.slane %v2769_v28, 1  ;;  %v732_v62 = vrot.slane %v3090_v23, 1  ;;  %v731_v55 = vsel %vm722_vm0, %v729_v56, %v730_v57  ;;  %v3220_v57 = vld [vmem:[%s2929_s19 + $0x98] ss:$0 sps:$4 sm:$0x11]  }
  0x39   : > { %v1656_v47 = vsel %vm722_vm0, %v1654_v36, %v1655_v37  ;;  %v641_v51 = vsel %vm497_vm1, %v636_v44, %v640_v46  ;;  %v733_v63 = vrot.slane %v2771_v31, 1  ;;  %v1086_v4 = vshll.u32 %v3123_v58, 16  ;;  %v2812_v44 = vld [vmem:[%s4088_s1 + $0x20] ss:$0 sps:$4 sm:$0xff]  }
  0x3a   : > { %v990_v6 = vshll.u32 %v3127_v59, 16  ;;  %v995_v18 = vshll.u32 %v3146_v8, 16  ;;  %v1002_v21 = vshll.u32 %v3150_v10, 16  ;;  %v1000_v24 = vshrl.u32 %v3150_v10, 16 }
  0x3b   : > { %1363 = vrot.lane.b32.xlu1 %v3003_v26, %s2882_s25  ;;  %v1677_v26 = vsel %vm722_vm0, %v1675_v11, %v1676_v12  ;;  %v734_v9 = vsel %vm722_vm0, %v732_v62, %v733_v63  ;;  %v1084_v11 = vshrl.u32 %v3123_v58, 16  ;;  %v988_v12 = vshrl.u32 %v3127_v59, 16 }
  0x3c   : > { %1347 = vrot.lane.b32.xlu0 %v3012_v1, %s2882_s25  ;;  %v537_v1 = vshll.u32 %v3090_v23, 16  ;;  %v1088_v13 = vrot.slane %v1086_v4, 1  ;;  %v992_v17 = vrot.slane %v990_v6, 1  ;;  %v1096_v23 = vshrl.u32 %v3138_v3, 16 }
  0x3d   : > { %v1103_v28 = vshll.u32 %v3161_v5, 16  ;;  %v1004_v30 = vrot.slane %v1002_v21, 1  ;;  %v1217_v41 = vrot.slane %v3123_v58, 1  ;;  %v1197_v52 = vrot.slane %v3169_v20, 1  ;;  %v3261_v21 = vld [vmem:[%s2929_s19 + $0x30] sm:$0xff]  }
  0x3e   : > { %v539_v45 = vrot.slane %v537_v1, 1  ;;  %v1089_v25 = vor.u32 %v1088_v13, %v1084_v11  ;;  %v993_v0 = vor.u32 %v992_v17, %v988_v12  ;;  %v1454_v62 = vshll.u32 %v3215_v53, 16  ;;  %v3252_v13 = vld [vmem:[%s2929_s19 + $0x90] sm:$0xff]  }
  0x3f   : > { %1365 = vrot.lane.b32.xlu1 %v3018_v33, %s2882_s25  ;;  %v542_v33 = vshll.u32 %v2771_v31, 16  ;;  %v1007_v31 = vshll.u32 %v3169_v20, 16  ;;  %v1005_v37 = vor.u32 %v1004_v30, %v1000_v24  ;;  %v1452_v4 = vshrl.u32 %v3215_v53, 16 }
  0x40   : > { %1349 = vrot.lane.b32.xlu0 %v3023_v35, %s2882_s25  ;;  %v1680_v35 = vsel %vm722_vm0, %v1678_v32, %v1679_v34  ;;  %v540_v48 = vor.u32 %v539_v45, %v535_v43  ;;  %v1105_v34 = vrot.slane %v1103_v28, 1  ;;  %v1193_v45 = vrot.slane %v3127_v59, 1 }
  0x41   : > { %v544_v49 = vrot.slane %v542_v33, 1  ;;  %v1194_v33 = vrot.slane %v3146_v8, 1  ;;  %v3246_v8 = vld [vmem:[%s2929_s19 + $0x44] ss:$0 sps:$4 sm:$0x11]   ;;  %v549_v30 = vshll.u32 %v3261_v21, 16 }
  0x42   : > { %v1471_v17 = vshll.u32 %v3246_v8, 16 }
  0x43   : > { %1635 = vrot.lane.b32.xlu1 %v1534_v2, %s2883_s26  ;;  %v545_v54 = vsel %vm497_vm1, %v540_v48, %v544_v49  ;;  %v3135_v2 = vld [vmem:[%s2929_s19 + $0x8c] ss:$0 sps:$4 sm:$0x11]   ;;  %v1221_v48 = vrot.slane %v3161_v5, 1  ;;  %v1195_v49 = vsel %vm722_vm0, %v1193_v45, %v1194_v33  ;;  %v547_v45 = vshrl.u32 %v3261_v21, 16 }
  0x44   : > { %1619 = vrot.lane.b32.xlu0 %v1438_v7, %s2883_s26  ;;  %v758_v7 = vsel %vm722_vm0, %v756_v60, %v757_v61  ;;  %v1091_v14 = vshll.u32 %v3135_v2, 16  ;;  %v3232_v61 = vld [vmem:[%s2929_s19 + $0x3c] sm:$0xff]  }
  0x47   : > { %1637 = vrot.lane.b32.xlu1 %v1546_v15, %s2883_s26  ;;  %v1098_v15 = vshll.u32 %v3138_v3, 16 }
  0x48   : > { %1621 = vrot.lane.b32.xlu0 %v1450_v19, %s2883_s26  ;;  %v2805_v19 = vld [vmem:[%s4088_s1 + $0x8] sm:$0xff]  }
  0x49   : > { %2655 = vmatprep.subr.bf16.mxu0 %v2805_v19  ;;  %2696 = vmatprep.subr.bf16.mxu1 %v2805_v19  ;;  %v1100_v27 = vrot.slane %v1098_v15, 1 }
  0x4a   : > { %2656 = vmatpush3.bf16.msra.mxu0 %v2805_v19  ;;  %2701 = vmatpush3.bf16.msra.mxu1 %v2805_v19  ;;  %v1464_v19 = vshrl.u32 %v3232_v61, 16 }
  0x4b   : > { %1715 = vrot.lane.b32.xlu1 %v1677_v26, %s2884_s27  ;;  %v1093_v26 = vrot.slane %v1091_v14, 1  ;;  %2657 = vmatprep.subr.bf16.mxu0 %v2806_v22  ;;  %v1101_v32 = vor.u32 %v1100_v27, %v1096_v23  ;;  %v645_v27 = vshll.u32 %v3252_v13, 16 }
  0x4c   : > { %1699 = vrot.lane.b32.xlu0 %v1653_v29, %s2884_s27  ;;  %v997_v29 = vrot.slane %v995_v18, 1  ;;  %2697 = vmatprep.subr.bf16.mxu1 %v2806_v22 }
  0x4d   : > { %v1094_v1 = vsel %vm497_vm1, %v1089_v25, %v1093_v26  ;;  %v1106_v40 = vsel %vm497_vm1, %v1101_v32, %v1105_v34  ;;  %v1473_v26 = vrot.slane %v1471_v17, 1  ;;  %v1682_v32 = vrot.slane %v3220_v57, 1  ;;  %v3282_v34 = vld [vmem:[%s2929_s19 + $0x9c] sm:$0xff]  }
  0x4e   : > { %v998_v36 = vsel %vm497_vm1, %v993_v0, %v997_v29  ;;  %2658 = vmatpush3.bf16.msra.mxu0 %v2806_v22  ;;  %2702 = vmatpush3.bf16.msra.mxu1 %v2806_v22  ;;  %v3264_v22 = vld [vmem:[%s2929_s19 + $0x98] ss:$0 sps:$4 sm:$0x11]  }
  0x4f   : > { %710 = vrot.lane.b32.xlu1 %v629_v38, %s2879_s22  ;;  %v1009_v38 = vrot.slane %v1007_v31, 1  ;;  %2659 = vmatprep.subr.bf16.mxu0 %v2809_v39  ;;  %v3274_v29 = vld [vmem:[%s2929_s19 + $0x38] ss:$0 sps:$4 sm:$0x11]  }
  0x50   : > { %694 = vrot.lane.b32.xlu0 %v533_v42, %s2879_s22  ;;  %v1218_v42 = vrot.slane %v3135_v2, 1  ;;  %2698 = vmatprep.subr.bf16.mxu1 %v2809_v39  ;;  %v1555_v2 = vshll.u32 %v3220_v57, 16 }
  0x51   : > { %v1010_v43 = vsel %vm497_vm1, %v1005_v37, %v1009_v38  ;;  %v643_v38 = vshrl.u32 %v3252_v13, 16 }
  0x52   : > { %2660 = vmatpush3.bf16.msra.mxu0 %v2809_v39  ;;  %2703 = vmatpush3.bf16.msra.mxu1 %v2809_v39  ;;  %v1219_v46 = vsel %vm722_vm0, %v1217_v41, %v1218_v42  ;;  %v1557_v12 = vrot.slane %v1555_v2, 1  ;;  %v650_v39 = vshll.u32 %v3264_v22, 16 }
  0x53   : > { %1717 = vrot.lane.b32.xlu1 %v1680_v35, %s2884_s27  ;;  %v3201_v35 = vld [vmem:[%s2929_s19 + $0x90] sm:$0xff]   ;;  %2705 = vmatprep.subr.msk.bf16.mxu0 %vm2071_vm2, %v2812_v44 }
  0x54   : > { %1701 = vrot.lane.b32.xlu0 %v1656_v47, %s2884_s27  ;;  %v1220_v47 = vrot.slane %v3138_v3, 1  ;;  %2706 = vmatprep.subr.msk.bf16.mxu1 %vm2071_vm2, %v2812_v44  ;;  %v1550_v56 = vshll.u32 %v3201_v35, 16 }
  0x56   : > { %v1552_v63 = vrot.slane %v1550_v56, 1 }
  0x57   : > { %712 = vrot.lane.b32.xlu1 %v641_v51, %s2879_s22  ;;  %v1196_v51 = vrot.slane %v3150_v10, 1 }
  0x58   : > { %696 = vrot.lane.b32.xlu0 %v545_v54, %s2879_s22  ;;  %v2073_v54 = vsel %vm2071_vm2, %v2812_v44, 0  ;;  %v554_v44 = vshll.u32 %v3274_v29, 16 }
  0x59   : > { %2662 = vmatpush3.bf16.msra.mxu0 %v2073_v54  ;;  %2704 = vmatpush3.bf16.msra.mxu1 %v2073_v54  ;;  %v1198_v60 = vsel %vm722_vm0, %v1196_v51, %v1197_v52  ;;  %v657_v52 = vshll.u32 %v3282_v34, 16 }
  0x5a   : > { %v556_v57 = vrot.slane %v554_v44, 1 }
  0x5b   : > { %791 = vrot.lane.b32.xlu1 %v755_v50, %s2878_s21  ;;  %v3228_v50 = vld [vmem:[%s2929_s19 + $0x38] ss:$0 sps:$4 sm:$0x11]  }
  0x5c   : > { %775 = vrot.lane.b32.xlu0 %v731_v55, %s2878_s21  ;;  %v1548_v55 = vshrl.u32 %v3201_v35, 16  ;;  %v1459_v6 = vshll.u32 %v3228_v50, 16  ;;  %v1658_v37 = vrot.slane %v3228_v50, 1 }
  0x5e   : > { %v1553_v11 = vor.u32 %v1552_v63, %v1548_v55  ;;  %v1461_v18 = vrot.slane %v1459_v6, 1  ;;  %v1660_v55 = vrot.slane %v3232_v61, 1  ;;  %v655_v63 = vshrl.u32 %v3282_v34, 16 }
  0x5f   : > { %793 = vrot.lane.b32.xlu1 %v758_v7, %s2878_s21  ;;  %v659_v6 = vrot.slane %v657_v52, 1 }
  0x60   : > { %777 = vrot.lane.b32.xlu0 %v734_v9, %s2878_s21  ;;  %v1456_v9 = vrot.slane %v1454_v62, 1  ;;  %v1558_v23 = vsel %vm497_vm1, %v1553_v11, %v1557_v12 }
  0x62   : > { %v1457_v5 = vor.u32 %v1456_v9, %v1452_v4 }
  0x63   : > { %903 = vrot.lane.b32.xlu1 %v3123_v58, %s2877_s20  ;;  %v1222_v58 = vsel %vm722_vm0, %v1220_v47, %v1221_v48  ;;  %v3301_v47 = vld [vmem:[%s2929_s19 + $0xa4] ss:$0 sps:$4 sm:$0x11]  }
  0x64   : > { %887 = vrot.lane.b32.xlu0 %v3127_v59, %s2877_s20  ;;  %v3225_v59 = vld [vmem:[%s2929_s19 + $0x9c] sm:$0xff]   ;;  %v1462_v28 = vsel %vm497_vm1, %v1457_v5, %v1461_v18 }
  0x65   : > { %v1562_v7 = vshll.u32 %v3225_v59, 16  ;;  %v1560_v14 = vshrl.u32 %v3225_v59, 16 }
  0x67   : > { %905 = vrot.lane.b32.xlu1 %v3138_v3, %s2877_s20  ;;  %v3239_v3 = vld [vmem:[%s2929_s19 + $0xa4] ss:$0 sps:$4 sm:$0x11]   ;;  %v1564_v15 = vrot.slane %v1562_v7, 1  ;;  %v662_v7 = vshll.u32 %v3301_v47, 16 }
  0x68   : > { %889 = vrot.lane.b32.xlu0 %v3150_v10, %s2877_s20  ;;  %v1466_v10 = vshll.u32 %v3232_v61, 16  ;;  %v1567_v16 = vshll.u32 %v3239_v3, 16  ;;  %v1685_v62 = vrot.slane %v3239_v3, 1 }
  0x69   : > { %v1565_v24 = vor.u32 %v1564_v15, %v1560_v14  ;;  %v660_v14 = vor.u32 %v659_v6, %v655_v63  ;;  %v664_v15 = vrot.slane %v662_v7, 1 }
  0x6a   : > { %v1468_v20 = vrot.slane %v1466_v10, 1  ;;  %v1569_v25 = vrot.slane %v1567_v16, 1 }
  0x6b   : > { %1175 = vrot.lane.b32.xlu1 %v1094_v1, %s2880_s23  ;;  %v1681_v1 = vrot.slane %v3201_v35, 1 }
  0x6c   : > { %1159 = vrot.lane.b32.xlu0 %v998_v36, %s2880_s23  ;;  %v1469_v0 = vor.u32 %v1468_v20, %v1464_v19  ;;  %v1657_v36 = vrot.slane %v3215_v53, 1  ;;  %v1570_v42 = vsel %vm497_vm1, %v1565_v24, %v1569_v25  ;;  %v665_v19 = vsel %vm497_vm1, %v660_v14, %v664_v15 }
  0x6d   : > { %v759_v20 = vrot.slane %v3252_v13, 1 }
  0x6e   : > { %v1474_v33 = vsel %vm497_vm1, %v1469_v0, %v1473_v26  ;;  %v1659_v54 = vsel %vm722_vm0, %v1657_v36, %v1658_v37  ;;  %v735_v26 = vrot.slane %v3261_v21, 1  ;;  %v3353_v0 = vld [vmem:[%s2929_s19 + $0x9c] sm:$0xff]  }
  0x6f   : > { %1177 = vrot.lane.b32.xlu1 %v1106_v40, %s2880_s23  ;;  %v3290_v40 = vld [vmem:[%s2929_s19 + $0x3c] sm:$0xff]  }
  0x70   : > { %1161 = vrot.lane.b32.xlu0 %v1010_v43, %s2880_s23  ;;  %v647_v43 = vrot.slane %v645_v27, 1  ;;  %v559_v3 = vshrl.u32 %v3290_v40, 16  ;;  %v736_v27 = vrot.slane %v3274_v29, 1  ;;  %v3360_v21 = vld [vmem:[%s2929_s19 + $0x3c] sm:$0xff]  }
  0x72   : > { %v648_v51 = vor.u32 %v647_v43, %v643_v38  ;;  %v1014_v43 = vshll.u32 %v3360_v21, 16 }
  0x73   : > { %1255 = vrot.lane.b32.xlu1 %v1219_v46, %s2881_s24  ;;  %v652_v46 = vrot.slane %v650_v39, 1  ;;  %v3374_v39 = vld [vmem:[%s2929_s19 + $0xa8] sm:$0xff]  }
  0x74   : > { %1239 = vrot.lane.b32.xlu0 %v1195_v49, %s2881_s24  ;;  %v1683_v49 = vsel %vm722_vm0, %v1681_v1, %v1682_v32  ;;  %v737_v1 = vsel %vm722_vm0, %v735_v26, %v736_v27  ;;  %v738_v32 = vrot.slane %v3290_v40, 1  ;;  %v1016_v52 = vrot.slane %v1014_v43, 1  ;;  %v3433_v26 = vld [vmem:[%s2929_s19 + $0xa8] sm:$0xff]   ;;  %v3451_v43 = vld [vmem:[%s2929_s19 + $0xb0] ss:$0 sps:$4 sm:$0x11]  }
  0x75   : > { %v653_v4 = vsel %vm497_vm1, %v648_v51, %v652_v46  ;;  %v1108_v46 = vshrl.u32 %v3353_v0, 16  ;;  %v1120_v63 = vshrl.u32 %v3374_v39, 16 }
  0x77   : > { %1257 = vrot.lane.b32.xlu1 %v1222_v58, %s2881_s24  ;;  %v561_v58 = vshll.u32 %v3290_v40, 16 }
  0x78   : > { %1241 = vrot.lane.b32.xlu0 %v1198_v60, %s2881_s24  ;;  %v1684_v60 = vrot.slane %v3225_v59, 1 }
  0x7a   : > { %v1686_v12 = vsel %vm722_vm0, %v1684_v60, %v1685_v62 }
  0x7b   : > { %1367 = vrot.lane.b32.xlu1 %v3201_v35, %s2882_s25  ;;  %v551_v35 = vrot.slane %v549_v30, 1  ;;  %v763_v30 = vrot.slane %v3301_v47, 1 }
  0x7c   : > { %1351 = vrot.lane.b32.xlu0 %v3215_v53, %s2882_s25  ;;  %v3309_v53 = vld [vmem:[%s2929_s19 + $0x44] ss:$0 sps:$4 sm:$0x11]  }
  0x7d   : > { %v552_v56 = vor.u32 %v551_v35, %v547_v45  ;;  %v566_v9 = vshll.u32 %v3309_v53, 16  ;;  %v739_v36 = vrot.slane %v3309_v53, 1  ;;  %v3387_v35 = vld [vmem:[%s2929_s19 + $0x44] ss:$0 sps:$4 sm:$0x11]  }
  0x7e   : > { %v3397_v53 = vld [vmem:[%s2929_s19 + $0xb0] ss:$0 sps:$4 sm:$0x11]  }
  0x7f   : > { %1369 = vrot.lane.b32.xlu1 %v3225_v59, %s2882_s25  ;;  %v557_v10 = vsel %vm497_vm1, %v552_v56, %v556_v57  ;;  %v1661_v59 = vrot.slane %v3246_v8, 1  ;;  %v568_v16 = vrot.slane %v566_v9, 1  ;;  %v740_v45 = vsel %vm722_vm0, %v738_v32, %v739_v36 }
  0x80   : > { %1353 = vrot.lane.b32.xlu0 %v3232_v61, %s2882_s25  ;;  %v563_v61 = vrot.slane %v561_v58, 1  ;;  %v1019_v57 = vshll.u32 %v3387_v35, 16  ;;  %v3404_v58 = vld [vmem:[%s2929_s19 + $0x50] ss:$0 sps:$4 sm:$0x11]   ;;  %v1127_v9 = vshll.u32 %v3397_v53, 16 }
  0x81   : > { %v1662_v5 = vsel %vm722_vm0, %v1660_v55, %v1661_v59  ;;  %v1199_v32 = vrot.slane %v3360_v21, 1  ;;  %v1200_v36 = vrot.slane %v3387_v35, 1 }
  0x82   : > { %v564_v8 = vor.u32 %v563_v61, %v559_v3  ;;  %v1021_v59 = vrot.slane %v1019_v57, 1  ;;  %v3474_v57 = vld [vmem:[%s2929_s19 + $0xb4] sm:$0xff]  }
  0x83   : > { %1639 = vrot.lane.b32.xlu1 %v1558_v23, %s2883_s26  ;;  %v760_v23 = vrot.slane %v3264_v22, 1  ;;  %v762_v22 = vrot.slane %v3282_v34, 1  ;;  %v1110_v34 = vshll.u32 %v3353_v0, 16 }
  0x84   : > { %1623 = vrot.lane.b32.xlu0 %v1462_v28, %s2883_s26  ;;  %v569_v25 = vsel %vm497_vm1, %v564_v8, %v568_v16 }
  0x85   : > { %v3277_v31 = vpop.permute.xlu1 %899  ;;  %v761_v13 = vsel %vm722_vm0, %v759_v20, %v760_v23  ;;  %v764_v38 = vsel %vm722_vm0, %v762_v22, %v763_v30  ;;  %v1112_v47 = vrot.slane %v1110_v34, 1  ;;  %v3445_v34 = vld [vmem:[%s2929_s19 + $0x48] sm:$0xff]  }
  0x86   : > { %v3293_v41 = vpop.permute.xlu0 %883 }
  0x87   : > { %1641 = vrot.lane.b32.xlu1 %v1570_v42, %s2883_s26  ;;  %v3377_v42 = vld [vmem:[%s2929_s19 + $0xa4] ss:$0 sps:$4 sm:$0x11]   ;;  %v1113_v55 = vor.u32 %v1112_v47, %v1108_v46  ;;  %v1201_v46 = vsel %vm722_vm0, %v1199_v32, %v1200_v36 }
  0x88   : > { %1625 = vrot.lane.b32.xlu0 %v1474_v33, %s2883_s26  ;;  %v3384_v33 = vld [vmem:[%s2929_s19 + $0x48] sm:$0xff]   ;;  %v1115_v51 = vshll.u32 %v3377_v42, 16  ;;  %v1224_v22 = vrot.slane %v3377_v42, 1  ;;  %v1226_v42 = vrot.slane %v3374_v39, 1 }
  0x89   : > { %v3304_v48 = vpop.permute.xlu1 %787  ;;  %v1026_v60 = vshll.u32 %v3384_v33, 16  ;;  %v1024_v3 = vshrl.u32 %v3384_v33, 16  ;;  %v1202_v47 = vrot.slane %v3384_v33, 1 }
  0x8a   : > { %v3313_v50 = vpop.permute.xlu0 %771 }
  0x8b   : > { %1719 = vrot.lane.b32.xlu1 %v1683_v49, %s2884_s27  ;;  %v1012_v49 = vshrl.u32 %v3360_v21, 16  ;;  %v1028_v61 = vrot.slane %v1026_v60, 1  ;;  %v1579_v60 = vshll.u32 %v3451_v43, 16 }
  0x8c   : > { %1703 = vrot.lane.b32.xlu0 %v1659_v54, %s2884_s27  ;;  %v1122_v54 = vshll.u32 %v3374_v39, 16 }
  0x8d   : > { %v3321_v2 = vpop.permute.xlu1 %789  ;;  %v1017_v6 = vor.u32 %v1016_v52, %v1012_v49  ;;  %v1029_v20 = vor.u32 %v1028_v61, %v1024_v3  ;;  %v1203_v49 = vrot.slane %v3404_v58, 1  ;;  %v3489_v3 = vld [vmem:[%s2929_s19 + $0xbc] ss:$0 sps:$4 sm:$0x11]  }
  0x8e   : > { %v3329_v11 = vpop.permute.xlu0 %773  ;;  %v1124_v7 = vrot.slane %v1122_v54, 1  ;;  %v3467_v54 = vld [vmem:[%s2929_s19 + $0x50] ss:$0 sps:$4 sm:$0x11]  }
  0x8f   : > { %714 = vrot.lane.b32.xlu1 %v653_v4, %s2879_s22  ;;  %v1117_v4 = vrot.slane %v1115_v51, 1  ;;  %v1478_v51 = vshll.u32 %v3445_v34, 16 }
  0x90   : > { %698 = vrot.lane.b32.xlu0 %v557_v10, %s2879_s22  ;;  %v1125_v16 = vor.u32 %v1124_v7, %v1120_v63  ;;  %v1204_v7 = vsel %vm722_vm0, %v1202_v47, %v1203_v49  ;;  %v3532_v49 = vld [vmem:[%s2929_s19 + $0xa8] sm:$0xff]  }
  0x91   : > { %v3334_v17 = vpop.permute.xlu1 %692  ;;  %v1118_v15 = vsel %vm497_vm1, %v1113_v55, %v1117_v4  ;;  %v2842_v55 = vld [vmem:[%s2929_s19] sm:$0xff]   ;;  %v3484_v4 = vld [vmem:[%s2929_s19 + $0x54] sm:$0xff]  }
  0x92   : > { %v3337_v18 = vpop.permute.xlu0 %690 }
  0x93   : > { %1721 = vrot.lane.b32.xlu1 %v1686_v12, %s2884_s27  ;;  %v1031_v12 = vshll.u32 %v3404_v58, 16  ;;  %v1733_v63 = vsel %vm1731_vm3, %v2842_v55, %v3337_v18 }
  0x94   : > { %1705 = vrot.lane.b32.xlu0 %v1662_v5, %s2884_s27  ;;  %v1129_v5 = vrot.slane %v1127_v9, 1  ;;  %v1476_v9 = vshrl.u32 %v3445_v34, 16 }
  0x95   : > { %v3344_v24 = vpop.permute.xlu1 %708  ;;  %v1033_v23 = vrot.slane %v1031_v12, 1  ;;  %v1483_v12 = vshll.u32 %v3467_v54, 16 }
  0x96   : > { %v3349_v28 = vpop.permute.xlu0 %706  ;;  %v1130_v27 = vsel %vm497_vm1, %v1125_v16, %v1129_v5  ;;  %v1581_v5 = vrot.slane %v1579_v60, 1  ;;  %v2844_v60 = vld [vmem:[%s2929_s19 + $0xc] sm:$0xff]  }
  0x97   : > { %716 = vrot.lane.b32.xlu1 %v665_v19, %s2879_s22  ;;  %v1022_v19 = vsel %vm497_vm1, %v1017_v6, %v1021_v59  ;;  %v1480_v59 = vrot.slane %v1478_v51, 1  ;;  %v2843_v51 = vld [vmem:[%s2929_s19 + $0x6c] sm:$0xff]   ;;  %v1735_v55 = vsel %vm1731_vm3, %v2844_v60, %v3334_v17  ;;  %v1663_v17 = vrot.slane %v3445_v34, 1 }
  0x98   : > { %700 = vrot.lane.b32.xlu0 %v569_v25, %s2879_s22 }
  0x99   : > { %v3362_v29 = vpop.permute.xlu1 %901 }
  0x9a   : > { %v3367_v37 = vpop.permute.xlu0 %885 }
  0x9b   : > { %795 = vrot.lane.b32.xlu1 %v761_v13, %s2878_s21  ;;  %v1223_v13 = vrot.slane %v3353_v0, 1 }
  0x9c   : > { %779 = vrot.lane.b32.xlu0 %v737_v1, %s2878_s21  ;;  %v1034_v1 = vsel %vm497_vm1, %v1029_v20, %v1033_v23  ;;  %v1584_v20 = vshrl.u32 %v3474_v57, 16  ;;  %v1490_v23 = vshll.u32 %v3484_v4, 16 }
  0x9d   : > { %v3380_v40 = vpop.permute.xlu1 %1171 }
  0x9e   : > { %v3389_v44 = vpop.permute.xlu0 %1155 }
  0x9f   : > { %797 = vrot.lane.b32.xlu1 %v764_v38, %s2878_s21 }
  0xa0   : > { %781 = vrot.lane.b32.xlu0 %v740_v45, %s2878_s21  ;;  %v1227_v45 = vrot.slane %v3397_v53, 1 }
  0xa1   : > { %v3400_v56 = vpop.permute.xlu1 %1173 }
  0xa2   : > { %v3407_v62 = vpop.permute.xlu0 %1157 }
  0xa3   : > { %907 = vrot.lane.b32.xlu1 %v3353_v0, %s2877_s20  ;;  %v1574_v0 = vshll.u32 %v3433_v26, 16 }
  0xa4   : > { %891 = vrot.lane.b32.xlu0 %v3360_v21, %s2877_s20  ;;  %v1225_v21 = vsel %vm722_vm0, %v1223_v13, %v1224_v22  ;;  %v1591_v22 = vshll.u32 %v3489_v3, 16 }
  0xa5   : > { %v3415_v10 = vpop.permute.xlu1 %1251  ;;  %v1576_v58 = vrot.slane %v1574_v0, 1 }
  0xa6   : > { %v3419_v14 = vpop.permute.xlu0 %1235 }
  0xa7   : > { %909 = vrot.lane.b32.xlu1 %v3374_v39, %s2877_s20  ;;  %v2841_v39 = vld [vmem:[%s2929_s19 + $0x60] sm:$0xff]  }
  0xa8   : > { %893 = vrot.lane.b32.xlu0 %v3384_v33, %s2877_s20  ;;  %v1749_v53 = vsel %vm1731_vm3, %v2841_v39, %v3349_v28  ;;  %v1572_v33 = vshrl.u32 %v3433_v26, 16  ;;  %v1228_v28 = vsel %vm722_vm0, %v1226_v42, %v1227_v45  ;;  %v1751_v39 = vsel %vm1731_vm3, %v2843_v51, %v3344_v24 }
  0xa9   : > { %v3426_v8 = vpop.permute.xlu1 %1253  ;;  %v1782_v18 = vsel %vm1764_vm4, %v1749_v53, %v3304_v48  ;;  %v3501_v48 = vld [vmem:[%s2929_s19 + $0x5c] ss:$0 sps:$4 sm:$0x11]  }
  0xaa   : > { %v3429_v25 = vpop.permute.xlu0 %1237  ;;  %v1577_v16 = vor.u32 %v1576_v58, %v1572_v33  ;;  %v3541_v58 = vld [vmem:[%s2929_s19 + $0x48] sm:$0xff]  }
  0xab   : > { %1179 = vrot.lane.b32.xlu1 %v1118_v15, %s2880_s23  ;;  %v1766_v15 = vsel %vm1764_vm4, %v1733_v63, %v3313_v50  ;;  %v1481_v50 = vor.u32 %v1480_v59, %v1476_v9  ;;  %v1688_v9 = vrot.slane %v3451_v43, 1  ;;  %v3556_v59 = vld [vmem:[%s2929_s19 + $0xb0] ss:$0 sps:$4 sm:$0x11]  }
  0xac   : > { %1163 = vrot.lane.b32.xlu0 %v1022_v19, %s2880_s23  ;;  %v1586_v19 = vshll.u32 %v3474_v57, 16  ;;  %v1799_v36 = vsel %vm1797_vm5, %v1766_v15, %v3293_v41  ;;  %v669_v15 = vshll.u32 %v3532_v49, 16 }
  0xad   : > { %v3439_v30 = vpop.permute.xlu1 %1363  ;;  %v1832_v42 = vsel %vm1830_vm6, %v1799_v36, %v3389_v44  ;;  %v1492_v44 = vrot.slane %v1490_v23, 1  ;;  %v3597_v36 = vld [vmem:[%s2929_s19 + $0xb4] sm:$0xff]  }
  0xae   : > { %v3447_v38 = vpop.permute.xlu0 %1347  ;;  %v1865_v41 = vsel %vm1863_vm7, %v1832_v42, %v3419_v14 }
  0xaf   : > { %1181 = vrot.lane.b32.xlu1 %v1130_v27, %s2880_s23  ;;  %v1815_v27 = vsel %vm1797_vm5, %v1782_v18, %v3277_v31  ;;  %v1687_v31 = vrot.slane %v3433_v26, 1  ;;  %v1898_v53 = vsel %vm1896_vm8, %v1865_v41, %v3447_v38  ;;  %v1784_v18 = vsel %vm1764_vm4, %v1751_v39, %v3321_v2  ;;  %v3572_v2 = vld [vmem:[%s2929_s19 + $0x50] ss:$0 sps:$4 sm:$0x11]  }
  0xb0   : > { %1165 = vrot.lane.b32.xlu0 %v1034_v1, %s2880_s23  ;;  %v1488_v1 = vshrl.u32 %v3484_v4, 16  ;;  %v1848_v32 = vsel %vm1830_vm6, %v1815_v27, %v3380_v40  ;;  %v1582_v40 = vsel %vm497_vm1, %v1577_v16, %v1581_v5  ;;  %v1817_v16 = vsel %vm1797_vm5, %v1784_v18, %v3362_v29 }
  0xb1   : > { %v3458_v35 = vpop.permute.xlu1 %1365  ;;  %v1881_v45 = vsel %vm1863_vm7, %v1848_v32, %v3415_v10  ;;  %v1495_v10 = vshll.u32 %v3501_v48, 16  ;;  %v1664_v5 = vrot.slane %v3467_v54, 1  ;;  %v1850_v23 = vsel %vm1830_vm6, %v1817_v16, %v3400_v56 }
  0xb2   : > { %v3464_v52 = vpop.permute.xlu0 %1349  ;;  %v1914_v47 = vsel %vm1896_vm8, %v1881_v45, %v3439_v30  ;;  %v1593_v30 = vrot.slane %v1591_v22, 1  ;;  %v667_v29 = vshrl.u32 %v3532_v49, 16  ;;  %v674_v22 = vshll.u32 %v3556_v59, 16 }
  0xb3   : > { %1259 = vrot.lane.b32.xlu1 %v1225_v21, %s2881_s24  ;;  %v1485_v21 = vrot.slane %v1483_v12, 1  ;;  %v1497_v12 = vrot.slane %v1495_v10, 1  ;;  %v671_v32 = vrot.slane %v669_v15, 1  ;;  %v681_v10 = vshll.u32 %v3597_v36, 16 }
  0xb4   : > { %1243 = vrot.lane.b32.xlu0 %v1201_v46, %s2881_s24  ;;  %v1588_v46 = vrot.slane %v1586_v19, 1  ;;  %v573_v19 = vshll.u32 %v3541_v58, 16  ;;  %v1665_v39 = vsel %vm722_vm0, %v1663_v17, %v1664_v5 }
  0xb5   : > { %v1636_v6 = vpop.permute.xlu1 %1635  ;;  %v1486_v24 = vsel %vm497_vm1, %v1481_v50, %v1485_v21  ;;  %v1883_v50 = vsel %vm1863_vm7, %v1850_v23, %v3426_v8  ;;  %v766_v23 = vrot.slane %v3556_v59, 1 }
  0xb6   : > { %v1620_v61 = vpop.permute.xlu0 %1619  ;;  %v1947_v14 = vsel %vm1929_vm9, %v1914_v47, %v1636_v6  ;;  %v1589_v6 = vor.u32 %v1588_v46, %v1584_v20  ;;  %v575_v45 = vrot.slane %v573_v19, 1 }
  0xb7   : > { %1261 = vrot.lane.b32.xlu1 %v1228_v28, %s2881_s24  ;;  %v1931_v63 = vsel %vm1929_vm9, %v1898_v53, %v1620_v61  ;;  %v1493_v61 = vor.u32 %v1492_v44, %v1488_v1  ;;  %v1916_v1 = vsel %vm1896_vm8, %v1883_v50, %v3458_v35  ;;  %v2822_v44 = vld [vmem:[%s2929_s19 + $0xbc] ss:$0 sps:$4 sm:$0x11]   ;;  %v742_v50 = vrot.slane %v3572_v2, 1 }
  0xb8   : > { %1245 = vrot.lane.b32.xlu0 %v1204_v7, %s2881_s24 }
  0xb9   : > { %v3506_v13 = vpop.permute.xlu1 %1637 }
  0xba   : > { %v3514_v0 = vpop.permute.xlu0 %1621  ;;  %v1949_v21 = vsel %vm1929_vm9, %v1916_v1, %v3506_v13  ;;  %v672_v13 = vor.u32 %v671_v32, %v667_v29  ;;  %v769_v1 = vrot.slane %v2822_v44, 1 }
  0xbb   : > { %1371 = vrot.lane.b32.xlu1 %v3433_v26, %s2882_s25  ;;  %v1690_v26 = vrot.slane %v3474_v57, 1 }
  0xbc   : > { %1355 = vrot.lane.b32.xlu0 %v3445_v34, %s2882_s25  ;;  %v1768_v34 = vsel %vm1764_vm4, %v1735_v55, %v3329_v11  ;;  %v571_v11 = vshrl.u32 %v3541_v58, 16  ;;  %v1666_v55 = vrot.slane %v3484_v4, 1 }
  0xbd   : > { %v1716_v33 = vpop.permute.xlu1 %1715  ;;  %v1801_v20 = vsel %vm1797_vm5, %v1768_v34, %v3367_v37  ;;  %v1594_v37 = vsel %vm497_vm1, %v1589_v6, %v1593_v30 }
  0xbe   : > { %v1700_v28 = vpop.permute.xlu0 %1699  ;;  %v1980_v7 = vsel %vm1962_vm10, %v1947_v14, %v1716_v33  ;;  %v1834_v54 = vsel %vm1830_vm6, %v1801_v20, %v3407_v62  ;;  %v1498_v62 = vsel %vm497_vm1, %v1493_v61, %v1497_v12  ;;  %v576_v53 = vor.u32 %v575_v45, %v571_v11  ;;  %v2824_v33 = vld [vmem:[%s2929_s19 + $0x5c] ss:$0 sps:$4 sm:$0x11]  }
  0xbf   : > { %1373 = vrot.lane.b32.xlu1 %v3474_v57, %s2882_s25  ;;  %v1964_v38 = vsel %vm1962_vm10, %v1931_v63, %v1700_v28  ;;  %2679 = vmatprep.mubr.msk.bf16.mxu1 %vm2038_vm11, %v1980_v7  ;;  %v1867_v56 = vsel %vm1863_vm7, %v1834_v54, %v3429_v25  ;;  %v578_v25 = vshll.u32 %v3572_v2, 16  ;;  %v1667_v63 = vrot.slane %v3501_v48, 1 }
  0xc0   : > { %1357 = vrot.lane.b32.xlu0 %v3484_v4, %s2882_s25  ;;  %2663 = vmatprep.mubr.msk.bf16.mxu0 %vm2038_vm11, %v1964_v38  ;;  %v1900_v8 = vsel %vm1896_vm8, %v1867_v56, %v3464_v52  ;;  %v1689_v52 = vsel %vm722_vm0, %v1687_v31, %v1688_v9  ;;  %v1691_v31 = vrot.slane %v3489_v3, 1  ;;  %v679_v7 = vshrl.u32 %v3597_v36, 16 }
  0xc1   : > { %v3568_v43 = vpop.permute.xlu1 %710  ;;  %v1933_v35 = vsel %vm1929_vm9, %v1900_v8, %v3514_v0  ;;  %v676_v0 = vrot.slane %v674_v22, 1  ;;  %v580_v14 = vrot.slane %v578_v25, 1  ;;  %v686_v38 = vshll.u32 %v2822_v44, 16  ;;  %v3663_v22 = vld [vmem:[%s2929_s19 + $0xb4] sm:$0xff]  }
  0xc2   : > { %v3579_v27 = vpop.permute.xlu0 %694  ;;  %v590_v3 = vshll.u32 %v2824_v33, 16  ;;  %v1692_v4 = vsel %vm722_vm0, %v1690_v26, %v1691_v31  ;;  %v1668_v15 = vsel %vm722_vm0, %v1666_v55, %v1667_v63  ;;  %v765_v20 = vrot.slane %v3532_v49, 1  ;;  %v2832_v63 = vld [vmem:[%s2929_s19 + $0x68] ss:$0 sps:$4 sm:$0x11]  }
  0xc3   : > { %1643 = vrot.lane.b32.xlu1 %v1582_v40, %s2883_s26  ;;  %v3605_v40 = vld [vmem:[%s2929_s19 + $0x54] sm:$0xff]   ;;  %v677_v28 = vsel %vm497_vm1, %v672_v13, %v676_v0  ;;  %v581_v9 = vsel %vm497_vm1, %v576_v53, %v580_v14  ;;  %v688_v61 = vrot.slane %v686_v38, 1  ;;  %v741_v54 = vrot.slane %v3541_v58, 1  ;;  %v2830_v13 = vld [vmem:[%s2929_s19 + $0x5c] ss:$0 sps:$4 sm:$0x11]  }
  0xc4   : > { %1627 = vrot.lane.b32.xlu0 %v1486_v24, %s2883_s26  ;;  %v585_v30 = vshll.u32 %v3605_v40, 16  ;;  %v683_v24 = vrot.slane %v681_v10, 1  ;;  %v583_v57 = vshrl.u32 %v3605_v40, 16  ;;  %v592_v34 = vrot.slane %v590_v3, 1 }
  0xc5   : > { %v1718_v42 = vpop.permute.xlu1 %1717  ;;  %v767_v59 = vsel %vm722_vm0, %v765_v20, %v766_v23  ;;  %v768_v56 = vrot.slane %v3597_v36, 1  ;;  %v743_v2 = vsel %vm722_vm0, %v741_v54, %v742_v50  ;;  %v744_v32 = vrot.slane %v3605_v40, 1 }
  0xc6   : > { %v1982_v46 = vsel %vm1962_vm10, %v1949_v21, %v1718_v42  ;;  %v1702_v41 = vpop.permute.xlu0 %1701  ;;  %v587_v17 = vrot.slane %v585_v30, 1  ;;  %v684_v48 = vor.u32 %v683_v24, %v679_v7  ;;  %v745_v8 = vrot.slane %v2824_v33, 1  ;;  %v3673_v21 = vld [vmem:[%s2929_s19 + $0x54] sm:$0xff]   ;;  %v2831_v33 = vld [vmem:[%s2929_s19 + $0xc8] ss:$0 sps:$4 sm:$0x11]  }
  0xc7   : > { %v1966_v47 = vsel %vm1962_vm10, %v1933_v35, %v1702_v41  ;;  %1645 = vrot.lane.b32.xlu1 %v1594_v37, %s2883_s26  ;;  %2680 = vmatmul.mubr.msk.bf16.vlgmr.msra.gmra.mrb[0].mxu1 %vm2038_vm11, %v1982_v46  ;;  %v1134_v45 = vshll.u32 %v3663_v22, 16  ;;  %v770_v25 = vsel %vm722_vm0, %v768_v56, %v769_v1  ;;  %v3682_v35 = vld [vmem:[%s2929_s19 + $0xc0] sm:$0xff]   ;;  %v2829_v46 = vld [vmem:[%s2929_s19 + $0xbc] ss:$0 sps:$4 sm:$0x11]   ;;  %v1038_v0 = vshll.u32 %v3673_v21, 16 }
  0xc8   : > { %1629 = vrot.lane.b32.xlu0 %v1498_v62, %s2883_s26  ;;  %2664 = vmatmul.mubr.msk.bf16.vlgmr.msra.gmra.mrb[0].mxu0 %vm2038_vm11, %v1966_v47  ;;  %v588_v16 = vor.u32 %v587_v17, %v583_v57  ;;  %v689_v19 = vsel %vm497_vm1, %v684_v48, %v688_v61  ;;  %v746_v47 = vsel %vm722_vm0, %v744_v32, %v745_v8  ;;  %v1132_v10 = vshrl.u32 %v3663_v22, 16 }
  0xc9   : > { %v3620_v51 = vpop.permute.xlu1 %712  ;;  %v1139_v53 = vshll.u32 %v2829_v46, 16  ;;  %v1036_v14 = vshrl.u32 %v3673_v21, 16  ;;  %v1146_v30 = vshll.u32 %v3682_v35, 16  ;;  %v1040_v31 = vrot.slane %v1038_v0, 1 }
  0xca   : > { %v3625_v60 = vpop.permute.xlu0 %696  ;;  %v593_v11 = vsel %vm497_vm1, %v588_v16, %v592_v34  ;;  %v1043_v55 = vshll.u32 %v2830_v13, 16  ;;  %v1144_v38 = vshrl.u32 %v3682_v35, 16  ;;  %v1151_v17 = vshll.u32 %v2831_v33, 16 }
  0xcb   : > { %1723 = vrot.lane.b32.xlu1 %v1689_v52, %s2884_s27  ;;  %v3689_v52 = vld [vmem:[%s2929_s19 + $0x60] sm:$0xff]   ;;  %v1148_v57 = vrot.slane %v1146_v30, 1  ;;  %v1041_v48 = vor.u32 %v1040_v31, %v1036_v14  ;;  %v1055_v16 = vshll.u32 %v2832_v63, 16  ;;  %v1230_v32 = vrot.slane %v2829_v46, 1 }
  0xcc   : > { %1707 = vrot.lane.b32.xlu0 %v1665_v39, %s2884_s27  ;;  %v1136_v39 = vrot.slane %v1134_v45, 1  ;;  %v1048_v3 = vshrl.u32 %v3689_v52, 16  ;;  %v1045_v61 = vrot.slane %v1043_v55, 1  ;;  %v1153_v23 = vrot.slane %v1151_v17, 1 }
  0xcd   : > { %v3635_v6 = vpop.permute.xlu1 %791  ;;  %v1149_v20 = vor.u32 %v1148_v57, %v1144_v38  ;;  %v1232_v46 = vrot.slane %v3682_v35, 1  ;;  %v1208_v14 = vrot.slane %v3689_v52, 1  ;;  %v1209_v30 = vrot.slane %v2832_v63, 1  ;;  %v3752_v31 = vld [vmem:[%s2929_s19 + $0xc8] ss:$0 sps:$4 sm:$0x11]  }
  0xce   : > { %v3639_v18 = vpop.permute.xlu0 %775  ;;  %v1137_v24 = vor.u32 %v1136_v39, %v1132_v10  ;;  %v1046_v54 = vsel %vm497_vm1, %v1041_v48, %v1045_v61  ;;  %v3738_v10 = vld [vmem:[%s2929_s19 + $0xc0] sm:$0xff]   ;;  %v1233_v39 = vrot.slane %v2831_v33, 1  ;;  %v1603_v57 = vshll.u32 %v3752_v31, 16  ;;  %v2845_v61 = vld [vmem:[%s2929_s19 + $0x78] sm:$0xff]  }
  0xcf   : > { %718 = vrot.lane.b32.xlu1 %v677_v28, %s2879_s22  ;;  %v1050_v28 = vshll.u32 %v3689_v52, 16  ;;  %v1154_v1 = vsel %vm497_vm1, %v1149_v20, %v1153_v23  ;;  %v1210_v38 = vsel %vm722_vm0, %v1208_v14, %v1209_v30 }
  0xd0   : > { %702 = vrot.lane.b32.xlu0 %v581_v9, %s2879_s22  ;;  %v1141_v9 = vrot.slane %v1139_v53, 1  ;;  %v3745_v53 = vld [vmem:[%s2929_s19 + $0x60] sm:$0xff]   ;;  %v1234_v33 = vsel %vm722_vm0, %v1232_v46, %v1233_v39 }
  0xd1   : > { %v3644_v12 = vpop.permute.xlu1 %793 }
  0xd2   : > { %v3647_v5 = vpop.permute.xlu0 %777 }
  0xd3   : > { %1725 = vrot.lane.b32.xlu1 %v1692_v4, %s2884_s27 }
  0xd4   : > { %1709 = vrot.lane.b32.xlu0 %v1668_v15, %s2884_s27  ;;  %v1052_v15 = vrot.slane %v1050_v28, 1  ;;  %v1598_v28 = vshll.u32 %v3738_v10, 16 }
  0xd5   : > { %v3654_v29 = vpop.permute.xlu1 %903 }
  0xd6   : > { %v3659_v37 = vpop.permute.xlu0 %887  ;;  %v1053_v50 = vor.u32 %v1052_v15, %v1048_v3  ;;  %v1596_v3 = vshrl.u32 %v3738_v10, 16  ;;  %v1600_v48 = vrot.slane %v1598_v28, 1  ;;  %v1753_v15 = vsel %vm1731_vm3, %v2845_v61, %v3568_v43  ;;  %v2847_v61 = vld [vmem:[%s2929_s19 + $0x84] sm:$0xff]  }
  0xd7   : > { %720 = vrot.lane.b32.xlu1 %v689_v19, %s2879_s22  ;;  %v1142_v19 = vsel %vm497_vm1, %v1137_v24, %v1141_v9  ;;  %v3764_v24 = vld [vmem:[%s2929_s19 + $0x68] ss:$0 sps:$4 sm:$0x11]   ;;  %v3769_v9 = vld [vmem:[%s2929_s19 + $0x6c] sm:$0xff]  }
  0xd8   : > { %704 = vrot.lane.b32.xlu0 %v593_v11, %s2879_s22  ;;  %v1601_v39 = vor.u32 %v1600_v48, %v1596_v3 }
  0xd9   : > { %v3668_v62 = vpop.permute.xlu1 %905 }
  0xda   : > { %v3675_v42 = vpop.permute.xlu0 %889 }
  0xdb   : > { %799 = vrot.lane.b32.xlu1 %v767_v59, %s2878_s21  ;;  %v1057_v59 = vrot.slane %v1055_v16, 1  ;;  %v1500_v16 = vshrl.u32 %v3745_v53, 16 }
  0xdc   : > { %783 = vrot.lane.b32.xlu0 %v743_v2, %s2878_s21  ;;  %v1229_v2 = vrot.slane %v3663_v22, 1 }
  0xdd   : > { %v3685_v41 = vpop.permute.xlu1 %1175  ;;  %v1058_v45 = vsel %vm497_vm1, %v1053_v50, %v1057_v59  ;;  %v1786_v59 = vsel %vm1764_vm4, %v1753_v15, %v3635_v6  ;;  %v1755_v15 = vsel %vm1731_vm3, %v2847_v61, %v3620_v51 }
  0xde   : > { %v3693_v44 = vpop.permute.xlu0 %1159 }
  0xdf   : > { %801 = vrot.lane.b32.xlu1 %v770_v25, %s2878_s21  ;;  %v1205_v25 = vrot.slane %v3673_v21, 1 }
  0xe0   : > { %785 = vrot.lane.b32.xlu0 %v746_v47, %s2878_s21  ;;  %v1206_v47 = vrot.slane %v2830_v13, 1 }
  0xe1   : > { %v3701_v26 = vpop.permute.xlu1 %1177 }
  0xe2   : > { %v3705_v7 = vpop.permute.xlu0 %1161  ;;  %v1207_v13 = vsel %vm722_vm0, %v1205_v25, %v1206_v47  ;;  %v1605_v25 = vrot.slane %v1603_v57, 1  ;;  %v3795_v47 = vld [vmem:[%s2929_s19 + $0x74] ss:$0 sps:$4 sm:$0x11]  }
  0xe3   : > { %911 = vrot.lane.b32.xlu1 %v3663_v22, %s2877_s20  ;;  %v1231_v22 = vsel %vm722_vm0, %v1229_v2, %v1230_v32  ;;  %v1819_v32 = vsel %vm1797_vm5, %v1786_v59, %v3654_v29  ;;  %v1519_v57 = vshll.u32 %v3795_v47, 16 }
  0xe4   : > { %895 = vrot.lane.b32.xlu0 %v3673_v21, %s2877_s20  ;;  %v1606_v48 = vsel %vm497_vm1, %v1601_v39, %v1605_v25  ;;  %v1693_v25 = vrot.slane %v3738_v10, 1  ;;  %v1670_v39 = vrot.slane %v3764_v24, 1 }
  0xe5   : > { %v3713_v4 = vpop.permute.xlu1 %1255 }
  0xe6   : > { %v3715_v34 = vpop.permute.xlu0 %1239 }
  0xe7   : > { %913 = vrot.lane.b32.xlu1 %v3682_v35, %s2877_s20  ;;  %v3759_v35 = vld [vmem:[%s2929_s19 + $0xcc] sm:$0xff]  }
  0xe8   : > { %897 = vrot.lane.b32.xlu0 %v3689_v52, %s2877_s20  ;;  %v1502_v52 = vshll.u32 %v3745_v53, 16  ;;  %v1608_v20 = vshrl.u32 %v3759_v35, 16  ;;  %v1610_v23 = vshll.u32 %v3759_v35, 16  ;;  %s3981_s20 = scalar_lea.vmem %s4090_s3, %s2631_s17 }
  0xe9   : > { %v3722_v11 = vpop.permute.xlu1 %1257 }
  0xea   : > { %v3725_v56 = vpop.permute.xlu0 %1241  ;;  %v1504_v43 = vrot.slane %v1502_v52, 1  ;;  %v1612_v14 = vrot.slane %v1610_v23, 1  ;;  %v2848_v23 = vld [vmem:[%s2929_s19 + $0x24] sm:$0xff]  }
  0xeb   : > { %1183 = vrot.lane.b32.xlu1 %v1142_v19, %s2880_s23  ;;  %v3779_v19 = vld [vmem:[%s2929_s19 + $0xd4] ss:$0 sps:$4 sm:$0x11]  }
  0xec   : > { %1167 = vrot.lane.b32.xlu0 %v1046_v54, %s2880_s23  ;;  %v2846_v54 = vld [vmem:[%s2929_s19 + $0x18] sm:$0xff]  }
  0xed   : > { %v3731_v8 = vpop.permute.xlu1 %1367  ;;  %v1737_v50 = vsel %vm1731_vm3, %v2846_v54, %v3579_v27  ;;  %v1514_v27 = vshll.u32 %v3769_v9, 16  ;;  %v1788_v54 = vsel %vm1764_vm4, %v1755_v15, %v3644_v12 }
  0xee   : > { %v3735_v0 = vpop.permute.xlu0 %1351  ;;  %v1770_v2 = vsel %vm1764_vm4, %v1737_v50, %v3639_v18 }
  0xef   : > { %1185 = vrot.lane.b32.xlu1 %v1154_v1, %s2880_s23  ;;  %v1507_v1 = vshll.u32 %v3764_v24, 16  ;;  %v1803_v6 = vsel %vm1797_vm5, %v1770_v2, %v3659_v37  ;;  %v1615_v37 = vshll.u32 %v3779_v19, 16 }
  0xf0   : > { %1169 = vrot.lane.b32.xlu0 %v1058_v45, %s2880_s23  ;;  %v1836_v18 = vsel %vm1830_vm6, %v1803_v6, %v3693_v44  ;;  %v1505_v44 = vor.u32 %v1504_v43, %v1500_v16 }
  0xf1   : > { %v3747_v21 = vpop.permute.xlu1 %1369  ;;  %v1509_v28 = vrot.slane %v1507_v1, 1  ;;  %v1617_v16 = vrot.slane %v1615_v37, 1 }
  0xf2   : > { %v3754_v55 = vpop.permute.xlu0 %1353 }
  0xf3   : > { %1263 = vrot.lane.b32.xlu1 %v1231_v22, %s2881_s24  ;;  %v1852_v22 = vsel %vm1830_vm6, %v1819_v32, %v3685_v41  ;;  %v1869_v41 = vsel %vm1863_vm7, %v1836_v18, %v3715_v34  ;;  %v1510_v51 = vsel %vm497_vm1, %v1505_v44, %v1509_v28 }
  0xf4   : > { %1247 = vrot.lane.b32.xlu0 %v1207_v13, %s2881_s24  ;;  %v1512_v13 = vshrl.u32 %v3769_v9, 16  ;;  %v1885_v29 = vsel %vm1863_vm7, %v1852_v22, %v3713_v4  ;;  %v1902_v4 = vsel %vm1896_vm8, %v1869_v41, %v3735_v0 }
  0xf5   : > { %v1640_v63 = vpop.permute.xlu1 %1639  ;;  %v1918_v30 = vsel %vm1896_vm8, %v1885_v29, %v3731_v8  ;;  %v1673_v29 = vrot.slane %v3795_v47, 1 }
  0xf6   : > { %v1624_v17 = vpop.permute.xlu0 %1623 }
  0xf7   : > { %1265 = vrot.lane.b32.xlu1 %v1234_v33, %s2881_s24  ;;  %v1951_v33 = vsel %vm1929_vm9, %v1918_v30, %v1640_v63  ;;  %v1935_v34 = vsel %vm1929_vm9, %v1902_v4, %v1624_v17  ;;  %v1613_v63 = vor.u32 %v1612_v14, %v1608_v20  ;;  %v1739_v17 = vsel %vm1731_vm3, %v2848_v23, %v3625_v60 }
  0xf8   : > { %1249 = vrot.lane.b32.xlu0 %v1210_v38, %s2881_s24  ;;  %v1516_v38 = vrot.slane %v1514_v27, 1  ;;  %v1772_v50 = vsel %vm1764_vm4, %v1739_v17, %v3647_v5  ;;  %v1821_v20 = vsel %vm1797_vm5, %v1788_v54, %v3668_v62  ;;  %v1521_v60 = vrot.slane %v1519_v57, 1  ;;  %v2849_v17 = vld [vmem:[%s2929_s19 + $0x90] sm:$0xff]  }
  0xf9   : > { %v1642_v45 = vpop.permute.xlu1 %1641  ;;  %v1805_v12 = vsel %vm1797_vm5, %v1772_v50, %v3675_v42  ;;  %v1854_v1 = vsel %vm1830_vm6, %v1821_v20, %v3701_v26  ;;  %v1618_v62 = vsel %vm497_vm1, %v1613_v63, %v1617_v16  ;;  %v1694_v27 = vrot.slane %v3752_v31, 1 }
  0xfa   : > { %v1626_v46 = vpop.permute.xlu0 %1625  ;;  %v1517_v43 = vor.u32 %v1516_v38, %v1512_v13  ;;  %v1838_v32 = vsel %vm1830_vm6, %v1805_v12, %v3705_v7  ;;  %v1887_v5 = vsel %vm1863_vm7, %v1854_v1, %v3722_v11  ;;  %v1669_v7 = vrot.slane %v3745_v53, 1 }
  0xfb   : > { %1375 = vrot.lane.b32.xlu1 %v3738_v10, %s2882_s25  ;;  %v1871_v42 = vsel %vm1863_vm7, %v1838_v32, %v3725_v56  ;;  %v1920_v26 = vsel %vm1896_vm8, %v1887_v5, %v3747_v21  ;;  %v1696_v31 = vrot.slane %v3759_v35, 1 }
  0xfc   : > { %1359 = vrot.lane.b32.xlu0 %v3745_v53, %s2882_s25  ;;  %v1904_v11 = vsel %vm1896_vm8, %v1871_v42, %v3754_v55  ;;  %v1953_v6 = vsel %vm1929_vm9, %v1920_v26, %v1642_v45  ;;  %v1522_v10 = vsel %vm497_vm1, %v1517_v43, %v1521_v60  ;;  %v1695_v53 = vsel %vm722_vm0, %v1693_v25, %v1694_v27 }
  0xfd   : > { %v1720_v52 = vpop.permute.xlu1 %1719  ;;  %v1937_v56 = vsel %vm1929_vm9, %v1904_v11, %v1626_v46  ;;  %v1697_v55 = vrot.slane %v3779_v19, 1  ;;  %v1671_v45 = vsel %vm722_vm0, %v1669_v7, %v1670_v39  ;;  %v1672_v46 = vrot.slane %v3769_v9, 1 }
  0xfe   : > { %v1984_v3 = vsel %vm1962_vm10, %v1951_v33, %v1720_v52  ;;  %v1704_v8 = vpop.permute.xlu0 %1703 }
  0xff   : > { %v1968_v0 = vsel %vm1962_vm10, %v1935_v34, %v1704_v8  ;;  %1377 = vrot.lane.b32.xlu1 %v3759_v35, %s2882_s25  ;;  %2683 = vmatprep.mubr.msk.bf16.mxu1 %vm2038_vm11, %v1984_v3  ;;  %v1698_v37 = vsel %vm722_vm0, %v1696_v31, %v1697_v55  ;;  %v1674_v30 = vsel %vm722_vm0, %v1672_v46, %v1673_v29 }
 0x100   : > { %1361 = vrot.lane.b32.xlu0 %v3769_v9, %s2882_s25  ;;  %2667 = vmatprep.mubr.msk.bf16.mxu0 %vm2038_vm11, %v1968_v0 }
 0x101   : > { %v3843_v59 = vpop.permute.xlu1 %714 }
 0x102   : > { %v3849_v2 = vpop.permute.xlu0 %698  ;;  %v1757_v54 = vsel %vm1731_vm3, %v2849_v17, %v3843_v59 }
 0x103   : > { %1647 = vrot.lane.b32.xlu1 %v1606_v48, %s2883_s26 }
 0x104   : > { %1631 = vrot.lane.b32.xlu0 %v1510_v51, %s2883_s26  ;;  %v2850_v51 = vld [vmem:[%s2929_s19 + $0x30] sm:$0xff]  }
 0x105   : > { %v1722_v22 = vpop.permute.xlu1 %1721  ;;  %v1741_v50 = vsel %vm1731_vm3, %v2850_v51, %v3849_v2 }
 0x106   : > { %v1986_v21 = vsel %vm1962_vm10, %v1953_v6, %v1722_v22  ;;  %v1706_v13 = vpop.permute.xlu0 %1705  ;;  %v2851_v22 = vld [vmem:[%s2929_s19 + $0x9c] sm:$0xff]  }
 0x107   : > { %v1970_v18 = vsel %vm1962_vm10, %v1937_v56, %v1706_v13  ;;  %1649 = vrot.lane.b32.xlu1 %v1618_v62, %s2883_s26  ;;  %2684 = vmatmul.mubr.msk.bf16.gmra.mrb[4].mxu1 %vm2038_vm11, %v1986_v21  ;;  %v2852_v56 = vld [vmem:[%s2929_s19 + $0x3c] sm:$0xff]  }
 0x108   : > { %1633 = vrot.lane.b32.xlu0 %v1522_v10, %s2883_s26  ;;  %2668 = vmatmul.mubr.msk.bf16.gmra.mrb[4].mxu0 %vm2038_vm11, %v1970_v18 }
 0x109   : > { %v717_v24 = vpop.permute.xlu1 %716 }
 0x10a   : > { %v701_v14 = vpop.permute.xlu0 %700  ;;  %v1759_v10 = vsel %vm1731_vm3, %v2851_v22, %v717_v24 }
 0x10b   : > { %1727 = vrot.lane.b32.xlu1 %v1695_v53, %s2884_s27  ;;  %v1743_v21 = vsel %vm1731_vm3, %v2852_v56, %v701_v14 }
 0x10c   : > { %1711 = vrot.lane.b32.xlu0 %v1671_v45, %s2884_s27 }
 0x10d   : > { %v796_v41 = vpop.permute.xlu1 %795 }
 0x10e   : > { %v780_v35 = vpop.permute.xlu0 %779  ;;  %v1790_v20 = vsel %vm1764_vm4, %v1757_v54, %v796_v41 }
 0x10f   : > { %1729 = vrot.lane.b32.xlu1 %v1698_v37, %s2884_s27  ;;  %v1774_v43 = vsel %vm1764_vm4, %v1741_v50, %v780_v35 }
 0x110   : > { %1713 = vrot.lane.b32.xlu0 %v1674_v30, %s2884_s27 }
 0x111   : > { %v798_v19 = vpop.permute.xlu1 %797 }
 0x112   : > { %v782_v44 = vpop.permute.xlu0 %781  ;;  %v1792_v13 = vsel %vm1764_vm4, %v1759_v10, %v798_v19 }
 0x113   : > { %v1776_v18 = vsel %vm1764_vm4, %v1743_v21, %v782_v44 }
 0x115   : > { %v908_v9 = vpop.permute.xlu1 %907 }
 0x116   : > { %v892_v28 = vpop.permute.xlu0 %891  ;;  %v1823_v60 = vsel %vm1797_vm5, %v1790_v20, %v908_v9 }
 0x117   : > { %v1807_v1 = vsel %vm1797_vm5, %v1774_v43, %v892_v28 }
 0x119   : > { %v910_v47 = vpop.permute.xlu1 %909 }
 0x11a   : > { %v894_v4 = vpop.permute.xlu0 %893  ;;  %v1825_v53 = vsel %vm1797_vm5, %v1792_v13, %v910_v47 }
 0x11b   : > { %v1809_v55 = vsel %vm1797_vm5, %v1776_v18, %v894_v4 }
 0x11d   : > { %v1180_v33 = vpop.permute.xlu1 %1179 }
 0x11e   : > { %v1164_v52 = vpop.permute.xlu0 %1163  ;;  %v1856_v32 = vsel %vm1830_vm6, %v1823_v60, %v1180_v33 }
 0x11f   : > { %v1840_v59 = vsel %vm1830_vm6, %v1807_v1, %v1164_v52 }
 0x121   : > { %v1182_v38 = vpop.permute.xlu1 %1181 }
 0x122   : > { %v1166_v57 = vpop.permute.xlu0 %1165  ;;  %v1858_v24 = vsel %vm1830_vm6, %v1825_v53, %v1182_v38 }
 0x123   : > { %v1842_v46 = vsel %vm1830_vm6, %v1809_v55, %v1166_v57 }
 0x125   : > { %v1260_v34 = vpop.permute.xlu1 %1259 }
 0x126   : > { %v1244_v3 = vpop.permute.xlu0 %1243  ;;  %v1889_v62 = vsel %vm1863_vm7, %v1856_v32, %v1260_v34 }
 0x127   : > { %v1873_v2 = vsel %vm1863_vm7, %v1840_v59, %v1244_v3 }
 0x129   : > { %v1262_v8 = vpop.permute.xlu1 %1261 }
 0x12a   : > { %v1246_v48 = vpop.permute.xlu0 %1245  ;;  %v1891_v29 = vsel %vm1863_vm7, %v1858_v24, %v1262_v8 }
 0x12b   : > { %v1875_v14 = vsel %vm1863_vm7, %v1842_v46, %v1246_v48 }
 0x12d   : > { %v1372_v61 = vpop.permute.xlu1 %1371 }
 0x12e   : > { %v1356_v15 = vpop.permute.xlu0 %1355  ;;  %v1922_v25 = vsel %vm1896_vm8, %v1889_v62, %v1372_v61 }
 0x12f   : > { %v1906_v42 = vsel %vm1896_vm8, %v1873_v2, %v1356_v15 }
 0x131   : > { %v1374_v0 = vpop.permute.xlu1 %1373 }
 0x132   : > { %v1358_v63 = vpop.permute.xlu0 %1357  ;;  %v1924_v37 = vsel %vm1896_vm8, %v1891_v29, %v1374_v0 }
 0x133   : > { %v1908_v41 = vsel %vm1896_vm8, %v1875_v14, %v1358_v63 }
 0x135   : > { %v1644_v16 = vpop.permute.xlu1 %1643 }
 0x136   : > { %v1628_v23 = vpop.permute.xlu0 %1627  ;;  %v1955_v26 = vsel %vm1929_vm9, %v1922_v25, %v1644_v16 }
 0x137   : > { %v1939_v7 = vsel %vm1929_vm9, %v1906_v42, %v1628_v23 }
 0x139   : > { %v1646_v12 = vpop.permute.xlu1 %1645 }
 0x13a   : > { %v1630_v5 = vpop.permute.xlu0 %1629  ;;  %v1957_v30 = vsel %vm1929_vm9, %v1924_v37, %v1646_v12 }
 0x13b   : > { %v1941_v19 = vsel %vm1929_vm9, %v1908_v41, %v1630_v5 }
 0x13d   : > { %v1724_v27 = vpop.permute.xlu1 %1723 }
 0x13e   : > { %v1988_v11 = vsel %vm1962_vm10, %v1955_v26, %v1724_v27  ;;  %v1708_v6 = vpop.permute.xlu0 %1707 }
 0x13f   : > { %v1972_v39 = vsel %vm1962_vm10, %v1939_v7, %v1708_v6  ;;  %2687 = vmatprep.mubr.msk.bf16.mxu1 %vm2038_vm11, %v1988_v11 }
 0x140   : > { %2671 = vmatprep.mubr.msk.bf16.mxu0 %vm2038_vm11, %v1972_v39 }
 0x141   : > { %v719_v31 = vpop.permute.xlu1 %718 }
 0x142   : > { %v703_v45 = vpop.permute.xlu0 %702  ;;  %v1761_v1 = vsel %vm1731_vm3, %v3532_v49, %v719_v31 }
 0x143   : > { %v1745_v32 = vsel %vm1731_vm3, %v3541_v58, %v703_v45 }
 0x145   : > { %v1726_v35 = vpop.permute.xlu1 %1725 }
 0x146   : > { %v1990_v44 = vsel %vm1962_vm10, %v1957_v30, %v1726_v35  ;;  %v1710_v9 = vpop.permute.xlu0 %1709 }
 0x147   : > { %v1974_v28 = vsel %vm1962_vm10, %v1941_v19, %v1710_v9  ;;  %2688 = vmatmul.mubr.msk.bf16.gmra.mrb[8].mxu1 %vm2038_vm11, %v1990_v44  ;;  %v3974_v9 = vld [vmem:[%s4089_s2] ss:$0 sm:$0xff] }
 0x148   : > { %2672 = vmatmul.mubr.msk.bf16.gmra.mrb[8].mxu0 %vm2038_vm11, %v1974_v28 }
 0x149   : > { %v721_v47 = vpop.permute.xlu1 %720 }
 0x14a   : > { %v705_v4 = vpop.permute.xlu0 %704  ;;  %v1763_v27 = vsel %vm1731_vm3, %v3597_v36, %v721_v47 }
 0x14b   : > { %v1747_v58 = vsel %vm1731_vm3, %v3605_v40, %v705_v4 }
 0x14d   : > { %v800_v33 = vpop.permute.xlu1 %799 }
 0x14e   : > { %v784_v52 = vpop.permute.xlu0 %783  ;;  %v1794_v5 = vsel %vm1764_vm4, %v1761_v1, %v800_v33 }
 0x14f   : > { %v1778_v59 = vsel %vm1764_vm4, %v1745_v32, %v784_v52 }
 0x151   : > { %v802_v38 = vpop.permute.xlu1 %801 }
 0x152   : > { %v786_v57 = vpop.permute.xlu0 %785  ;;  %v1796_v11 = vsel %vm1764_vm4, %v1763_v27, %v802_v38 }
 0x153   : > { %v1780_v10 = vsel %vm1764_vm4, %v1747_v58, %v786_v57 }
 0x155   : > { %v912_v34 = vpop.permute.xlu1 %911 }
 0x156   : > { %v896_v3 = vpop.permute.xlu0 %895  ;;  %v1827_v62 = vsel %vm1797_vm5, %v1794_v5, %v912_v34 }
 0x157   : > { %v1811_v25 = vsel %vm1797_vm5, %v1778_v59, %v896_v3 }
 0x159   : > { %v914_v8 = vpop.permute.xlu1 %913 }
 0x15a   : > { %v898_v48 = vpop.permute.xlu0 %897  ;;  %v1829_v39 = vsel %vm1797_vm5, %v1796_v11, %v914_v8 }
 0x15b   : > { %v1813_v13 = vsel %vm1797_vm5, %v1780_v10, %v898_v48 }
 0x15d   : > { %v1184_v61 = vpop.permute.xlu1 %1183 }
 0x15e   : > { %v1168_v15 = vpop.permute.xlu0 %1167  ;;  %v1860_v42 = vsel %vm1830_vm6, %v1827_v62, %v1184_v61 }
 0x15f   : > { %v1844_v49 = vsel %vm1830_vm6, %v1811_v25, %v1168_v15 }
 0x161   : > { %v1186_v0 = vpop.permute.xlu1 %1185 }
 0x162   : > { %v1170_v63 = vpop.permute.xlu0 %1169  ;;  %v1862_v18 = vsel %vm1830_vm6, %v1829_v39, %v1186_v0 }
 0x163   : > { %v1846_v55 = vsel %vm1830_vm6, %v1813_v13, %v1170_v63 }
 0x165   : > { %v1264_v16 = vpop.permute.xlu1 %1263 }
 0x166   : > { %v1248_v23 = vpop.permute.xlu0 %1247  ;;  %v1893_v7 = vsel %vm1863_vm7, %v1860_v42, %v1264_v16 }
 0x167   : > { %v1877_v6 = vsel %vm1863_vm7, %v1844_v49, %v1248_v23 }
 0x169   : > { %v1266_v17 = vpop.permute.xlu1 %1265 }
 0x16a   : > { %v1250_v54 = vpop.permute.xlu0 %1249  ;;  %v1895_v24 = vsel %vm1863_vm7, %v1862_v18, %v1266_v17 }
 0x16b   : > { %v1879_v46 = vsel %vm1863_vm7, %v1846_v55, %v1250_v54 }
 0x16d   : > { %v1376_v51 = vpop.permute.xlu1 %1375 }
 0x16e   : > { %v1360_v50 = vpop.permute.xlu0 %1359  ;;  %v1926_v22 = vsel %vm1896_vm8, %v1893_v7, %v1376_v51 }
 0x16f   : > { %v1910_v56 = vsel %vm1896_vm8, %v1877_v6, %v1360_v50 }
 0x171   : > { %v1378_v20 = vpop.permute.xlu1 %1377 }
 0x172   : > { %v1362_v43 = vpop.permute.xlu0 %1361  ;;  %v1928_v29 = vsel %vm1896_vm8, %v1895_v24, %v1378_v20 }
 0x173   : > { %v1912_v14 = vsel %vm1896_vm8, %v1879_v46, %v1362_v43 }
 0x175   : > { %v1648_v60 = vpop.permute.xlu1 %1647 }
 0x176   : > { %v1632_v12 = vpop.permute.xlu0 %1631  ;;  %v1959_v36 = vsel %vm1929_vm9, %v1926_v22, %v1648_v60 }
 0x177   : > { %v1943_v40 = vsel %vm1929_vm9, %v1910_v56, %v1632_v12 }
 0x179   : > { %v1650_v2 = vpop.permute.xlu1 %1649 }
 0x17a   : > { %v1634_v26 = vpop.permute.xlu0 %1633  ;;  %v1961_v37 = vsel %vm1929_vm9, %v1928_v29, %v1650_v2 }
 0x17b   : > { %v1945_v30 = vsel %vm1929_vm9, %v1912_v14, %v1634_v26 }
 0x17d   : > { %v1728_v21 = vpop.permute.xlu1 %1727 }
 0x17e   : > { %v1992_v53 = vsel %vm1962_vm10, %v1959_v36, %v1728_v21  ;;  %v1712_v31 = vpop.permute.xlu0 %1711 }
 0x17f   : > { %v1976_v45 = vsel %vm1962_vm10, %v1943_v40, %v1712_v31  ;;  %2691 = vmatprep.mubr.msk.bf16.mxu1 %vm2038_vm11, %v1992_v53 }
 0x180   : > { %2675 = vmatprep.mubr.msk.bf16.mxu0 %vm2038_vm11, %v1976_v45 }
 0x181   : > { %v1730_v41 = vpop.permute.xlu1 %1729 }
 0x182   : > { %v1994_v35 = vsel %vm1962_vm10, %v1961_v37, %v1730_v41  ;;  %v1714_v19 = vpop.permute.xlu0 %1713 }
 0x183   : > { %v1978_v44 = vsel %vm1962_vm10, %v1945_v30, %v1714_v19  ;;  %2692 = vmatmul.mubr.msk.bf16.gmra.mrb[12].mxu1 %vm2038_vm11, %v1994_v35 }
 0x184   : > { %2676 = vmatmul.mubr.msk.bf16.gmra.mrb[12].mxu0 %vm2038_vm11, %v1978_v44 }
 0x19a   : > { %v2681_v28 = vpop.f32.mrb[0].mxu1 }
 0x19b   : > { %v2665_v47 = vpop.f32.mrb[0].mxu0  ;;  %v2182_v4 = vadd.f32 %v2681_v28, %v3974_v9  ;;  %v2173_v33 = vpop.f32.mrb[1].mxu1 }
 0x19c   : > { %v2118_v52 = vadd.f32 %v2665_v47, %v3974_v9  ;;  %v2109_v38 = vpop.f32.mrb[1].mxu0  ;;  %v2174_v57 = vadd.f32 %v3974_v9, %v2173_v33  ;;  %v2682_v34 = vpop.f32.mrb[2].mxu1 }
 0x19d   : > { %v2254_v3 = vmax.f32 %v2182_v4, 0.0  ;;  %v2110_v8 = vadd.f32 %v3974_v9, %v2109_v38  ;;  %v2666_v48 = vpop.f32.mrb[2].mxu0  ;;  %v2185_v61 = vadd.f32 %v2682_v34, %v3974_v9  ;;  %v2176_v15 = vpop.f32.mrb[3].mxu1 }
 0x19e   : > { %v2238_v0 = vmax.f32 %v2118_v52, 0.0  ;;  %v2252_v63 = vmax.f32 %v2174_v57, 0.0  ;;  %v2121_v16 = vadd.f32 %v2666_v48, %v3974_v9  ;;  %v2112_v23 = vpop.f32.mrb[3].mxu0  ;;  %v2177_v17 = vadd.f32 %v3974_v9, %v2176_v15 }
 0x19f   : > { %2286 = vst.msk [vmem:[%s3981_s20 + $0x90] sm:$0xff] %vm1731_vm3, %v2254_v3  ;;  %v2236_v54 = vmax.f32 %v2110_v8, 0.0  ;;  %v2255_v51 = vmax.f32 %v2185_v61, 0.0  ;;  %v2113_v50 = vadd.f32 %v3974_v9, %v2112_v23 }
 0x1a0   : > { %2270 = vst.msk [vmem:[%s3981_s20 + $0x10] sm:$0xff] %vm1731_vm3, %v2238_v0  ;;  %2284 = vst.msk [vmem:[%s3981_s20 + $0x80] sm:$0xff] %vm1731_vm3, %v2252_v63  ;;  %v2239_v20 = vmax.f32 %v2121_v16, 0.0  ;;  %v2253_v43 = vmax.f32 %v2177_v17, 0.0 }
 0x1a1   : > { %2268 = vst.msk [vmem:[%s3981_s20] sm:$0xff] %vm1731_vm3, %v2236_v54  ;;  %2287 = vst.msk [vmem:[%s3981_s20 + $0x98] sm:$0xff] %vm1731_vm3, %v2255_v51  ;;  %v2237_v60 = vmax.f32 %v2113_v50, 0.0 }
 0x1a2   : > { %2271 = vst.msk [vmem:[%s3981_s20 + $0x18] sm:$0xff] %vm1731_vm3, %v2239_v20  ;;  %2285 = vst.msk [vmem:[%s3981_s20 + $0x88] sm:$0xff] %vm1731_vm3, %v2253_v43 }
 0x1a3   : > { %2269 = vst.msk [vmem:[%s3981_s20 + $0x8] sm:$0xff] %vm1731_vm3, %v2237_v60 }
 0x1da   : > { %v2685_v12 = vpop.f32.mrb[4].mxu1 }
 0x1db   : > { %v2669_v1 = vpop.f32.mrb[4].mxu0  ;;  %v2198_v32 = vadd.f32 %v2685_v12, %v3974_v9  ;;  %v2189_v5 = vpop.f32.mrb[5].mxu1 }
 0x1dc   : > { %v2134_v59 = vadd.f32 %v2669_v1, %v3974_v9  ;;  %v2125_v62 = vpop.f32.mrb[5].mxu0  ;;  %v2190_v2 = vadd.f32 %v3974_v9, %v2189_v5  ;;  %v2686_v25 = vpop.f32.mrb[6].mxu1 }
 0x1dd   : > { %v2258_v42 = vmax.f32 %v2198_v32, 0.0  ;;  %v2126_v26 = vadd.f32 %v3974_v9, %v2125_v62  ;;  %v2670_v27 = vpop.f32.mrb[6].mxu0  ;;  %v2201_v49 = vadd.f32 %v2686_v25, %v3974_v9  ;;  %v2192_v7 = vpop.f32.mrb[7].mxu1 }
 0x1de   : > { %v2242_v58 = vmax.f32 %v2134_v59, 0.0  ;;  %v2256_v11 = vmax.f32 %v2190_v2, 0.0  ;;  %v2137_v6 = vadd.f32 %v2670_v27, %v3974_v9  ;;  %v2128_v22 = vpop.f32.mrb[7].mxu0  ;;  %v2193_v10 = vadd.f32 %v3974_v9, %v2192_v7 }
 0x1df   : > { %2290 = vst.msk [vmem:[%s3981_s20 + $0xb0] sm:$0xff] %vm1731_vm3, %v2258_v42  ;;  %v2240_v39 = vmax.f32 %v2126_v26, 0.0  ;;  %v2259_v56 = vmax.f32 %v2201_v49, 0.0  ;;  %v2129_v36 = vadd.f32 %v3974_v9, %v2128_v22 }
 0x1e0   : > { %2274 = vst.msk [vmem:[%s3981_s20 + $0x30] sm:$0xff] %vm1731_vm3, %v2242_v58  ;;  %2288 = vst.msk [vmem:[%s3981_s20 + $0xa0] sm:$0xff] %vm1731_vm3, %v2256_v11  ;;  %v2243_v21 = vmax.f32 %v2137_v6, 0.0  ;;  %v2257_v13 = vmax.f32 %v2193_v10, 0.0 }
 0x1e1   : > { %2272 = vst.msk [vmem:[%s3981_s20 + $0x20] sm:$0xff] %vm1731_vm3, %v2240_v39  ;;  %2291 = vst.msk [vmem:[%s3981_s20 + $0xb8] sm:$0xff] %vm1731_vm3, %v2259_v56  ;;  %v2241_v18 = vmax.f32 %v2129_v36, 0.0 }
 0x1e2   : > { %2275 = vst.msk [vmem:[%s3981_s20 + $0x38] sm:$0xff] %vm1731_vm3, %v2243_v21  ;;  %2289 = vst.msk [vmem:[%s3981_s20 + $0xa8] sm:$0xff] %vm1731_vm3, %v2257_v13 }
 0x1e3   : > { %2273 = vst.msk [vmem:[%s3981_s20 + $0x28] sm:$0xff] %vm1731_vm3, %v2241_v18 }
 0x21a   : > { %v2689_v40 = vpop.f32.mrb[8].mxu1 }
 0x21b   : > { %v2673_v53 = vpop.f32.mrb[8].mxu0  ;;  %v2214_v31 = vadd.f32 %v2689_v40, %v3974_v9  ;;  %v2205_v55 = vpop.f32.mrb[9].mxu1 }
 0x21c   : > { %v2150_v24 = vadd.f32 %v2673_v53, %v3974_v9  ;;  %v2141_v45 = vpop.f32.mrb[9].mxu0  ;;  %v2206_v46 = vadd.f32 %v3974_v9, %v2205_v55  ;;  %v2690_v29 = vpop.f32.mrb[10].mxu1 }
 0x21d   : > { %v2262_v14 = vmax.f32 %v2214_v31, 0.0  ;;  %v2142_v37 = vadd.f32 %v3974_v9, %v2141_v45  ;;  %v2674_v41 = vpop.f32.mrb[10].mxu0  ;;  %v2217_v30 = vadd.f32 %v2690_v29, %v3974_v9  ;;  %v2208_v35 = vpop.f32.mrb[11].mxu1 }
 0x21e   : > { %v2246_v19 = vmax.f32 %v2150_v24, 0.0  ;;  %v2260_v44 = vmax.f32 %v2206_v46, 0.0  ;;  %v2153_v28 = vadd.f32 %v2674_v41, %v3974_v9  ;;  %v2144_v47 = vpop.f32.mrb[11].mxu0  ;;  %v2209_v4 = vadd.f32 %v3974_v9, %v2208_v35 }
 0x21f   : > { %2294 = vst.msk [vmem:[%s3981_s20 + $0xd0] sm:$0xff] %vm1731_vm3, %v2262_v14  ;;  %v2244_v33 = vmax.f32 %v2142_v37, 0.0  ;;  %v2263_v52 = vmax.f32 %v2217_v30, 0.0  ;;  %v2145_v38 = vadd.f32 %v3974_v9, %v2144_v47 }
 0x220   : > { %2278 = vst.msk [vmem:[%s3981_s20 + $0x50] sm:$0xff] %vm1731_vm3, %v2246_v19  ;;  %2292 = vst.msk [vmem:[%s3981_s20 + $0xc0] sm:$0xff] %vm1731_vm3, %v2260_v44  ;;  %v2247_v57 = vmax.f32 %v2153_v28, 0.0  ;;  %v2261_v34 = vmax.f32 %v2209_v4, 0.0 }
 0x221   : > { %2276 = vst.msk [vmem:[%s3981_s20 + $0x40] sm:$0xff] %vm1731_vm3, %v2244_v33  ;;  %2295 = vst.msk [vmem:[%s3981_s20 + $0xd8] sm:$0xff] %vm1731_vm3, %v2263_v52  ;;  %v2245_v3 = vmax.f32 %v2145_v38, 0.0 }
 0x222   : > { %2279 = vst.msk [vmem:[%s3981_s20 + $0x58] sm:$0xff] %vm1731_vm3, %v2247_v57  ;;  %2293 = vst.msk [vmem:[%s3981_s20 + $0xc8] sm:$0xff] %vm1731_vm3, %v2261_v34 }
 0x223   : > { %2277 = vst.msk [vmem:[%s3981_s20 + $0x48] sm:$0xff] %vm1731_vm3, %v2245_v3 }
 0x256   : > { %v2693_v8 = vpop.f32.mrb[12].mxu1 }
 0x257   : > { %v2677_v48 = vpop.f32.mrb[12].mxu0  ;;  %v2230_v61 = vadd.f32 %v2693_v8, %v3974_v9  ;;  %v2221_v15 = vpop.f32.mrb[13].mxu1 }
 0x258   : > { %v2166_v0 = vadd.f32 %v2677_v48, %v3974_v9  ;;  %v2157_v63 = vpop.f32.mrb[13].mxu0  ;;  %v2222_v16 = vadd.f32 %v3974_v9, %v2221_v15  ;;  %v2694_v23 = vpop.f32.mrb[14].mxu1 }
 0x259   : > { %v2266_v17 = vmax.f32 %v2230_v61, 0.0  ;;  %v2158_v54 = vadd.f32 %v3974_v9, %v2157_v63  ;;  %v2678_v51 = vpop.f32.mrb[14].mxu0  ;;  %v2233_v50 = vadd.f32 %v2694_v23, %v3974_v9  ;;  %v2224_v20 = vpop.f32.mrb[15].mxu1 }
 0x25a   : > { %v2250_v43 = vmax.f32 %v2166_v0, 0.0  ;;  %v2264_v60 = vmax.f32 %v2222_v16, 0.0  ;;  %v2169_v12 = vadd.f32 %v2678_v51, %v3974_v9  ;;  %v2160_v1 = vpop.f32.mrb[15].mxu0  ;;  %v2225_v32 = vadd.f32 %v3974_v9, %v2224_v20 }
 0x25b   : > { %2298 = vst.msk [vmem:[%s3981_s20 + $0xf0] sm:$0xff] %vm1731_vm3, %v2266_v17  ;;  %v2248_v5 = vmax.f32 %v2158_v54, 0.0  ;;  %v2267_v59 = vmax.f32 %v2233_v50, 0.0  ;;  %v2161_v62 = vadd.f32 %v3974_v9, %v2160_v1 }
 0x25c   : > { %2282 = vst.msk [vmem:[%s3981_s20 + $0x70] sm:$0xff] %vm1731_vm3, %v2250_v43  ;;  %2296 = vst.msk [vmem:[%s3981_s20 + $0xe0] sm:$0xff] %vm1731_vm3, %v2264_v60  ;;  %v2251_v2 = vmax.f32 %v2169_v12, 0.0  ;;  %v2265_v25 = vmax.f32 %v2225_v32, 0.0 }
 0x25d   : > { %2280 = vst.msk [vmem:[%s3981_s20 + $0x60] sm:$0xff] %vm1731_vm3, %v2248_v5  ;;  %2299 = vst.msk [vmem:[%s3981_s20 + $0xf8] sm:$0xff] %vm1731_vm3, %v2267_v59  ;;  %v2249_v42 = vmax.f32 %v2161_v62, 0.0 }
 0x25e   : > { %2283 = vst.msk [vmem:[%s3981_s20 + $0x78] sm:$0xff] %vm1731_vm3, %v2251_v2  ;;  %2297 = vst.msk [vmem:[%s3981_s20 + $0xe8] sm:$0xff] %vm1731_vm3, %v2265_v25 }
 0x25f   : > { %2281 = vst.msk [vmem:[%s3981_s20 + $0x68] sm:$0xff] %vm1731_vm3, %v2249_v42 }
 0x260 PF: > { %s13_s14 = sadd.s32 1, %s2875_s14   ;;  %s4091_s12 = smov %s2871_s13 }
 0x261   : > { %p10_p5 = scmp.ge.s32.totalorder %s13_s14, 4   ;;  %s4092_s13 = smov %s4094_s15 }
 0x263   :  { %12 = sbr.rel (!%p10_p5) target bundleno = 2 (0x2), region = 70 }

// kernel: up_conv_forward.2
= control target key start
LH: loop header
LB: loop body
LE: loop exit
PB: predicated region body
PF: predicated region fallthrough
CT: control target
= control target key end

     0   :  { %s3327_s12 = smov 0   ;;  %s3329_s13 = smov 0   ;;  %s4625_s0 = inlined_call_operand.vmem [shape: bf16[2,18,18,4], index: 0, kind: input, shape index: {}]   ;;  %s4626_s1 = inlined_call_operand.vmem [shape: bf16[36,8], index: 1, kind: input, shape index: {}]   ;;  %s4627_s2 = inlined_call_operand.vmem [shape: f32[1,8], index: 2, kind: input, shape index: {}]   ;;  %s4628_s3 = inlined_call_operand.vmem [shape: bf16[2,18,18,8], index: 3, kind: output, shape index: {}]  }
   0x1   :  { %s3331_s14 = smov 0  }
   0x2 LB: > { %s25_s15 = sadd.s32 1, %s3292_s13  ;;  %p2797_p0 = scmp.ge.s32.totalorder %s3296_s14, 1  ;;  %s3296_s14 = sphi %s3331_s14, %s13_s14   ;;  %s3292_s13 = sphi %s3329_s13, %s4632_s13   ;;  %s3288_s12 = sphi %s3327_s12, %s4631_s12  }
   0x3   : > { %p27_p1 = scmp.ge.s32.totalorder %s25_s15, 2  ;;  %p168_p2 = scmp.lt.s32.totalorder %s3296_s14, 3 }
   0x5   : > { %s4634_s15 = smov (%p27_p1, %s25_s15), 0  ;;  %p169_p3 = pnand %p2797_p0, %p168_p2 }
   0x6   : > { %p202_p4 = scmp.lt.s32.totalorder (!%p169_p3), %s3288_s12, 1  ;;  %vm722_vm0 = vcmask (!%p169_p3), 1046528   ;;  %s3298_s20 = smov (!%p169_p3), 12   ;;  %vm497_vm1 = vsmask.f32 (!%p169_p3), 7424  ;;  %vm2055_vm2 = vcmask (!%p169_p3), 1041408  }
   0x7   : > { %172 = sbr.rel (%p169_p3) target bundleno = 622 (0x26e), region = 32  ;;  %s3299_s21 = smov (!%p169_p3), 8   ;;  %vm1731_vm3 = vcmask (!%p169_p3), 31744   ;;  %vm1764_vm4 = vcmask (!%p169_p3), 64512   ;;  %vm1797_vm5 = vcmask (!%p169_p3), 97280   ;;  %vm1830_vm6 = vcmask (!%p169_p3), 130048  }
   0x8   : > { %s3300_s22 = smov (!%p169_p3), 4   ;;  %s3301_s23 = smov (!%p169_p3), 16   ;;  %vm1863_vm7 = vcmask (!%p169_p3), 162816   ;;  %vm1896_vm8 = vcmask (!%p169_p3), 195584   ;;  %vm1929_vm9 = vcmask (!%p169_p3), 228352   ;;  %vm1962_vm10 = vcmask (!%p169_p3), 261120  }
   0x9   : > { %s3302_s24 = smov (!%p169_p3), 20   ;;  %s3303_s25 = smov (!%p169_p3), 24   ;;  %vm2022_vm11 = vcmask (!%p169_p3), 293888   ;;  %vm2630_vm12 = vcmask (!%p169_p3), 60416   ;;  %vm2633_vm13 = vcmask (!%p169_p3), 57344   ;;  %vm2412_vm14 = vcmask (!%p169_p3), 1040384  }
   0xa   : > { %s3304_s26 = smov (!%p169_p3), 28   ;;  %s3305_s27 = smov (!%p169_p3), 32   ;;  %vm2413_vm15 = vsmask.f32 (!%p169_p3), 256 }
   0xe   : > { %s4636_s12 = smov (!%p202_p4, %s3288_s12), 1 }
   0xf   : > { %s3129_s16 = smul.u32 216, %s4636_s12 }
  0x11   : > { %s3353_s19 = scalar_lea.vmem %s4625_s0, %s3129_s16  ;;  %s4316_s9 = scalar_lea.vmem %s4628_s3, %s3129_s16 }
  0x12   : > { %v3356_v0 = vld [vmem:[%s3353_s19 + $0x6c] sm:$0xff]   ;;  %v3366_v2 = vld [vmem:[%s3353_s19 + $0x60] sm:$0xff]   ;;  %v3166_v3 = vld [vmem:[%s3353_s19 + $0x68] ss:$0 sps:$4 sm:$0x11]  }
  0x13   : > { %v3359_v1 = vld [vmem:[%s3353_s19 + $0xc] sm:$0xff]   ;;  %899 = vrot.lane.b32.xlu1 %v3356_v0, %s3298_s20  ;;  %v3167_v4 = vld [vmem:[%s3353_s19] sm:$0xff]   ;;  %v1060_v5 = vshrl.u32 %v3356_v0, 16  ;;  %v747_v6 = vrot.slane %v3366_v2, 1  ;;  %v748_v7 = vrot.slane %v3166_v3, 1  ;;  %v3385_v36 = vld [vmem:[%s3353_s19 + $0x78] sm:$0xff]  }
  0x14   : > { %883 = vrot.lane.b32.xlu0 %v3359_v1, %s3298_s20  ;;  %v3168_v8 = vld [vmem:[%s3353_s19 + $0x8] ss:$0 sps:$4 sm:$0x11]   ;;  %v3169_v9 = vld [vmem:[%s3353_s19 + $0x6c] sm:$0xff]   ;;  %v723_v10 = vrot.slane %v3167_v4, 1  ;;  %v499_v22 = vshrl.u32 %v3167_v4, 16 }
  0x15   : > { %v3171_v11 = vld [vmem:[%s3353_s19 + $0xc] sm:$0xff]   ;;  %v749_v12 = vsel %vm722_vm0, %v747_v6, %v748_v7  ;;  %v724_v13 = vrot.slane %v3168_v8, 1  ;;  %v3170_v14 = vld [vmem:[%s3353_s19 + $0x74] ss:$0 sps:$4 sm:$0x11]   ;;  %v750_v15 = vrot.slane %v3169_v9, 1 }
  0x16   : > { %v726_v16 = vrot.slane %v3171_v11, 1  ;;  %v751_v18 = vrot.slane %v3170_v14, 1  ;;  %v3172_v19 = vld [vmem:[%s3353_s19 + $0x14] ss:$0 sps:$4 sm:$0x11]   ;;  %v511_v20 = vshrl.u32 %v3171_v11, 16 }
  0x17   : > { %787 = vrot.lane.b32.xlu1 %v749_v12, %s3299_s21  ;;  %v725_v17 = vsel %vm722_vm0, %v723_v10, %v724_v13  ;;  %v513_v21 = vshll.u32 %v3171_v11, 16  ;;  %v501_v23 = vshll.u32 %v3167_v4, 16  ;;  %v727_v25 = vrot.slane %v3172_v19, 1  ;;  %v3175_v44 = vld [vmem:[%s3353_s19 + $0x74] ss:$0 sps:$4 sm:$0x11]  }
  0x18   : > { %771 = vrot.lane.b32.xlu0 %v725_v17, %s3299_s21  ;;  %v752_v24 = vsel %vm722_vm0, %v750_v15, %v751_v18  ;;  %v518_v26 = vshll.u32 %v3172_v19, 16  ;;  %v506_v27 = vshll.u32 %v3168_v8, 16  ;;  %v607_v30 = vshrl.u32 %v3169_v9, 16  ;;  %v3176_v49 = vld [vmem:[%s3353_s19 + $0x14] ss:$0 sps:$4 sm:$0x11]  }
  0x19   : > { %v515_v28 = vrot.slane %v513_v21, 1  ;;  %v503_v29 = vrot.slane %v501_v23, 1  ;;  %v609_v31 = vshll.u32 %v3169_v9, 16  ;;  %v728_v32 = vsel %vm722_vm0, %v726_v16, %v727_v25  ;;  %v3397_v52 = vld [vmem:[%s3353_s19 + $0x18] sm:$0xff]  }
  0x1a   : > { %v520_v33 = vrot.slane %v518_v26, 1  ;;  %v508_v34 = vrot.slane %v506_v27, 1  ;;  %v614_v35 = vshll.u32 %v3170_v14, 16  ;;  %v595_v40 = vshrl.u32 %v3366_v2, 16  ;;  %v3427_v26 = vld [vmem:[%s3353_s19 + $0x78] sm:$0xff]  }
  0x1b   : > { %789 = vrot.lane.b32.xlu1 %v752_v24, %s3299_s21  ;;  %v516_v37 = vor.u32 %v515_v28, %v511_v20  ;;  %v504_v38 = vor.u32 %v503_v29, %v499_v22  ;;  %v611_v39 = vrot.slane %v609_v31, 1  ;;  %v597_v42 = vshll.u32 %v3366_v2, 16  ;;  %v3177_v58 = vld [vmem:[%s3353_s19 + $0x80] ss:$0 sps:$4 sm:$0x11]  }
  0x1c   : > { %773 = vrot.lane.b32.xlu0 %v728_v32, %s3299_s21  ;;  %v616_v41 = vrot.slane %v614_v35, 1  ;;  %v602_v43 = vshll.u32 %v3166_v3, 16  ;;  %v1062_v48 = vshll.u32 %v3356_v0, 16  ;;  %v1067_v53 = vshll.u32 %v3175_v44, 16  ;;  %v3447_v35 = vld [vmem:[%s3353_s19 + $0x24] sm:$0xff]  }
  0x1d   : > { %v521_v45 = vsel %vm497_vm1, %v516_v37, %v520_v33  ;;  %v509_v46 = vsel %vm497_vm1, %v504_v38, %v508_v34  ;;  %v612_v47 = vor.u32 %v611_v39, %v607_v30  ;;  %v599_v50 = vrot.slane %v597_v42, 1  ;;  %v3178_v62 = vld [vmem:[%s3353_s19 + $0x20] ss:$0 sps:$4 sm:$0x11]   ;;  %v3442_v33 = vld [vmem:[%s3353_s19 + $0x84] sm:$0xff]  }
  0x1e   : > { %v604_v51 = vrot.slane %v602_v43, 1  ;;  %v1064_v55 = vrot.slane %v1062_v48, 1  ;;  %v966_v56 = vshll.u32 %v3359_v1, 16  ;;  %v971_v57 = vshll.u32 %v3176_v49, 16 }
  0x1f   : > { %692 = vrot.lane.b32.xlu1 %v521_v45, %s3300_s22  ;;  %v617_v54 = vsel %vm497_vm1, %v612_v47, %v616_v41  ;;  %v600_v59 = vor.u32 %v599_v50, %v595_v40  ;;  %v964_v60 = vshrl.u32 %v3359_v1, 16  ;;  %v1074_v61 = vshll.u32 %v3385_v36, 16  ;;  %v3439_v32 = vld [vmem:[%s3353_s19 + $0x80] ss:$0 sps:$4 sm:$0x11]   ;;  %v3471_v50 = vld [vmem:[%s3353_s19 + $0x78] sm:$0xff]  }
  0x20   : > { %690 = vrot.lane.b32.xlu0 %v509_v46, %s3300_s22  ;;  %v1069_v63 = vrot.slane %v1067_v53, 1  ;;  %v968_v2 = vrot.slane %v966_v56, 1  ;;  %v973_v4 = vrot.slane %v971_v57, 1  ;;  %v1072_v6 = vshrl.u32 %v3385_v36, 16 }
  0x21   : > { %v605_v3 = vsel %vm497_vm1, %v600_v59, %v604_v51  ;;  %v978_v7 = vshll.u32 %v3397_v52, 16  ;;  %v1065_v8 = vor.u32 %v1064_v55, %v1060_v5  ;;  %v1076_v9 = vrot.slane %v1074_v61, 1  ;;  %v3478_v55 = vld [vmem:[%s3353_s19 + $0x18] sm:$0xff]  }
  0x22   : > { %v1079_v10 = vshll.u32 %v3177_v58, 16  ;;  %v969_v11 = vor.u32 %v968_v2, %v964_v60  ;;  %v976_v12 = vshrl.u32 %v3397_v52, 16  ;;  %v983_v14 = vshll.u32 %v3178_v62, 16 }
  0x23   : > { %708 = vrot.lane.b32.xlu1 %v617_v54, %s3300_s22  ;;  %v980_v13 = vrot.slane %v978_v7, 1  ;;  %v1070_v15 = vsel %vm497_vm1, %v1065_v8, %v1069_v63  ;;  %v1077_v16 = vor.u32 %v1076_v9, %v1072_v6  ;;  %v1211_v21 = vrot.slane %v3356_v0, 1  ;;  %v3488_v63 = vld [vmem:[%s3353_s19 + $0x20] ss:$0 sps:$4 sm:$0x11]  }
  0x24   : > { %706 = vrot.lane.b32.xlu0 %v605_v3, %s3300_s22  ;;  %v1081_v17 = vrot.slane %v1079_v10, 1  ;;  %v974_v5 = vsel %vm497_vm1, %v969_v11, %v973_v4  ;;  %v985_v19 = vrot.slane %v983_v14, 1  ;;  %v1212_v22 = vrot.slane %v3175_v44, 1  ;;  %v3461_v44 = vld [vmem:[%s3353_s19 + $0x8c] ss:$0 sps:$4 sm:$0x11]  }
  0x25   : > { %v981_v18 = vor.u32 %v980_v13, %v976_v12  ;;  %v1187_v24 = vrot.slane %v3359_v1, 1  ;;  %v1188_v25 = vrot.slane %v3176_v49, 1  ;;  %v1214_v28 = vrot.slane %v3385_v36, 1  ;;  %v3436_v1 = vld [vmem:[%s3353_s19 + $0x18] sm:$0xff]  }
  0x26   : > { %v1082_v20 = vsel %vm497_vm1, %v1077_v16, %v1081_v17  ;;  %v1213_v27 = vsel %vm722_vm0, %v1211_v21, %v1212_v22  ;;  %v1215_v0 = vrot.slane %v3177_v58, 1  ;;  %v1190_v30 = vrot.slane %v3397_v52, 1  ;;  %v3468_v49 = vld [vmem:[%s3353_s19 + $0x2c] ss:$0 sps:$4 sm:$0x11]  }
  0x27   : > { %901 = vrot.lane.b32.xlu1 %v3385_v36, %s3298_s20  ;;  %v986_v23 = vsel %vm497_vm1, %v981_v18, %v985_v19  ;;  %v1189_v29 = vsel %vm722_vm0, %v1187_v24, %v1188_v25  ;;  %v1191_v31 = vrot.slane %v3178_v62, 1  ;;  %v1526_v34 = vshll.u32 %v3427_v26, 16  ;;  %v3450_v36 = vld [vmem:[%s3353_s19 + $0x20] ss:$0 sps:$4 sm:$0x11]   ;;  %v3508_v18 = vld [vmem:[%s3353_s19 + $0x84] sm:$0xff]  }
  0x28   : > { %885 = vrot.lane.b32.xlu0 %v3397_v52, %s3298_s20  ;;  %v1216_v37 = vsel %vm722_vm0, %v1214_v28, %v1215_v0  ;;  %v1430_v39 = vshll.u32 %v3436_v1, 16  ;;  %v1524_v40 = vshrl.u32 %v3427_v26, 16  ;;  %v1531_v42 = vshll.u32 %v3439_v32, 16  ;;  %v3485_v62 = vld [vmem:[%s3353_s19 + $0x80] ss:$0 sps:$4 sm:$0x11]  }
  0x29   : > { %v1192_v38 = vsel %vm722_vm0, %v1190_v30, %v1191_v31  ;;  %v1528_v41 = vrot.slane %v1526_v34, 1  ;;  %v1435_v43 = vshll.u32 %v3450_v36, 16  ;;  %v1538_v45 = vshll.u32 %v3442_v33, 16  ;;  %v3192_v28 = vld [vmem:[%s3353_s19 + $0x8c] ss:$0 sps:$4 sm:$0x11]  }
  0x2a   : > { %v1442_v46 = vshll.u32 %v3447_v35, 16  ;;  %v1428_v47 = vshrl.u32 %v3436_v1, 16  ;;  %v1432_v48 = vrot.slane %v1430_v39, 1  ;;  %v1533_v52 = vrot.slane %v1531_v42, 1 }
  0x2b   : > { %1171 = vrot.lane.b32.xlu1 %v1070_v15, %s3301_s23  ;;  %v1529_v51 = vor.u32 %v1528_v41, %v1524_v40  ;;  %v1536_v53 = vshrl.u32 %v3442_v33, 16  ;;  %v1440_v54 = vshrl.u32 %v3447_v35, 16  ;;  %v1437_v56 = vrot.slane %v1435_v43, 1  ;;  %v3194_v31 = vld [vmem:[%s3353_s19 + $0x2c] ss:$0 sps:$4 sm:$0x11]  }
  0x2c   : > { %1155 = vrot.lane.b32.xlu0 %v974_v5, %s3301_s23  ;;  %v1540_v57 = vrot.slane %v1538_v45, 1  ;;  %v1543_v58 = vshll.u32 %v3461_v44, 16  ;;  %v1444_v59 = vrot.slane %v1442_v46, 1  ;;  %v1433_v60 = vor.u32 %v1432_v48, %v1428_v47 }
  0x2d   : > { %v1447_v61 = vshll.u32 %v3468_v49, 16  ;;  %v1534_v2 = vsel %vm497_vm1, %v1529_v51, %v1533_v52  ;;  %v621_v6 = vshll.u32 %v3471_v50, 16  ;;  %v525_v10 = vshll.u32 %v3478_v55, 16 }
  0x2e   : > { %v1541_v3 = vor.u32 %v1540_v57, %v1536_v53  ;;  %v1545_v4 = vrot.slane %v1543_v58, 1  ;;  %v1438_v7 = vsel %vm497_vm1, %v1433_v60, %v1437_v56  ;;  %v1445_v8 = vor.u32 %v1444_v59, %v1440_v54  ;;  %v3547_v58 = vld [vmem:[%s3353_s19 + $0x84] sm:$0xff]  }
  0x2f   : > { %1173 = vrot.lane.b32.xlu1 %v1082_v20, %s3301_s23  ;;  %v1449_v9 = vrot.slane %v1447_v61, 1  ;;  %v1675_v11 = vrot.slane %v3427_v26, 1  ;;  %v1676_v12 = vrot.slane %v3439_v32, 1  ;;  %v626_v13 = vshll.u32 %v3485_v62, 16 }
  0x30   : > { %1157 = vrot.lane.b32.xlu0 %v986_v23, %s3301_s23  ;;  %v530_v14 = vshll.u32 %v3488_v63, 16  ;;  %v1546_v15 = vsel %vm497_vm1, %v1541_v3, %v1545_v4  ;;  %v1651_v16 = vrot.slane %v3436_v1, 1  ;;  %v619_v17 = vshrl.u32 %v3471_v50, 16  ;;  %v3514_v23 = vld [vmem:[%s3353_s19 + $0x24] sm:$0xff]   ;;  %v3564_v4 = vld [vmem:[%s3353_s19 + $0x90] sm:$0xff]  }
  0x31   : > { %v623_v5 = vrot.slane %v621_v6, 1  ;;  %v1450_v19 = vsel %vm497_vm1, %v1445_v8, %v1449_v9  ;;  %v1652_v20 = vrot.slane %v3450_v36, 1  ;;  %v523_v21 = vshrl.u32 %v3478_v55, 16 }
  0x32   : > { %v527_v22 = vrot.slane %v525_v10, 1  ;;  %v628_v24 = vrot.slane %v626_v13, 1  ;;  %v532_v25 = vrot.slane %v530_v14, 1  ;;  %v633_v0 = vshll.u32 %v3508_v18, 16  ;;  %v3574_v10 = vld [vmem:[%s3353_s19 + $0x30] sm:$0xff]  }
  0x33   : > { %1251 = vrot.lane.b32.xlu1 %v1213_v27, %s3302_s24  ;;  %v624_v27 = vor.u32 %v623_v5, %v619_v17  ;;  %v1678_v32 = vrot.slane %v3442_v33, 1  ;;  %v1679_v34 = vrot.slane %v3461_v44, 1  ;;  %v1654_v36 = vrot.slane %v3447_v35, 1 }
  0x34   : > { %1235 = vrot.lane.b32.xlu0 %v1189_v29, %s3302_s24  ;;  %v1653_v29 = vsel %vm722_vm0, %v1651_v16, %v1652_v20  ;;  %v528_v30 = vor.u32 %v527_v22, %v523_v21  ;;  %v631_v39 = vshrl.u32 %v3508_v18, 16  ;;  %v635_v40 = vrot.slane %v633_v0, 1  ;;  %v3584_v16 = vld [vmem:[%s3353_s19 + $0x98] ss:$0 sps:$4 sm:$0x11]  }
  0x35   : > { %v638_v41 = vshll.u32 %v3192_v28, 16  ;;  %v535_v43 = vshrl.u32 %v3514_v23, 16  ;;  %v753_v52 = vrot.slane %v3471_v50, 1  ;;  %v754_v53 = vrot.slane %v3485_v62, 1  ;;  %v3555_v62 = vld [vmem:[%s3353_s19 + $0x24] sm:$0xff]  }
  0x36   : > { %v533_v42 = vsel %vm497_vm1, %v528_v30, %v532_v25  ;;  %v636_v44 = vor.u32 %v635_v40, %v631_v39  ;;  %v729_v56 = vrot.slane %v3478_v55, 1  ;;  %v730_v57 = vrot.slane %v3488_v63, 1  ;;  %v3230_v30 = vld [vmem:[%s4626_s1 + $0x8] sm:$0xff]  }
  0x37   : > { %1253 = vrot.lane.b32.xlu1 %v1216_v37, %s3302_s24  ;;  %v1655_v37 = vrot.slane %v3468_v49, 1  ;;  %v640_v46 = vrot.slane %v638_v41, 1  ;;  %v755_v59 = vsel %vm722_vm0, %v753_v52, %v754_v53  ;;  %v756_v50 = vrot.slane %v3508_v18, 1 }
  0x38   : > { %1237 = vrot.lane.b32.xlu0 %v1192_v38, %s3302_s24  ;;  %v629_v38 = vsel %vm497_vm1, %v624_v27, %v628_v24  ;;  %v757_v60 = vrot.slane %v3192_v28, 1  ;;  %v732_v61 = vrot.slane %v3514_v23, 1  ;;  %v731_v55 = vsel %vm722_vm0, %v729_v56, %v730_v57  ;;  %v3643_v57 = vld [vmem:[%s3353_s19 + $0x9c] sm:$0xff]  }
  0x39   : > { %v1656_v47 = vsel %vm722_vm0, %v1654_v36, %v1655_v37  ;;  %v641_v51 = vsel %vm497_vm1, %v636_v44, %v640_v46  ;;  %v733_v63 = vrot.slane %v3194_v31, 1  ;;  %v1086_v3 = vshll.u32 %v3547_v58, 16 }
  0x3a   : > { %v758_v6 = vsel %vm722_vm0, %v756_v50, %v757_v60  ;;  %v990_v8 = vshll.u32 %v3555_v62, 16  ;;  %v988_v14 = vshrl.u32 %v3555_v62, 16  ;;  %v1098_v17 = vshll.u32 %v3564_v4, 16  ;;  %v3650_v50 = vld [vmem:[%s3353_s19 + $0x3c] sm:$0xff]  }
  0x3b   : > { %1363 = vrot.lane.b32.xlu1 %v3427_v26, %s3303_s25  ;;  %v1677_v26 = vsel %vm722_vm0, %v1675_v11, %v1676_v12  ;;  %v734_v9 = vsel %vm722_vm0, %v732_v61, %v733_v63  ;;  %v1084_v11 = vshrl.u32 %v3547_v58, 16  ;;  %v1088_v12 = vrot.slane %v1086_v3, 1  ;;  %v3657_v63 = vld [vmem:[%s3353_s19 + $0xa4] ss:$0 sps:$4 sm:$0x11]  }
  0x3c   : > { %1347 = vrot.lane.b32.xlu0 %v3436_v1, %s3303_s25  ;;  %v537_v1 = vshll.u32 %v3514_v23, 16  ;;  %v992_v5 = vrot.slane %v990_v8, 1  ;;  %v1002_v20 = vshll.u32 %v3574_v10, 16  ;;  %v1096_v21 = vshrl.u32 %v3564_v4, 16 }
  0x3d   : > { %v1000_v22 = vshrl.u32 %v3574_v10, 16  ;;  %v1089_v23 = vor.u32 %v1088_v12, %v1084_v11  ;;  %v1100_v25 = vrot.slane %v1098_v17, 1  ;;  %v1217_v39 = vrot.slane %v3547_v58, 1  ;;  %v3670_v11 = vld [vmem:[%s3353_s19 + $0x90] sm:$0xff]  }
  0x3e   : > { %v539_v45 = vrot.slane %v537_v1, 1  ;;  %v993_v27 = vor.u32 %v992_v5, %v988_v14  ;;  %v1004_v0 = vrot.slane %v1002_v20, 1  ;;  %v1220_v44 = vrot.slane %v3564_v4, 1  ;;  %v3682_v20 = vld [vmem:[%s3353_s19 + $0x98] ss:$0 sps:$4 sm:$0x11]  }
  0x3f   : > { %1365 = vrot.lane.b32.xlu1 %v3442_v33, %s3303_s25  ;;  %v542_v33 = vshll.u32 %v3194_v31, 16  ;;  %v1101_v1 = vor.u32 %v1100_v25, %v1096_v21  ;;  %v1221_v46 = vrot.slane %v3584_v16, 1  ;;  %v1466_v8 = vshll.u32 %v3650_v50, 16 }
  0x40   : > { %1349 = vrot.lane.b32.xlu0 %v3447_v35, %s3303_s25  ;;  %v1680_v35 = vsel %vm722_vm0, %v1678_v32, %v1679_v34  ;;  %v540_v48 = vor.u32 %v539_v45, %v535_v43  ;;  %v1005_v36 = vor.u32 %v1004_v0, %v1000_v22  ;;  %v3619_v45 = vld [vmem:[%s3353_s19 + $0x90] sm:$0xff]   ;;  %v1560_v12 = vshrl.u32 %v3643_v57, 16 }
  0x41   : > { %v544_v49 = vrot.slane %v542_v33, 1  ;;  %v3233_v33 = vld [vmem:[%s4626_s1 + $0x10] ss:$0 sps:$4 sm:$0x33]   ;;  %v1550_v53 = vshll.u32 %v3619_v45, 16  ;;  %v1222_v56 = vsel %vm722_vm0, %v1220_v44, %v1221_v46  ;;  %v1548_v61 = vshrl.u32 %v3619_v45, 16 }
  0x42   : > { %v2057_v52 = vsel %vm2055_vm2, %v3233_v33, 0  ;;  %v1567_v14 = vshll.u32 %v3657_v63, 16  ;;  %v1464_v5 = vshrl.u32 %v3650_v50, 16  ;;  %v645_v25 = vshll.u32 %v3670_v11, 16 }
  0x43   : > { %1635 = vrot.lane.b32.xlu1 %v1534_v2, %s3304_s26  ;;  %v545_v54 = vsel %vm497_vm1, %v540_v48, %v544_v49  ;;  %v3559_v2 = vld [vmem:[%s3353_s19 + $0x8c] ss:$0 sps:$4 sm:$0x11]   ;;  %v1196_v48 = vrot.slane %v3574_v10, 1 }
  0x44   : > { %1619 = vrot.lane.b32.xlu0 %v1438_v7, %s3304_s26  ;;  %v3569_v7 = vld [vmem:[%s3353_s19 + $0x2c] ss:$0 sps:$4 sm:$0x11]   ;;  %v1091_v13 = vshll.u32 %v3559_v2, 16  ;;  %v1218_v40 = vrot.slane %v3559_v2, 1 }
  0x45   : > { %v995_v18 = vshll.u32 %v3569_v7, 16  ;;  %v1194_v43 = vrot.slane %v3569_v7, 1  ;;  %v3719_v44 = vld [vmem:[%s3353_s19 + $0xa4] ss:$0 sps:$4 sm:$0x11]  }
  0x46   : > { %v1093_v24 = vrot.slane %v1091_v13, 1 }
  0x47   : > { %1637 = vrot.lane.b32.xlu1 %v1546_v15, %s3304_s26  ;;  %v3227_v15 = vld [vmem:[%s4626_s1] sm:$0xff]   ;;  %v997_v28 = vrot.slane %v995_v18, 1  ;;  %v1468_v18 = vrot.slane %v1466_v8, 1 }
  0x48   : > { %1621 = vrot.lane.b32.xlu0 %v1450_v19, %s3304_s26  ;;  %3083 = vmatprep.subr.bf16.mxu0 %v3227_v15  ;;  %v3590_v19 = vld [vmem:[%s3353_s19 + $0x38] ss:$0 sps:$4 sm:$0x11]   ;;  %v1094_v31 = vsel %vm497_vm1, %v1089_v23, %v1093_v24  ;;  %v1569_v23 = vrot.slane %v1567_v14, 1 }
  0x49   : > { %3121 = vmatprep.subr.bf16.mxu1 %v3227_v15  ;;  %3084 = vmatpush3.bf16.msra.mxu0 %v3227_v15  ;;  %v998_v34 = vsel %vm497_vm1, %v993_v27, %v997_v28  ;;  %v1197_v49 = vrot.slane %v3590_v19, 1  ;;  %v1469_v27 = vor.u32 %v1468_v18, %v1464_v5  ;;  %v3692_v28 = vld [vmem:[%s3353_s19 + $0x38] ss:$0 sps:$4 sm:$0x11]   ;;  %v759_v18 = vrot.slane %v3670_v11, 1 }
  0x4a   : > { %3124 = vmatpush3.bf16.msra.mxu1 %v3227_v15  ;;  %3085 = vmatprep.subr.bf16.mxu0 %v3230_v30 }
  0x4b   : > { %1715 = vrot.lane.b32.xlu1 %v1677_v26, %s3305_s27  ;;  %v1103_v26 = vshll.u32 %v3584_v16, 16  ;;  %3122 = vmatprep.subr.bf16.mxu1 %v3230_v30 }
  0x4c   : > { %1699 = vrot.lane.b32.xlu0 %v1653_v29, %s3305_s27  ;;  %v1007_v29 = vshll.u32 %v3590_v19, 16  ;;  %v3679_v19 = vld [vmem:[%s3353_s19 + $0x30] sm:$0xff]  }
  0x4d   : > { %v1105_v32 = vrot.slane %v1103_v26, 1  ;;  %3086 = vmatpush3.bf16.msra.mxu0 %v3230_v30  ;;  %v549_v0 = vshll.u32 %v3679_v19, 16 }
  0x4e   : > { %v1009_v37 = vrot.slane %v1007_v29, 1  ;;  %3125 = vmatpush3.bf16.msra.mxu1 %v3230_v30  ;;  %3127 = vmatprep.subr.msk.bf16.mxu0 %vm2055_vm2, %v3233_v33  ;;  %v1681_v30 = vrot.slane %v3619_v45, 1 }
  0x4f   : > { %710 = vrot.lane.b32.xlu1 %v629_v38, %s3300_s22  ;;  %v1106_v38 = vsel %vm497_vm1, %v1101_v1, %v1105_v32  ;;  %3128 = vmatprep.subr.msk.bf16.mxu1 %vm2055_vm2, %v3233_v33  ;;  %v3700_v1 = vld [vmem:[%s3353_s19 + $0x9c] sm:$0xff]   ;;  %v554_v33 = vshll.u32 %v3692_v28, 16 }
  0x50   : > { %694 = vrot.lane.b32.xlu0 %v533_v42, %s3300_s22  ;;  %v1010_v41 = vsel %vm497_vm1, %v1005_v36, %v1009_v37  ;;  %v1193_v42 = vrot.slane %v3555_v62, 1  ;;  %v643_v36 = vshrl.u32 %v3670_v11, 16  ;;  %v650_v37 = vshll.u32 %v3682_v20, 16 }
  0x51   : > { %3088 = vmatpush3.bf16.msra.mxu0 %v2057_v52 }
  0x52   : > { %3126 = vmatpush3.bf16.msra.mxu1 %v2057_v52 }
  0x53   : > { %1717 = vrot.lane.b32.xlu1 %v1680_v35, %s3305_s27  ;;  %v1219_v35 = vsel %vm722_vm0, %v1217_v39, %v1218_v40 }
  0x54   : > { %1701 = vrot.lane.b32.xlu0 %v1656_v47, %s3305_s27  ;;  %v1195_v47 = vsel %vm722_vm0, %v1193_v42, %v1194_v43  ;;  %v547_v42 = vshrl.u32 %v3679_v19, 16 }
  0x57   : > { %712 = vrot.lane.b32.xlu1 %v641_v51, %s3300_s22  ;;  %v3633_v51 = vld [vmem:[%s3353_s19 + $0x30] sm:$0xff]  }
  0x58   : > { %696 = vrot.lane.b32.xlu0 %v545_v54, %s3300_s22  ;;  %v3638_v54 = vld [vmem:[%s3353_s19 + $0x98] ss:$0 sps:$4 sm:$0x11]   ;;  %v1454_v60 = vshll.u32 %v3633_v51, 16  ;;  %v1452_v2 = vshrl.u32 %v3633_v51, 16  ;;  %v1657_v32 = vrot.slane %v3633_v51, 1 }
  0x5a   : > { %v1456_v7 = vrot.slane %v1454_v60, 1  ;;  %v1685_v60 = vrot.slane %v3657_v63, 1 }
  0x5b   : > { %791 = vrot.lane.b32.xlu1 %v755_v59, %s3299_s21  ;;  %v1198_v59 = vsel %vm722_vm0, %v1196_v48, %v1197_v49  ;;  %v657_v49 = vshll.u32 %v3700_v1, 16 }
  0x5c   : > { %775 = vrot.lane.b32.xlu0 %v731_v55, %s3299_s21  ;;  %v1555_v55 = vshll.u32 %v3638_v54, 16  ;;  %v1457_v16 = vor.u32 %v1456_v7, %v1452_v2 }
  0x5f   : > { %793 = vrot.lane.b32.xlu1 %v758_v6, %s3299_s21  ;;  %v3664_v6 = vld [vmem:[%s3353_s19 + $0x44] ss:$0 sps:$4 sm:$0x11]  }
  0x60   : > { %777 = vrot.lane.b32.xlu0 %v734_v9, %s3299_s21  ;;  %v1471_v15 = vshll.u32 %v3664_v6, 16 }
  0x62   : > { %v1473_v24 = vrot.slane %v1471_v15, 1 }
  0x63   : > { %903 = vrot.lane.b32.xlu1 %v3547_v58, %s3298_s20  ;;  %v3646_v58 = vld [vmem:[%s3353_s19 + $0x38] ss:$0 sps:$4 sm:$0x11]  }
  0x64   : > { %887 = vrot.lane.b32.xlu0 %v3555_v62, %s3298_s20  ;;  %v1552_v62 = vrot.slane %v1550_v53, 1  ;;  %v1459_v3 = vshll.u32 %v3646_v58, 16  ;;  %v1474_v43 = vsel %vm497_vm1, %v1469_v27, %v1473_v24  ;;  %v735_v24 = vrot.slane %v3679_v19, 1  ;;  %v3771_v27 = vld [vmem:[%s3353_s19 + $0x9c] sm:$0xff]  }
  0x65   : > { %v3778_v19 = vld [vmem:[%s3353_s19 + $0x3c] sm:$0xff]  }
  0x66   : > { %v1553_v9 = vor.u32 %v1552_v62, %v1548_v61  ;;  %v1461_v17 = vrot.slane %v1459_v3, 1  ;;  %v1660_v61 = vrot.slane %v3650_v50, 1  ;;  %v655_v62 = vshrl.u32 %v3700_v1, 16 }
  0x67   : > { %905 = vrot.lane.b32.xlu1 %v3564_v4, %s3298_s20  ;;  %v1562_v4 = vshll.u32 %v3643_v57, 16  ;;  %v659_v3 = vrot.slane %v657_v49, 1 }
  0x68   : > { %889 = vrot.lane.b32.xlu0 %v3574_v10, %s3298_s20  ;;  %v1557_v10 = vrot.slane %v1555_v55, 1  ;;  %v1462_v26 = vsel %vm497_vm1, %v1457_v16, %v1461_v17 }
  0x69   : > { %v1564_v13 = vrot.slane %v1562_v4, 1  ;;  %v662_v4 = vshll.u32 %v3719_v44, 16 }
  0x6a   : > { %v1558_v21 = vsel %vm497_vm1, %v1553_v9, %v1557_v10 }
  0x6b   : > { %1175 = vrot.lane.b32.xlu1 %v1094_v31, %s3301_s23  ;;  %v1565_v22 = vor.u32 %v1564_v13, %v1560_v12  ;;  %v1682_v31 = vrot.slane %v3638_v54, 1  ;;  %v556_v54 = vrot.slane %v554_v33, 1  ;;  %v660_v12 = vor.u32 %v659_v3, %v655_v62 }
  0x6c   : > { %1159 = vrot.lane.b32.xlu0 %v998_v34, %s3301_s23  ;;  %v1658_v34 = vrot.slane %v3646_v58, 1  ;;  %v664_v13 = vrot.slane %v662_v4, 1 }
  0x6d   : > { %v1570_v40 = vsel %vm497_vm1, %v1565_v22, %v1569_v23 }
  0x6e   : > { %v1659_v52 = vsel %vm722_vm0, %v1657_v32, %v1658_v34  ;;  %v665_v5 = vsel %vm497_vm1, %v660_v12, %v664_v13 }
  0x6f   : > { %1177 = vrot.lane.b32.xlu1 %v1106_v38, %s3301_s23  ;;  %v3708_v38 = vld [vmem:[%s3353_s19 + $0x3c] sm:$0xff]  }
  0x70   : > { %1161 = vrot.lane.b32.xlu0 %v1010_v41, %s3301_s23  ;;  %v647_v41 = vrot.slane %v645_v25, 1  ;;  %v559_v63 = vshrl.u32 %v3708_v38, 16  ;;  %v736_v25 = vrot.slane %v3692_v28, 1 }
  0x72   : > { %v648_v48 = vor.u32 %v647_v41, %v643_v36  ;;  %v1014_v41 = vshll.u32 %v3778_v19, 16 }
  0x73   : > { %1255 = vrot.lane.b32.xlu1 %v1219_v35, %s3302_s24  ;;  %v652_v35 = vrot.slane %v650_v37, 1  ;;  %v3792_v37 = vld [vmem:[%s3353_s19 + $0xa8] sm:$0xff]  }
  0x74   : > { %1239 = vrot.lane.b32.xlu0 %v1195_v47, %s3302_s24  ;;  %v1683_v47 = vsel %vm722_vm0, %v1681_v30, %v1682_v31  ;;  %v737_v30 = vsel %vm722_vm0, %v735_v24, %v736_v25  ;;  %v738_v31 = vrot.slane %v3708_v38, 1  ;;  %v1016_v49 = vrot.slane %v1014_v41, 1  ;;  %v3851_v24 = vld [vmem:[%s3353_s19 + $0xa8] sm:$0xff]   ;;  %v3869_v41 = vld [vmem:[%s3353_s19 + $0xb0] ss:$0 sps:$4 sm:$0x11]  }
  0x75   : > { %v653_v2 = vsel %vm497_vm1, %v648_v48, %v652_v35  ;;  %v1108_v35 = vshrl.u32 %v3771_v27, 16  ;;  %v1120_v62 = vshrl.u32 %v3792_v37, 16 }
  0x77   : > { %1257 = vrot.lane.b32.xlu1 %v1222_v56, %s3302_s24  ;;  %v561_v56 = vshll.u32 %v3708_v38, 16 }
  0x78   : > { %1241 = vrot.lane.b32.xlu0 %v1198_v59, %s3302_s24  ;;  %v1684_v59 = vrot.slane %v3643_v57, 1 }
  0x7a   : > { %v1686_v10 = vsel %vm722_vm0, %v1684_v59, %v1685_v60 }
  0x7b   : > { %1367 = vrot.lane.b32.xlu1 %v3619_v45, %s3303_s25  ;;  %v551_v45 = vrot.slane %v549_v0, 1  ;;  %v763_v0 = vrot.slane %v3719_v44, 1 }
  0x7c   : > { %1351 = vrot.lane.b32.xlu0 %v3633_v51, %s3303_s25  ;;  %v3727_v51 = vld [vmem:[%s3353_s19 + $0x44] ss:$0 sps:$4 sm:$0x11]  }
  0x7d   : > { %v552_v53 = vor.u32 %v551_v45, %v547_v42  ;;  %v566_v7 = vshll.u32 %v3727_v51, 16  ;;  %v739_v32 = vrot.slane %v3727_v51, 1  ;;  %v3805_v45 = vld [vmem:[%s3353_s19 + $0x44] ss:$0 sps:$4 sm:$0x11]  }
  0x7e   : > { %v3815_v51 = vld [vmem:[%s3353_s19 + $0xb0] ss:$0 sps:$4 sm:$0x11]  }
  0x7f   : > { %1369 = vrot.lane.b32.xlu1 %v3643_v57, %s3303_s25  ;;  %v557_v8 = vsel %vm497_vm1, %v552_v53, %v556_v54  ;;  %v1661_v57 = vrot.slane %v3664_v6, 1  ;;  %v568_v14 = vrot.slane %v566_v7, 1  ;;  %v740_v42 = vsel %vm722_vm0, %v738_v31, %v739_v32 }
  0x80   : > { %1353 = vrot.lane.b32.xlu0 %v3650_v50, %s3303_s25  ;;  %v563_v50 = vrot.slane %v561_v56, 1  ;;  %v1019_v54 = vshll.u32 %v3805_v45, 16  ;;  %v3822_v56 = vld [vmem:[%s3353_s19 + $0x50] ss:$0 sps:$4 sm:$0x11]   ;;  %v1127_v7 = vshll.u32 %v3815_v51, 16 }
  0x81   : > { %v1662_v16 = vsel %vm722_vm0, %v1660_v61, %v1661_v57  ;;  %v1199_v31 = vrot.slane %v3778_v19, 1  ;;  %v1200_v32 = vrot.slane %v3805_v45, 1 }
  0x82   : > { %v564_v6 = vor.u32 %v563_v50, %v559_v63  ;;  %v1021_v57 = vrot.slane %v1019_v54, 1  ;;  %v3892_v54 = vld [vmem:[%s3353_s19 + $0xb4] sm:$0xff]  }
  0x83   : > { %1639 = vrot.lane.b32.xlu1 %v1558_v21, %s3304_s26  ;;  %v760_v21 = vrot.slane %v3682_v20, 1  ;;  %v762_v20 = vrot.slane %v3700_v1, 1  ;;  %v1110_v1 = vshll.u32 %v3771_v27, 16 }
  0x84   : > { %1623 = vrot.lane.b32.xlu0 %v1462_v26, %s3304_s26  ;;  %v569_v23 = vsel %vm497_vm1, %v564_v6, %v568_v14 }
  0x85   : > { %v3695_v29 = vpop.permute.xlu1 %899  ;;  %v761_v11 = vsel %vm722_vm0, %v759_v18, %v760_v21  ;;  %v764_v36 = vsel %vm722_vm0, %v762_v20, %v763_v0  ;;  %v1112_v44 = vrot.slane %v1110_v1, 1  ;;  %v3863_v1 = vld [vmem:[%s3353_s19 + $0x48] sm:$0xff]  }
  0x86   : > { %v3711_v39 = vpop.permute.xlu0 %883 }
  0x87   : > { %1641 = vrot.lane.b32.xlu1 %v1570_v40, %s3304_s26  ;;  %v3795_v40 = vld [vmem:[%s3353_s19 + $0xa4] ss:$0 sps:$4 sm:$0x11]   ;;  %v1113_v61 = vor.u32 %v1112_v44, %v1108_v35  ;;  %v1201_v35 = vsel %vm722_vm0, %v1199_v31, %v1200_v32 }
  0x88   : > { %1625 = vrot.lane.b32.xlu0 %v1474_v43, %s3304_s26  ;;  %v3802_v43 = vld [vmem:[%s3353_s19 + $0x48] sm:$0xff]   ;;  %v1115_v48 = vshll.u32 %v3795_v40, 16  ;;  %v1224_v20 = vrot.slane %v3795_v40, 1  ;;  %v1226_v40 = vrot.slane %v3792_v37, 1 }
  0x89   : > { %v3722_v46 = vpop.permute.xlu1 %787  ;;  %v1026_v59 = vshll.u32 %v3802_v43, 16  ;;  %v1024_v63 = vshrl.u32 %v3802_v43, 16  ;;  %v1202_v44 = vrot.slane %v3802_v43, 1 }
  0x8a   : > { %v3731_v58 = vpop.permute.xlu0 %771 }
  0x8b   : > { %1719 = vrot.lane.b32.xlu1 %v1683_v47, %s3305_s27  ;;  %v1012_v47 = vshrl.u32 %v3778_v19, 16  ;;  %v1028_v50 = vrot.slane %v1026_v59, 1  ;;  %v1579_v59 = vshll.u32 %v3869_v41, 16 }
  0x8c   : > { %1703 = vrot.lane.b32.xlu0 %v1659_v52, %s3305_s27  ;;  %v1122_v52 = vshll.u32 %v3792_v37, 16 }
  0x8d   : > { %v3739_v55 = vpop.permute.xlu1 %789  ;;  %v1017_v3 = vor.u32 %v1016_v49, %v1012_v47  ;;  %v1029_v18 = vor.u32 %v1028_v50, %v1024_v63  ;;  %v1203_v47 = vrot.slane %v3822_v56, 1  ;;  %v3907_v63 = vld [vmem:[%s3353_s19 + $0xbc] ss:$0 sps:$4 sm:$0x11]  }
  0x8e   : > { %v3747_v9 = vpop.permute.xlu0 %773  ;;  %v1124_v4 = vrot.slane %v1122_v52, 1  ;;  %v3885_v52 = vld [vmem:[%s3353_s19 + $0x50] ss:$0 sps:$4 sm:$0x11]  }
  0x8f   : > { %714 = vrot.lane.b32.xlu1 %v653_v2, %s3300_s22  ;;  %v1117_v2 = vrot.slane %v1115_v48, 1  ;;  %v1478_v48 = vshll.u32 %v3863_v1, 16 }
  0x90   : > { %698 = vrot.lane.b32.xlu0 %v557_v8, %s3300_s22  ;;  %v1125_v14 = vor.u32 %v1124_v4, %v1120_v62  ;;  %v1204_v4 = vsel %vm722_vm0, %v1202_v44, %v1203_v47  ;;  %v3950_v47 = vld [vmem:[%s3353_s19 + $0xa8] sm:$0xff]  }
  0x91   : > { %v3752_v15 = vpop.permute.xlu1 %692  ;;  %v1118_v13 = vsel %vm497_vm1, %v1113_v61, %v1117_v2  ;;  %v3263_v61 = vld [vmem:[%s3353_s19] sm:$0xff]   ;;  %v3902_v2 = vld [vmem:[%s3353_s19 + $0x54] sm:$0xff]  }
  0x92   : > { %v3755_v17 = vpop.permute.xlu0 %690 }
  0x93   : > { %1721 = vrot.lane.b32.xlu1 %v1686_v10, %s3305_s27  ;;  %v1031_v10 = vshll.u32 %v3822_v56, 16  ;;  %v1733_v62 = vsel %vm1731_vm3, %v3263_v61, %v3755_v17 }
  0x94   : > { %1705 = vrot.lane.b32.xlu0 %v1662_v16, %s3305_s27  ;;  %v1129_v16 = vrot.slane %v1127_v7, 1  ;;  %v1476_v7 = vshrl.u32 %v3863_v1, 16 }
  0x95   : > { %v3762_v22 = vpop.permute.xlu1 %708  ;;  %v1033_v21 = vrot.slane %v1031_v10, 1  ;;  %v1483_v10 = vshll.u32 %v3885_v52, 16 }
  0x96   : > { %v3767_v26 = vpop.permute.xlu0 %706  ;;  %v1130_v25 = vsel %vm497_vm1, %v1125_v14, %v1129_v16  ;;  %v1581_v16 = vrot.slane %v1579_v59, 1  ;;  %v3265_v59 = vld [vmem:[%s3353_s19 + $0xc] sm:$0xff]  }
  0x97   : > { %716 = vrot.lane.b32.xlu1 %v665_v5, %s3300_s22  ;;  %v1022_v5 = vsel %vm497_vm1, %v1017_v3, %v1021_v57  ;;  %v1480_v57 = vrot.slane %v1478_v48, 1  ;;  %v3264_v48 = vld [vmem:[%s3353_s19 + $0x6c] sm:$0xff]   ;;  %v1735_v61 = vsel %vm1731_vm3, %v3265_v59, %v3752_v15  ;;  %v1663_v15 = vrot.slane %v3863_v1, 1 }
  0x98   : > { %700 = vrot.lane.b32.xlu0 %v569_v23, %s3300_s22 }
  0x99   : > { %v3780_v28 = vpop.permute.xlu1 %901 }
  0x9a   : > { %v3785_v34 = vpop.permute.xlu0 %885 }
  0x9b   : > { %795 = vrot.lane.b32.xlu1 %v761_v11, %s3299_s21  ;;  %v1223_v11 = vrot.slane %v3771_v27, 1 }
  0x9c   : > { %779 = vrot.lane.b32.xlu0 %v737_v30, %s3299_s21  ;;  %v1034_v30 = vsel %vm497_vm1, %v1029_v18, %v1033_v21  ;;  %v1584_v18 = vshrl.u32 %v3892_v54, 16  ;;  %v1490_v21 = vshll.u32 %v3902_v2, 16 }
  0x9d   : > { %v3798_v38 = vpop.permute.xlu1 %1171 }
  0x9e   : > { %v3807_v33 = vpop.permute.xlu0 %1155 }
  0x9f   : > { %797 = vrot.lane.b32.xlu1 %v764_v36, %s3299_s21 }
  0xa0   : > { %781 = vrot.lane.b32.xlu0 %v740_v42, %s3299_s21  ;;  %v1227_v42 = vrot.slane %v3815_v51, 1 }
  0xa1   : > { %v3818_v53 = vpop.permute.xlu1 %1173 }
  0xa2   : > { %v3825_v60 = vpop.permute.xlu0 %1157 }
  0xa3   : > { %907 = vrot.lane.b32.xlu1 %v3771_v27, %s3298_s20  ;;  %v1574_v27 = vshll.u32 %v3851_v24, 16 }
  0xa4   : > { %891 = vrot.lane.b32.xlu0 %v3778_v19, %s3298_s20  ;;  %v1225_v19 = vsel %vm722_vm0, %v1223_v11, %v1224_v20  ;;  %v1591_v20 = vshll.u32 %v3907_v63, 16 }
  0xa5   : > { %v3833_v8 = vpop.permute.xlu1 %1251  ;;  %v1576_v56 = vrot.slane %v1574_v27, 1 }
  0xa6   : > { %v3837_v12 = vpop.permute.xlu0 %1235 }
  0xa7   : > { %909 = vrot.lane.b32.xlu1 %v3792_v37, %s3298_s20  ;;  %v3262_v37 = vld [vmem:[%s3353_s19 + $0x60] sm:$0xff]  }
  0xa8   : > { %893 = vrot.lane.b32.xlu0 %v3802_v43, %s3298_s20  ;;  %v1749_v51 = vsel %vm1731_vm3, %v3262_v37, %v3767_v26  ;;  %v1572_v43 = vshrl.u32 %v3851_v24, 16  ;;  %v1228_v26 = vsel %vm722_vm0, %v1226_v40, %v1227_v42  ;;  %v1751_v37 = vsel %vm1731_vm3, %v3264_v48, %v3762_v22 }
  0xa9   : > { %v3844_v6 = vpop.permute.xlu1 %1253  ;;  %v1782_v17 = vsel %vm1764_vm4, %v1749_v51, %v3722_v46  ;;  %v3919_v46 = vld [vmem:[%s3353_s19 + $0x5c] ss:$0 sps:$4 sm:$0x11]  }
  0xaa   : > { %v3847_v23 = vpop.permute.xlu0 %1237  ;;  %v1577_v14 = vor.u32 %v1576_v56, %v1572_v43  ;;  %v3959_v56 = vld [vmem:[%s3353_s19 + $0x48] sm:$0xff]  }
  0xab   : > { %1179 = vrot.lane.b32.xlu1 %v1118_v13, %s3301_s23  ;;  %v1766_v13 = vsel %vm1764_vm4, %v1733_v62, %v3731_v58  ;;  %v1481_v58 = vor.u32 %v1480_v57, %v1476_v7  ;;  %v1688_v7 = vrot.slane %v3869_v41, 1  ;;  %v3974_v57 = vld [vmem:[%s3353_s19 + $0xb0] ss:$0 sps:$4 sm:$0x11]  }
  0xac   : > { %1163 = vrot.lane.b32.xlu0 %v1022_v5, %s3301_s23  ;;  %v1586_v5 = vshll.u32 %v3892_v54, 16  ;;  %v1799_v32 = vsel %vm1797_vm5, %v1766_v13, %v3711_v39  ;;  %v669_v13 = vshll.u32 %v3950_v47, 16 }
  0xad   : > { %v3857_v0 = vpop.permute.xlu1 %1363  ;;  %v1832_v40 = vsel %vm1830_vm6, %v1799_v32, %v3807_v33  ;;  %v1492_v33 = vrot.slane %v1490_v21, 1  ;;  %v4015_v32 = vld [vmem:[%s3353_s19 + $0xb4] sm:$0xff]  }
  0xae   : > { %v3865_v36 = vpop.permute.xlu0 %1347  ;;  %v1865_v39 = vsel %vm1863_vm7, %v1832_v40, %v3837_v12 }
  0xaf   : > { %1181 = vrot.lane.b32.xlu1 %v1130_v25, %s3301_s23  ;;  %v1815_v25 = vsel %vm1797_vm5, %v1782_v17, %v3695_v29  ;;  %v1687_v29 = vrot.slane %v3851_v24, 1  ;;  %v1898_v51 = vsel %vm1896_vm8, %v1865_v39, %v3865_v36  ;;  %v1784_v17 = vsel %vm1764_vm4, %v1751_v37, %v3739_v55  ;;  %v3990_v55 = vld [vmem:[%s3353_s19 + $0x50] ss:$0 sps:$4 sm:$0x11]  }
  0xb0   : > { %1165 = vrot.lane.b32.xlu0 %v1034_v30, %s3301_s23  ;;  %v1488_v30 = vshrl.u32 %v3902_v2, 16  ;;  %v1848_v31 = vsel %vm1830_vm6, %v1815_v25, %v3798_v38  ;;  %v1582_v38 = vsel %vm497_vm1, %v1577_v14, %v1581_v16  ;;  %v1817_v14 = vsel %vm1797_vm5, %v1784_v17, %v3780_v28 }
  0xb1   : > { %v3876_v45 = vpop.permute.xlu1 %1365  ;;  %v1881_v42 = vsel %vm1863_vm7, %v1848_v31, %v3833_v8  ;;  %v1495_v8 = vshll.u32 %v3919_v46, 16  ;;  %v1664_v16 = vrot.slane %v3885_v52, 1  ;;  %v1850_v21 = vsel %vm1830_vm6, %v1817_v14, %v3818_v53 }
  0xb2   : > { %v3882_v49 = vpop.permute.xlu0 %1349  ;;  %v1914_v44 = vsel %vm1896_vm8, %v1881_v42, %v3857_v0  ;;  %v1593_v0 = vrot.slane %v1591_v20, 1  ;;  %v667_v28 = vshrl.u32 %v3950_v47, 16  ;;  %v674_v20 = vshll.u32 %v3974_v57, 16 }
  0xb3   : > { %1259 = vrot.lane.b32.xlu1 %v1225_v19, %s3302_s24  ;;  %v1485_v19 = vrot.slane %v1483_v10, 1  ;;  %v1497_v10 = vrot.slane %v1495_v8, 1  ;;  %v671_v31 = vrot.slane %v669_v13, 1  ;;  %v681_v8 = vshll.u32 %v4015_v32, 16 }
  0xb4   : > { %1243 = vrot.lane.b32.xlu0 %v1201_v35, %s3302_s24  ;;  %v1588_v35 = vrot.slane %v1586_v5, 1  ;;  %v573_v5 = vshll.u32 %v3959_v56, 16  ;;  %v1665_v37 = vsel %vm722_vm0, %v1663_v15, %v1664_v16 }
  0xb5   : > { %v1636_v3 = vpop.permute.xlu1 %1635  ;;  %v1486_v22 = vsel %vm497_vm1, %v1481_v58, %v1485_v19  ;;  %v1883_v58 = vsel %vm1863_vm7, %v1850_v21, %v3844_v6  ;;  %v766_v21 = vrot.slane %v3974_v57, 1 }
  0xb6   : > { %v1620_v50 = vpop.permute.xlu0 %1619  ;;  %v1947_v12 = vsel %vm1929_vm9, %v1914_v44, %v1636_v3  ;;  %v1589_v3 = vor.u32 %v1588_v35, %v1584_v18  ;;  %v575_v42 = vrot.slane %v573_v5, 1 }
  0xb7   : > { %1261 = vrot.lane.b32.xlu1 %v1228_v26, %s3302_s24  ;;  %v1931_v62 = vsel %vm1929_vm9, %v1898_v51, %v1620_v50  ;;  %v1493_v50 = vor.u32 %v1492_v33, %v1488_v30  ;;  %v1916_v30 = vsel %vm1896_vm8, %v1883_v58, %v3876_v45  ;;  %v3243_v33 = vld [vmem:[%s3353_s19 + $0xbc] ss:$0 sps:$4 sm:$0x11]   ;;  %v742_v58 = vrot.slane %v3990_v55, 1 }
  0xb8   : > { %1245 = vrot.lane.b32.xlu0 %v1204_v4, %s3302_s24 }
  0xb9   : > { %v3924_v11 = vpop.permute.xlu1 %1637 }
  0xba   : > { %v3932_v27 = vpop.permute.xlu0 %1621  ;;  %v1949_v19 = vsel %vm1929_vm9, %v1916_v30, %v3924_v11  ;;  %v672_v11 = vor.u32 %v671_v31, %v667_v28  ;;  %v769_v30 = vrot.slane %v3243_v33, 1 }
  0xbb   : > { %1371 = vrot.lane.b32.xlu1 %v3851_v24, %s3303_s25  ;;  %v1690_v24 = vrot.slane %v3892_v54, 1 }
  0xbc   : > { %1355 = vrot.lane.b32.xlu0 %v3863_v1, %s3303_s25  ;;  %v1768_v1 = vsel %vm1764_vm4, %v1735_v61, %v3747_v9  ;;  %v571_v9 = vshrl.u32 %v3959_v56, 16  ;;  %v1666_v61 = vrot.slane %v3902_v2, 1 }
  0xbd   : > { %v1716_v43 = vpop.permute.xlu1 %1715  ;;  %v1801_v18 = vsel %vm1797_vm5, %v1768_v1, %v3785_v34  ;;  %v1594_v34 = vsel %vm497_vm1, %v1589_v3, %v1593_v0 }
  0xbe   : > { %v1700_v26 = vpop.permute.xlu0 %1699  ;;  %v1980_v4 = vsel %vm1962_vm10, %v1947_v12, %v1716_v43  ;;  %v1834_v52 = vsel %vm1830_vm6, %v1801_v18, %v3825_v60  ;;  %v1498_v60 = vsel %vm497_vm1, %v1493_v50, %v1497_v10  ;;  %v576_v51 = vor.u32 %v575_v42, %v571_v9  ;;  %v3245_v43 = vld [vmem:[%s3353_s19 + $0x5c] ss:$0 sps:$4 sm:$0x11]  }
  0xbf   : > { %1373 = vrot.lane.b32.xlu1 %v3892_v54, %s3303_s25  ;;  %v1964_v36 = vsel %vm1962_vm10, %v1931_v62, %v1700_v26  ;;  %3105 = vmatprep.mubr.msk.bf16.mxu1 %vm2022_vm11, %v1980_v4  ;;  %v1867_v53 = vsel %vm1863_vm7, %v1834_v52, %v3847_v23  ;;  %v578_v23 = vshll.u32 %v3990_v55, 16  ;;  %v1667_v62 = vrot.slane %v3919_v46, 1 }
  0xc0   : > { %1357 = vrot.lane.b32.xlu0 %v3902_v2, %s3303_s25  ;;  %3089 = vmatprep.mubr.msk.bf16.mxu0 %vm2022_vm11, %v1964_v36  ;;  %v1900_v6 = vsel %vm1896_vm8, %v1867_v53, %v3882_v49  ;;  %v1689_v49 = vsel %vm722_vm0, %v1687_v29, %v1688_v7  ;;  %v1691_v29 = vrot.slane %v3907_v63, 1  ;;  %v679_v4 = vshrl.u32 %v4015_v32, 16 }
  0xc1   : > { %v3986_v41 = vpop.permute.xlu1 %710  ;;  %v1933_v45 = vsel %vm1929_vm9, %v1900_v6, %v3932_v27  ;;  %v676_v27 = vrot.slane %v674_v20, 1  ;;  %v580_v12 = vrot.slane %v578_v23, 1  ;;  %v686_v36 = vshll.u32 %v3243_v33, 16  ;;  %v4081_v20 = vld [vmem:[%s3353_s19 + $0xb4] sm:$0xff]  }
  0xc2   : > { %v3997_v25 = vpop.permute.xlu0 %694  ;;  %v590_v63 = vshll.u32 %v3245_v43, 16  ;;  %v1692_v2 = vsel %vm722_vm0, %v1690_v24, %v1691_v29  ;;  %v1668_v13 = vsel %vm722_vm0, %v1666_v61, %v1667_v62  ;;  %v765_v18 = vrot.slane %v3950_v47, 1  ;;  %v3253_v62 = vld [vmem:[%s3353_s19 + $0x68] ss:$0 sps:$4 sm:$0x11]  }
  0xc3   : > { %1643 = vrot.lane.b32.xlu1 %v1582_v38, %s3304_s26  ;;  %v4023_v38 = vld [vmem:[%s3353_s19 + $0x54] sm:$0xff]   ;;  %v677_v26 = vsel %vm497_vm1, %v672_v11, %v676_v27  ;;  %v581_v7 = vsel %vm497_vm1, %v576_v51, %v580_v12  ;;  %v688_v50 = vrot.slane %v686_v36, 1  ;;  %v741_v52 = vrot.slane %v3959_v56, 1  ;;  %v3251_v11 = vld [vmem:[%s3353_s19 + $0x5c] ss:$0 sps:$4 sm:$0x11]  }
  0xc4   : > { %1627 = vrot.lane.b32.xlu0 %v1486_v22, %s3304_s26  ;;  %v585_v0 = vshll.u32 %v4023_v38, 16  ;;  %v683_v22 = vrot.slane %v681_v8, 1  ;;  %v583_v54 = vshrl.u32 %v4023_v38, 16  ;;  %v592_v1 = vrot.slane %v590_v63, 1 }
  0xc5   : > { %v1718_v40 = vpop.permute.xlu1 %1717  ;;  %v767_v57 = vsel %vm722_vm0, %v765_v18, %v766_v21  ;;  %v768_v53 = vrot.slane %v4015_v32, 1  ;;  %v743_v55 = vsel %vm722_vm0, %v741_v52, %v742_v58  ;;  %v744_v31 = vrot.slane %v4023_v38, 1 }
  0xc6   : > { %v1982_v35 = vsel %vm1962_vm10, %v1949_v19, %v1718_v40  ;;  %v1702_v39 = vpop.permute.xlu0 %1701  ;;  %v587_v15 = vrot.slane %v585_v0, 1  ;;  %v684_v46 = vor.u32 %v683_v22, %v679_v4  ;;  %v745_v6 = vrot.slane %v3245_v43, 1  ;;  %v4091_v19 = vld [vmem:[%s3353_s19 + $0x54] sm:$0xff]   ;;  %v3252_v43 = vld [vmem:[%s3353_s19 + $0xc8] ss:$0 sps:$4 sm:$0x11]  }
  0xc7   : > { %v1966_v44 = vsel %vm1962_vm10, %v1933_v45, %v1702_v39  ;;  %1645 = vrot.lane.b32.xlu1 %v1594_v34, %s3304_s26  ;;  %3106 = vmatmul.mubr.msk.bf16.vlgmr.msra.gmra.mrb[0].mxu1 %vm2022_vm11, %v1982_v35  ;;  %v1134_v42 = vshll.u32 %v4081_v20, 16  ;;  %v770_v23 = vsel %vm722_vm0, %v768_v53, %v769_v30  ;;  %v4100_v45 = vld [vmem:[%s3353_s19 + $0xc0] sm:$0xff]   ;;  %v3250_v35 = vld [vmem:[%s3353_s19 + $0xbc] ss:$0 sps:$4 sm:$0x11]   ;;  %v1038_v27 = vshll.u32 %v4091_v19, 16 }
  0xc8   : > { %1629 = vrot.lane.b32.xlu0 %v1498_v60, %s3304_s26  ;;  %3090 = vmatmul.mubr.msk.bf16.vlgmr.msra.gmra.mrb[0].mxu0 %vm2022_vm11, %v1966_v44  ;;  %v588_v14 = vor.u32 %v587_v15, %v583_v54  ;;  %v689_v5 = vsel %vm497_vm1, %v684_v46, %v688_v50  ;;  %v746_v44 = vsel %vm722_vm0, %v744_v31, %v745_v6  ;;  %v1132_v8 = vshrl.u32 %v4081_v20, 16 }
  0xc9   : > { %v4038_v48 = vpop.permute.xlu1 %712  ;;  %v1139_v51 = vshll.u32 %v3250_v35, 16  ;;  %v1036_v12 = vshrl.u32 %v4091_v19, 16  ;;  %v1146_v0 = vshll.u32 %v4100_v45, 16  ;;  %v1040_v29 = vrot.slane %v1038_v27, 1 }
  0xca   : > { %v4043_v59 = vpop.permute.xlu0 %696  ;;  %v593_v9 = vsel %vm497_vm1, %v588_v14, %v592_v1  ;;  %v1043_v61 = vshll.u32 %v3251_v11, 16  ;;  %v1144_v36 = vshrl.u32 %v4100_v45, 16  ;;  %v1151_v15 = vshll.u32 %v3252_v43, 16 }
  0xcb   : > { %1723 = vrot.lane.b32.xlu1 %v1689_v49, %s3305_s27  ;;  %v4107_v49 = vld [vmem:[%s3353_s19 + $0x60] sm:$0xff]   ;;  %v1148_v54 = vrot.slane %v1146_v0, 1  ;;  %v1041_v46 = vor.u32 %v1040_v29, %v1036_v12  ;;  %v1055_v14 = vshll.u32 %v3253_v62, 16  ;;  %v1230_v31 = vrot.slane %v3250_v35, 1 }
  0xcc   : > { %1707 = vrot.lane.b32.xlu0 %v1665_v37, %s3305_s27  ;;  %v1136_v37 = vrot.slane %v1134_v42, 1  ;;  %v1048_v63 = vshrl.u32 %v4107_v49, 16  ;;  %v1045_v50 = vrot.slane %v1043_v61, 1  ;;  %v1153_v21 = vrot.slane %v1151_v15, 1 }
  0xcd   : > { %v4053_v3 = vpop.permute.xlu1 %791  ;;  %v1149_v18 = vor.u32 %v1148_v54, %v1144_v36  ;;  %v1232_v35 = vrot.slane %v4100_v45, 1  ;;  %v1208_v12 = vrot.slane %v4107_v49, 1  ;;  %v1209_v0 = vrot.slane %v3253_v62, 1  ;;  %v4170_v29 = vld [vmem:[%s3353_s19 + $0xc8] ss:$0 sps:$4 sm:$0x11]  }
  0xce   : > { %v4057_v17 = vpop.permute.xlu0 %775  ;;  %v1137_v22 = vor.u32 %v1136_v37, %v1132_v8  ;;  %v1046_v52 = vsel %vm497_vm1, %v1041_v46, %v1045_v50  ;;  %v4156_v8 = vld [vmem:[%s3353_s19 + $0xc0] sm:$0xff]   ;;  %v1233_v37 = vrot.slane %v3252_v43, 1  ;;  %v1603_v54 = vshll.u32 %v4170_v29, 16  ;;  %v3266_v50 = vld [vmem:[%s3353_s19 + $0x78] sm:$0xff]  }
  0xcf   : > { %718 = vrot.lane.b32.xlu1 %v677_v26, %s3300_s22  ;;  %v1050_v26 = vshll.u32 %v4107_v49, 16  ;;  %v1154_v30 = vsel %vm497_vm1, %v1149_v18, %v1153_v21  ;;  %v1210_v36 = vsel %vm722_vm0, %v1208_v12, %v1209_v0 }
  0xd0   : > { %702 = vrot.lane.b32.xlu0 %v581_v7, %s3300_s22  ;;  %v1141_v7 = vrot.slane %v1139_v51, 1  ;;  %v4163_v51 = vld [vmem:[%s3353_s19 + $0x60] sm:$0xff]   ;;  %v1234_v43 = vsel %vm722_vm0, %v1232_v35, %v1233_v37 }
  0xd1   : > { %v4062_v10 = vpop.permute.xlu1 %793 }
  0xd2   : > { %v4065_v16 = vpop.permute.xlu0 %777 }
  0xd3   : > { %1725 = vrot.lane.b32.xlu1 %v1692_v2, %s3305_s27 }
  0xd4   : > { %1709 = vrot.lane.b32.xlu0 %v1668_v13, %s3305_s27  ;;  %v1052_v13 = vrot.slane %v1050_v26, 1  ;;  %v1598_v26 = vshll.u32 %v4156_v8, 16 }
  0xd5   : > { %v4072_v28 = vpop.permute.xlu1 %903 }
  0xd6   : > { %v4077_v34 = vpop.permute.xlu0 %887  ;;  %v1053_v58 = vor.u32 %v1052_v13, %v1048_v63  ;;  %v1596_v63 = vshrl.u32 %v4156_v8, 16  ;;  %v1600_v46 = vrot.slane %v1598_v26, 1  ;;  %v1753_v13 = vsel %vm1731_vm3, %v3266_v50, %v3986_v41  ;;  %v3268_v50 = vld [vmem:[%s3353_s19 + $0x84] sm:$0xff]  }
  0xd7   : > { %720 = vrot.lane.b32.xlu1 %v689_v5, %s3300_s22  ;;  %v1142_v5 = vsel %vm497_vm1, %v1137_v22, %v1141_v7  ;;  %v4182_v22 = vld [vmem:[%s3353_s19 + $0x68] ss:$0 sps:$4 sm:$0x11]   ;;  %v4187_v7 = vld [vmem:[%s3353_s19 + $0x6c] sm:$0xff]  }
  0xd8   : > { %704 = vrot.lane.b32.xlu0 %v593_v9, %s3300_s22  ;;  %v1601_v37 = vor.u32 %v1600_v46, %v1596_v63 }
  0xd9   : > { %v4086_v60 = vpop.permute.xlu1 %905 }
  0xda   : > { %v4093_v40 = vpop.permute.xlu0 %889 }
  0xdb   : > { %799 = vrot.lane.b32.xlu1 %v767_v57, %s3299_s21  ;;  %v1057_v57 = vrot.slane %v1055_v14, 1  ;;  %v1500_v14 = vshrl.u32 %v4163_v51, 16 }
  0xdc   : > { %783 = vrot.lane.b32.xlu0 %v743_v55, %s3299_s21  ;;  %v1229_v55 = vrot.slane %v4081_v20, 1 }
  0xdd   : > { %v4103_v39 = vpop.permute.xlu1 %1175  ;;  %v1058_v42 = vsel %vm497_vm1, %v1053_v58, %v1057_v57  ;;  %v1786_v57 = vsel %vm1764_vm4, %v1753_v13, %v4053_v3  ;;  %v1755_v13 = vsel %vm1731_vm3, %v3268_v50, %v4038_v48  ;;  %v3306_v50 = vmov 0  }
  0xde   : > { %v4111_v33 = vpop.permute.xlu0 %1159 }
  0xdf   : > { %801 = vrot.lane.b32.xlu1 %v770_v23, %s3299_s21  ;;  %v1205_v23 = vrot.slane %v4091_v19, 1 }
  0xe0   : > { %785 = vrot.lane.b32.xlu0 %v746_v44, %s3299_s21  ;;  %v1206_v44 = vrot.slane %v3251_v11, 1 }
  0xe1   : > { %v4119_v24 = vpop.permute.xlu1 %1177 }
  0xe2   : > { %v4123_v4 = vpop.permute.xlu0 %1161  ;;  %v1207_v11 = vsel %vm722_vm0, %v1205_v23, %v1206_v44  ;;  %v1605_v23 = vrot.slane %v1603_v54, 1  ;;  %v4213_v44 = vld [vmem:[%s3353_s19 + $0x74] ss:$0 sps:$4 sm:$0x11]  }
  0xe3   : > { %911 = vrot.lane.b32.xlu1 %v4081_v20, %s3298_s20  ;;  %v1231_v20 = vsel %vm722_vm0, %v1229_v55, %v1230_v31  ;;  %v1819_v31 = vsel %vm1797_vm5, %v1786_v57, %v4072_v28  ;;  %v1519_v54 = vshll.u32 %v4213_v44, 16 }
  0xe4   : > { %895 = vrot.lane.b32.xlu0 %v4091_v19, %s3298_s20  ;;  %v1606_v46 = vsel %vm497_vm1, %v1601_v37, %v1605_v23  ;;  %v1693_v23 = vrot.slane %v4156_v8, 1  ;;  %v1670_v37 = vrot.slane %v4182_v22, 1 }
  0xe5   : > { %v4131_v2 = vpop.permute.xlu1 %1255 }
  0xe6   : > { %v4133_v1 = vpop.permute.xlu0 %1239 }
  0xe7   : > { %913 = vrot.lane.b32.xlu1 %v4100_v45, %s3298_s20  ;;  %v4177_v45 = vld [vmem:[%s3353_s19 + $0xcc] sm:$0xff]  }
  0xe8   : > { %897 = vrot.lane.b32.xlu0 %v4107_v49, %s3298_s20  ;;  %v1502_v49 = vshll.u32 %v4163_v51, 16  ;;  %v1608_v18 = vshrl.u32 %v4177_v45, 16  ;;  %v1610_v21 = vshll.u32 %v4177_v45, 16 }
  0xe9   : > { %v4140_v9 = vpop.permute.xlu1 %1257 }
  0xea   : > { %v4143_v53 = vpop.permute.xlu0 %1241  ;;  %v1504_v41 = vrot.slane %v1502_v49, 1  ;;  %v1612_v12 = vrot.slane %v1610_v21, 1  ;;  %v3269_v21 = vld [vmem:[%s3353_s19 + $0x24] sm:$0xff]  }
  0xeb   : > { %1183 = vrot.lane.b32.xlu1 %v1142_v5, %s3301_s23  ;;  %v4197_v5 = vld [vmem:[%s3353_s19 + $0xd4] ss:$0 sps:$4 sm:$0x11]  }
  0xec   : > { %1167 = vrot.lane.b32.xlu0 %v1046_v52, %s3301_s23  ;;  %v3267_v52 = vld [vmem:[%s3353_s19 + $0x18] sm:$0xff]  }
  0xed   : > { %v4149_v6 = vpop.permute.xlu1 %1367  ;;  %v1737_v58 = vsel %vm1731_vm3, %v3267_v52, %v3997_v25  ;;  %v1514_v25 = vshll.u32 %v4187_v7, 16  ;;  %v1788_v52 = vsel %vm1764_vm4, %v1755_v13, %v4062_v10  ;;  %v3012_v13 = vcombine.low %v3306_v50, %v3306_v50 }
  0xee   : > { %v4153_v27 = vpop.permute.xlu0 %1351  ;;  %v1770_v55 = vsel %vm1764_vm4, %v1737_v58, %v4057_v17 }
  0xef   : > { %1185 = vrot.lane.b32.xlu1 %v1154_v30, %s3301_s23  ;;  %v1507_v30 = vshll.u32 %v4182_v22, 16  ;;  %v1803_v3 = vsel %vm1797_vm5, %v1770_v55, %v4077_v34  ;;  %v1615_v34 = vshll.u32 %v4197_v5, 16  ;;  %2631 = vst.msk [vmem:[%s4316_s9] sm:$0xf] %vm2630_vm12, %v3012_v13  ;;  %2683 = vst.msk [vmem:[%s4316_s9 + $0xcc] sm:$0xf] %vm2630_vm12, %v3012_v13 }
  0xf0   : > { %1169 = vrot.lane.b32.xlu0 %v1058_v42, %s3301_s23  ;;  %v1836_v17 = vsel %vm1830_vm6, %v1803_v3, %v4111_v33  ;;  %v1505_v33 = vor.u32 %v1504_v41, %v1500_v14  ;;  %2634 = vst.msk [vmem:[%s4316_s9 + $0x8] sm:$0x1] %vm2633_vm13, %v3012_v13  ;;  %2685 = vst.msk [vmem:[%s4316_s9 + $0xd4] sm:$0x1] %vm2633_vm13, %v3012_v13 }
  0xf1   : > { %v4165_v19 = vpop.permute.xlu1 %1369  ;;  %v1509_v26 = vrot.slane %v1507_v30, 1  ;;  %v1617_v14 = vrot.slane %v1615_v34, 1 }
  0xf2   : > { %v4172_v61 = vpop.permute.xlu0 %1353 }
  0xf3   : > { %1263 = vrot.lane.b32.xlu1 %v1231_v20, %s3302_s24  ;;  %v1852_v20 = vsel %vm1830_vm6, %v1819_v31, %v4103_v39  ;;  %v1869_v39 = vsel %vm1863_vm7, %v1836_v17, %v4133_v1  ;;  %v1510_v48 = vsel %vm497_vm1, %v1505_v33, %v1509_v26 }
  0xf4   : > { %1247 = vrot.lane.b32.xlu0 %v1207_v11, %s3302_s24  ;;  %v1512_v11 = vshrl.u32 %v4187_v7, 16  ;;  %v1885_v28 = vsel %vm1863_vm7, %v1852_v20, %v4131_v2  ;;  %v1902_v2 = vsel %vm1896_vm8, %v1869_v39, %v4153_v27 }
  0xf5   : > { %v1640_v62 = vpop.permute.xlu1 %1639  ;;  %v1918_v0 = vsel %vm1896_vm8, %v1885_v28, %v4149_v6  ;;  %v1673_v28 = vrot.slane %v4213_v44, 1 }
  0xf6   : > { %v1624_v15 = vpop.permute.xlu0 %1623 }
  0xf7   : > { %1265 = vrot.lane.b32.xlu1 %v1234_v43, %s3302_s24  ;;  %v1951_v43 = vsel %vm1929_vm9, %v1918_v0, %v1640_v62  ;;  %v1935_v1 = vsel %vm1929_vm9, %v1902_v2, %v1624_v15  ;;  %v1613_v62 = vor.u32 %v1612_v12, %v1608_v18  ;;  %v1739_v15 = vsel %vm1731_vm3, %v3269_v21, %v4043_v59 }
  0xf8   : > { %1249 = vrot.lane.b32.xlu0 %v1210_v36, %s3302_s24  ;;  %v1516_v36 = vrot.slane %v1514_v25, 1  ;;  %v1772_v58 = vsel %vm1764_vm4, %v1739_v15, %v4065_v16  ;;  %v1821_v18 = vsel %vm1797_vm5, %v1788_v52, %v4086_v60  ;;  %v1521_v59 = vrot.slane %v1519_v54, 1 }
  0xf9   : > { %v1642_v42 = vpop.permute.xlu1 %1641  ;;  %v1805_v10 = vsel %vm1797_vm5, %v1772_v58, %v4093_v40  ;;  %v1854_v30 = vsel %vm1830_vm6, %v1821_v18, %v4119_v24  ;;  %v1618_v60 = vsel %vm497_vm1, %v1613_v62, %v1617_v14  ;;  %v1694_v25 = vrot.slane %v4170_v29, 1  ;;  %v3270_v58 = vld [vmem:[%s3353_s19 + $0x90] sm:$0xff]  }
  0xfa   : > { %v1626_v35 = vpop.permute.xlu0 %1625  ;;  %v1517_v41 = vor.u32 %v1516_v36, %v1512_v11  ;;  %v1838_v31 = vsel %vm1830_vm6, %v1805_v10, %v4123_v4  ;;  %v1887_v16 = vsel %vm1863_vm7, %v1854_v30, %v4140_v9  ;;  %v1669_v4 = vrot.slane %v4163_v51, 1 }
  0xfb   : > { %1375 = vrot.lane.b32.xlu1 %v4156_v8, %s3303_s25  ;;  %v1871_v40 = vsel %vm1863_vm7, %v1838_v31, %v4143_v53  ;;  %v1920_v24 = vsel %vm1896_vm8, %v1887_v16, %v4165_v19  ;;  %v1696_v29 = vrot.slane %v4177_v45, 1 }
  0xfc   : > { %1359 = vrot.lane.b32.xlu0 %v4163_v51, %s3303_s25  ;;  %v1904_v9 = vsel %vm1896_vm8, %v1871_v40, %v4172_v61  ;;  %v1953_v3 = vsel %vm1929_vm9, %v1920_v24, %v1642_v42  ;;  %v1522_v8 = vsel %vm497_vm1, %v1517_v41, %v1521_v59  ;;  %v1695_v51 = vsel %vm722_vm0, %v1693_v23, %v1694_v25  ;;  %v3271_v41 = vld [vmem:[%s3353_s19 + $0x30] sm:$0xff]  }
  0xfd   : > { %v1720_v49 = vpop.permute.xlu1 %1719  ;;  %v1937_v53 = vsel %vm1929_vm9, %v1904_v9, %v1626_v35  ;;  %v1697_v61 = vrot.slane %v4197_v5, 1  ;;  %v1671_v42 = vsel %vm722_vm0, %v1669_v4, %v1670_v37  ;;  %v1672_v35 = vrot.slane %v4187_v7, 1 }
  0xfe   : > { %v1984_v63 = vsel %vm1962_vm10, %v1951_v43, %v1720_v49  ;;  %v1704_v6 = vpop.permute.xlu0 %1703 }
  0xff   : > { %v1968_v27 = vsel %vm1962_vm10, %v1935_v1, %v1704_v6  ;;  %1377 = vrot.lane.b32.xlu1 %v4177_v45, %s3303_s25  ;;  %3109 = vmatprep.mubr.msk.bf16.mxu1 %vm2022_vm11, %v1984_v63  ;;  %v1698_v34 = vsel %vm722_vm0, %v1696_v29, %v1697_v61  ;;  %v1674_v45 = vsel %vm722_vm0, %v1672_v35, %v1673_v28  ;;  %vm4428_vm0 = vmand %vm2412_vm14, %vm2413_vm15 }
 0x100   : > { %1361 = vrot.lane.b32.xlu0 %v4187_v7, %s3303_s25  ;;  %3093 = vmatprep.mubr.msk.bf16.mxu0 %vm2022_vm11, %v1968_v27  ;;  %v3013_v27 = vcombine.high %v3306_v50, %v3306_v50 }
 0x101   : > { %v4261_v57 = vpop.permute.xlu1 %714 }
 0x102   : > { %v4267_v55 = vpop.permute.xlu0 %698  ;;  %2632 = vst.msk [vmem:[%s4316_s9 + $0x4] sm:$0xf] %vm2630_vm12, %v3013_v27  ;;  %2684 = vst.msk [vmem:[%s4316_s9 + $0xd0] sm:$0xf] %vm2630_vm12, %v3013_v27  ;;  %v1757_v18 = vsel %vm1731_vm3, %v3270_v58, %v4261_v57 }
 0x103   : > { %1647 = vrot.lane.b32.xlu1 %v1606_v46, %s3304_s26  ;;  %v1741_v59 = vsel %vm1731_vm3, %v3271_v41, %v4267_v55 }
 0x104   : > { %1631 = vrot.lane.b32.xlu0 %v1510_v48, %s3304_s26 }
 0x105   : > { %v1722_v20 = vpop.permute.xlu1 %1721 }
 0x106   : > { %v1986_v19 = vsel %vm1962_vm10, %v1953_v3, %v1722_v20  ;;  %v1706_v11 = vpop.permute.xlu0 %1705 }
 0x107   : > { %v1970_v17 = vsel %vm1962_vm10, %v1937_v53, %v1706_v11  ;;  %1649 = vrot.lane.b32.xlu1 %v1618_v60, %s3304_s26  ;;  %3110 = vmatmul.mubr.msk.bf16.gmra.mrb[4].mxu1 %vm2022_vm11, %v1986_v19  ;;  %v3272_v53 = vld [vmem:[%s3353_s19 + $0x9c] sm:$0xff]  }
 0x108   : > { %1633 = vrot.lane.b32.xlu0 %v1522_v8, %s3304_s26  ;;  %3094 = vmatmul.mubr.msk.bf16.gmra.mrb[4].mxu0 %vm2022_vm11, %v1970_v17  ;;  %v3273_v17 = vld [vmem:[%s3353_s19 + $0x3c] sm:$0xff]  }
 0x109   : > { %v4298_v22 = vpop.permute.xlu1 %716 }
 0x10a   : > { %v4303_v12 = vpop.permute.xlu0 %700  ;;  %v1759_v19 = vsel %vm1731_vm3, %v3272_v53, %v4298_v22 }
 0x10b   : > { %1727 = vrot.lane.b32.xlu1 %v1695_v51, %s3305_s27  ;;  %v1743_v51 = vsel %vm1731_vm3, %v3273_v17, %v4303_v12 }
 0x10c   : > { %1711 = vrot.lane.b32.xlu0 %v1671_v42, %s3305_s27 }
 0x10d   : > { %v796_v39 = vpop.permute.xlu1 %795 }
 0x10e   : > { %v780_v5 = vpop.permute.xlu0 %779  ;;  %v1790_v10 = vsel %vm1764_vm4, %v1757_v18, %v796_v39 }
 0x10f   : > { %1729 = vrot.lane.b32.xlu1 %v1698_v34, %s3305_s27  ;;  %v1774_v30 = vsel %vm1764_vm4, %v1741_v59, %v780_v5 }
 0x110   : > { %1713 = vrot.lane.b32.xlu0 %v1674_v45, %s3305_s27 }
 0x111   : > { %v798_v0 = vpop.permute.xlu1 %797 }
 0x112   : > { %v782_v7 = vpop.permute.xlu0 %781  ;;  %v1792_v29 = vsel %vm1764_vm4, %v1759_v19, %v798_v0 }
 0x113   : > { %v1776_v61 = vsel %vm1764_vm4, %v1743_v51, %v782_v7 }
 0x115   : > { %v908_v44 = vpop.permute.xlu1 %907 }
 0x116   : > { %v892_v33 = vpop.permute.xlu0 %891  ;;  %v1823_v31 = vsel %vm1797_vm5, %v1790_v10, %v908_v44 }
 0x117   : > { %v1807_v60 = vsel %vm1797_vm5, %v1774_v30, %v892_v33 }
 0x119   : > { %v910_v26 = vpop.permute.xlu1 %909 }
 0x11a   : > { %v894_v2 = vpop.permute.xlu0 %893  ;;  %v1825_v42 = vsel %vm1797_vm5, %v1792_v29, %v910_v26 }
 0x11b   : > { %v1809_v28 = vsel %vm1797_vm5, %v1776_v61, %v894_v2 }
 0x11d   : > { %v1180_v43 = vpop.permute.xlu1 %1179 }
 0x11e   : > { %v1164_v49 = vpop.permute.xlu0 %1163  ;;  %v1856_v23 = vsel %vm1830_vm6, %v1823_v31, %v1180_v43 }
 0x11f   : > { %v1840_v57 = vsel %vm1830_vm6, %v1807_v60, %v1164_v49 }
 0x121   : > { %v1182_v36 = vpop.permute.xlu1 %1181 }
 0x122   : > { %v1166_v54 = vpop.permute.xlu0 %1165  ;;  %v1858_v22 = vsel %vm1830_vm6, %v1825_v42, %v1182_v36 }
 0x123   : > { %v1842_v39 = vsel %vm1830_vm6, %v1809_v28, %v1166_v54 }
 0x125   : > { %v1260_v1 = vpop.permute.xlu1 %1259 }
 0x126   : > { %v1244_v63 = vpop.permute.xlu0 %1243  ;;  %v1889_v24 = vsel %vm1863_vm7, %v1856_v23, %v1260_v1 }
 0x127   : > { %v1873_v55 = vsel %vm1863_vm7, %v1840_v57, %v1244_v63 }
 0x129   : > { %v1262_v6 = vpop.permute.xlu1 %1261 }
 0x12a   : > { %v1246_v46 = vpop.permute.xlu0 %1245  ;;  %v1891_v45 = vsel %vm1863_vm7, %v1858_v22, %v1262_v6 }
 0x12b   : > { %v1875_v12 = vsel %vm1863_vm7, %v1842_v39, %v1246_v46 }
 0x12d   : > { %v1372_v62 = vpop.permute.xlu1 %1371 }
 0x12e   : > { %v1356_v14 = vpop.permute.xlu0 %1355  ;;  %v1922_v25 = vsel %vm1896_vm8, %v1889_v24, %v1372_v62 }
 0x12f   : > { %v1906_v4 = vsel %vm1896_vm8, %v1873_v55, %v1356_v14 }
 0x131   : > { %v1374_v21 = vpop.permute.xlu1 %1373 }
 0x132   : > { %v1358_v15 = vpop.permute.xlu0 %1357  ;;  %v1924_v5 = vsel %vm1896_vm8, %v1891_v45, %v1374_v21 }
 0x133   : > { %v1908_v0 = vsel %vm1896_vm8, %v1875_v12, %v1358_v15 }
 0x135   : > { %v1644_v52 = vpop.permute.xlu1 %1643 }
 0x136   : > { %v1628_v48 = vpop.permute.xlu0 %1627  ;;  %v1955_v9 = vsel %vm1929_vm9, %v1922_v25, %v1644_v52 }
 0x137   : > { %v1939_v20 = vsel %vm1929_vm9, %v1906_v4, %v1628_v48 }
 0x139   : > { %v1646_v16 = vpop.permute.xlu1 %1645 }
 0x13a   : > { %v1630_v40 = vpop.permute.xlu0 %1629  ;;  %v1957_v7 = vsel %vm1929_vm9, %v1924_v5, %v1646_v16 }
 0x13b   : > { %v1941_v33 = vsel %vm1929_vm9, %v1908_v0, %v1630_v40 }
 0x13d   : > { %v1724_v3 = vpop.permute.xlu1 %1723 }
 0x13e   : > { %v1988_v8 = vsel %vm1962_vm10, %v1955_v9, %v1724_v3  ;;  %v1708_v37 = vpop.permute.xlu0 %1707 }
 0x13f   : > { %v1972_v11 = vsel %vm1962_vm10, %v1939_v20, %v1708_v37  ;;  %3113 = vmatprep.mubr.msk.bf16.mxu1 %vm2022_vm11, %v1988_v8 }
 0x140   : > { %3097 = vmatprep.mubr.msk.bf16.mxu0 %vm2022_vm11, %v1972_v11 }
 0x141   : > { %v719_v35 = vpop.permute.xlu1 %718 }
 0x142   : > { %v703_v34 = vpop.permute.xlu0 %702  ;;  %v1761_v60 = vsel %vm1731_vm3, %v3950_v47, %v719_v35 }
 0x143   : > { %v1745_v23 = vsel %vm1731_vm3, %v3959_v56, %v703_v34 }
 0x145   : > { %v1726_v44 = vpop.permute.xlu1 %1725 }
 0x146   : > { %v1990_v26 = vsel %vm1962_vm10, %v1957_v7, %v1726_v44  ;;  %v1710_v2 = vpop.permute.xlu0 %1709 }
 0x147   : > { %v1974_v43 = vsel %vm1962_vm10, %v1941_v33, %v1710_v2  ;;  %3114 = vmatmul.mubr.msk.bf16.gmra.mrb[8].mxu1 %vm2022_vm11, %v1990_v26  ;;  %v4417_v2 = vld [vmem:[%s4627_s2] ss:$0 sm:$0xff] }
 0x148   : > { %3098 = vmatmul.mubr.msk.bf16.gmra.mrb[8].mxu0 %vm2022_vm11, %v1974_v43 }
 0x149   : > { %v721_v49 = vpop.permute.xlu1 %720 }
 0x14a   : > { %v705_v36 = vpop.permute.xlu0 %704  ;;  %v1763_v3 = vsel %vm1731_vm3, %v4015_v32, %v721_v49 }
 0x14b   : > { %v1747_v56 = vsel %vm1731_vm3, %v4023_v38, %v705_v36 }
 0x14d   : > { %v800_v54 = vpop.permute.xlu1 %799 }
 0x14e   : > { %v784_v1 = vpop.permute.xlu0 %783  ;;  %v1794_v40 = vsel %vm1764_vm4, %v1761_v60, %v800_v54 }
 0x14f   : > { %v1778_v57 = vsel %vm1764_vm4, %v1745_v23, %v784_v1 }
 0x151   : > { %v802_v63 = vpop.permute.xlu1 %801 }
 0x152   : > { %v786_v6 = vpop.permute.xlu0 %785  ;;  %v1796_v8 = vsel %vm1764_vm4, %v1763_v3, %v802_v63 }
 0x153   : > { %v1780_v19 = vsel %vm1764_vm4, %v1747_v56, %v786_v6 }
 0x155   : > { %v912_v46 = vpop.permute.xlu1 %911 }
 0x156   : > { %v896_v50 = vpop.permute.xlu0 %895  ;;  %v1827_v24 = vsel %vm1797_vm5, %v1794_v40, %v912_v46 }
 0x157   : > { %v1811_v25 = vsel %vm1797_vm5, %v1778_v57, %v896_v50 }
 0x159   : > { %v914_v13 = vpop.permute.xlu1 %913 }
 0x15a   : > { %v898_v27 = vpop.permute.xlu0 %897  ;;  %v1829_v11 = vsel %vm1797_vm5, %v1796_v8, %v914_v13 }
 0x15b   : > { %v1813_v29 = vsel %vm1797_vm5, %v1780_v19, %v898_v27 }
 0x15d   : > { %v1184_v62 = vpop.permute.xlu1 %1183 }
 0x15e   : > { %v1168_v14 = vpop.permute.xlu0 %1167  ;;  %v1860_v4 = vsel %vm1830_vm6, %v1827_v24, %v1184_v62 }
 0x15f   : > { %v1844_v47 = vsel %vm1830_vm6, %v1811_v25, %v1168_v14 }
 0x161   : > { %v1186_v21 = vpop.permute.xlu1 %1185 }
 0x162   : > { %v1170_v15 = vpop.permute.xlu0 %1169  ;;  %v1862_v61 = vsel %vm1830_vm6, %v1829_v11, %v1186_v21 }
 0x163   : > { %v1846_v28 = vsel %vm1830_vm6, %v1813_v29, %v1170_v15 }
 0x165   : > { %v1264_v52 = vpop.permute.xlu1 %1263 }
 0x166   : > { %v1248_v48 = vpop.permute.xlu0 %1247  ;;  %v1893_v20 = vsel %vm1863_vm7, %v1860_v4, %v1264_v52 }
 0x167   : > { %v1877_v37 = vsel %vm1863_vm7, %v1844_v47, %v1248_v48 }
 0x169   : > { %v1266_v58 = vpop.permute.xlu1 %1265 }
 0x16a   : > { %v1250_v18 = vpop.permute.xlu0 %1249  ;;  %v1895_v22 = vsel %vm1863_vm7, %v1862_v61, %v1266_v58 }
 0x16b   : > { %v1879_v39 = vsel %vm1863_vm7, %v1846_v28, %v1250_v18 }
 0x16d   : > { %v1376_v41 = vpop.permute.xlu1 %1375 }
 0x16e   : > { %v1360_v59 = vpop.permute.xlu0 %1359  ;;  %v1926_v53 = vsel %vm1896_vm8, %v1893_v20, %v1376_v41 }
 0x16f   : > { %v1910_v17 = vsel %vm1896_vm8, %v1877_v37, %v1360_v59 }
 0x171   : > { %v1378_v10 = vpop.permute.xlu1 %1377 }
 0x172   : > { %v1362_v30 = vpop.permute.xlu0 %1361  ;;  %v1928_v45 = vsel %vm1896_vm8, %v1895_v22, %v1378_v10 }
 0x173   : > { %v1912_v12 = vsel %vm1896_vm8, %v1879_v39, %v1362_v30 }
 0x175   : > { %v1648_v31 = vpop.permute.xlu1 %1647 }
 0x176   : > { %v1632_v16 = vpop.permute.xlu0 %1631  ;;  %v1959_v32 = vsel %vm1929_vm9, %v1926_v53, %v1648_v31 }
 0x177   : > { %v1943_v38 = vsel %vm1929_vm9, %v1910_v17, %v1632_v16 }
 0x179   : > { %v1650_v55 = vpop.permute.xlu1 %1649 }
 0x17a   : > { %v1634_v9 = vpop.permute.xlu0 %1633  ;;  %v1961_v5 = vsel %vm1929_vm9, %v1928_v45, %v1650_v55 }
 0x17b   : > { %v1945_v7 = vsel %vm1929_vm9, %v1912_v12, %v1634_v9 }
 0x17d   : > { %v1728_v51 = vpop.permute.xlu1 %1727 }
 0x17e   : > { %v1992_v42 = vsel %vm1962_vm10, %v1959_v32, %v1728_v51  ;;  %v1712_v35 = vpop.permute.xlu0 %1711 }
 0x17f   : > { %v1976_v34 = vsel %vm1962_vm10, %v1943_v38, %v1712_v35  ;;  %3117 = vmatprep.mubr.msk.bf16.mxu1 %vm2022_vm11, %v1992_v42 }
 0x180   : > { %3101 = vmatprep.mubr.msk.bf16.mxu0 %vm2022_vm11, %v1976_v34 }
 0x181   : > { %v1730_v0 = vpop.permute.xlu1 %1729 }
 0x182   : > { %v1994_v44 = vsel %vm1962_vm10, %v1961_v5, %v1730_v0  ;;  %v1714_v33 = vpop.permute.xlu0 %1713 }
 0x183   : > { %v1978_v26 = vsel %vm1962_vm10, %v1945_v7, %v1714_v33  ;;  %3118 = vmatmul.mubr.msk.bf16.gmra.mrb[12].mxu1 %vm2022_vm11, %v1994_v44 }
 0x184   : > { %3102 = vmatmul.mubr.msk.bf16.gmra.mrb[12].mxu0 %vm2022_vm11, %v1978_v26 }
 0x19a   : > { %v3107_v43 = vpop.f32.mrb[0].mxu1 }
 0x19b   : > { %v3091_v49 = vpop.f32.mrb[0].mxu0  ;;  %v2166_v36 = vadd.f32 %v3107_v43, %v4417_v2  ;;  %v2157_v54 = vpop.f32.mrb[1].mxu1 }
 0x19c   : > { %v2102_v1 = vadd.f32 %v3091_v49, %v4417_v2  ;;  %v2093_v63 = vpop.f32.mrb[1].mxu0  ;;  %v2158_v6 = vadd.f32 %v4417_v2, %v2157_v54  ;;  %v3108_v46 = vpop.f32.mrb[2].mxu1 }
 0x19d   : > { %v2094_v50 = vadd.f32 %v4417_v2, %v2093_v63  ;;  %v3092_v13 = vpop.f32.mrb[2].mxu0  ;;  %v2169_v27 = vadd.f32 %v3108_v46, %v4417_v2  ;;  %v2160_v62 = vpop.f32.mrb[3].mxu1  ;;  %v2238_v52 = vmax.f32 %v2166_v36, 0.0 }
 0x19e   : > { %v2105_v14 = vadd.f32 %v3092_v13, %v4417_v2  ;;  %v2096_v21 = vpop.f32.mrb[3].mxu0  ;;  %v2161_v15 = vadd.f32 %v4417_v2, %v2160_v62  ;;  %v2222_v18 = vmax.f32 %v2102_v1, 0.0  ;;  %v2236_v41 = vmax.f32 %v2158_v6, 0.0 }
 0x19f   : > { %v2239_v48 = vmax.f32 %v2169_v27, 0.0  ;;  %v2097_v58 = vadd.f32 %v4417_v2, %v2096_v21  ;;  %v2220_v30 = vmax.f32 %v2094_v50, 0.0 }
 0x1a0   : > { %v2223_v59 = vmax.f32 %v2105_v14, 0.0  ;;  %v2237_v10 = vmax.f32 %v2161_v15, 0.0 }
 0x1a1   : > { %v2261_v31 = vpack.c.bf16 %v2239_v48, %v2238_v52  ;;  %v2221_v16 = vmax.f32 %v2097_v58, 0.0 }
 0x1a2   : > { %v2253_v60 = vpack.c.bf16 %v2223_v59, %v2222_v18  ;;  %v2260_v23 = vpack.c.bf16 %v2237_v10, %v2236_v41 }
 0x1a3   : > { %v2332_v40 = vshrl.u32 %v2261_v31, 16  ;;  %v2252_v57 = vpack.c.bf16 %v2221_v16, %v2220_v30  ;;  %v2335_v9 = vshll.u32 %v2261_v31, 16 }
 0x1a4   : > { %v2276_v24 = vshrl.u32 %v2253_v60, 16  ;;  %v2325_v25 = vshrl.u32 %v2260_v23, 16  ;;  %v2279_v20 = vshll.u32 %v2253_v60, 16  ;;  %v2328_v8 = vshll.u32 %v2260_v23, 16 }
 0x1a5   : > { %v2334_v4 = vrot.slane %v2332_v40, 7  ;;  %v2269_v3 = vshrl.u32 %v2252_v57, 16  ;;  %v2272_v11 = vshll.u32 %v2252_v57, 16 }
 0x1a6   : > { %v2278_v47 = vrot.slane %v2276_v24, 7  ;;  %v2327_v56 = vrot.slane %v2325_v25, 7 }
 0x1a7   : > { %v2337_v37 = vor.u32 %v2335_v9, %v2334_v4  ;;  %v2440_v53 = vsel %vm4428_vm0, %v2334_v4, 0  ;;  %v2271_v19 = vrot.slane %v2269_v3, 7 }
 0x1a8   : > { %v2281_v17 = vor.u32 %v2279_v20, %v2278_v47  ;;  %v2432_v32 = vsel %vm4428_vm0, %v2278_v47, 0  ;;  %v3043_v51 = vcombine.low %v2440_v53, %v2440_v53  ;;  %v2330_v29 = vor.u32 %v2328_v8, %v2327_v56 }
 0x1a9   : > { %v3019_v61 = vcombine.low %v2432_v32, %v2432_v32  ;;  %v2424_v38 = vsel %vm4428_vm0, 0, %v2337_v37  ;;  %v2274_v42 = vor.u32 %v2272_v11, %v2271_v19  ;;  %v2431_v35 = vsel %vm4428_vm0, %v2271_v19, 0 }
 0x1aa   : > { %v2416_v28 = vsel %vm4428_vm0, 0, %v2281_v17  ;;  %v3041_v22 = vcombine.low %v2424_v38, %v2424_v38  ;;  %v3042_v34 = vcombine.high %v2424_v38, %v2424_v38  ;;  %2664 = vst.msk [vmem:[%s4316_s9 + $0x80] sm:$0x1] %vm2633_vm13, %v3043_v51  ;;  %v3016_v39 = vcombine.low %v2431_v35, %v2431_v35 }
 0x1ab   : > { %v3017_v45 = vcombine.low %v2416_v28, %v2416_v28  ;;  %v3018_v12 = vcombine.high %v2416_v28, %v2416_v28  ;;  %2640 = vst.msk [vmem:[%s4316_s9 + $0x20] sm:$0x1] %vm2633_vm13, %v3019_v61  ;;  %v2415_v5 = vsel %vm4428_vm0, 0, %v2274_v42  ;;  %v2423_v0 = vsel %vm4428_vm0, 0, %v2330_v29 }
 0x1ac   : > { %2662 = vst.msk [vmem:[%s4316_s9 + $0x78] sm:$0xf] %vm2630_vm12, %v3041_v22  ;;  %2663 = vst.msk [vmem:[%s4316_s9 + $0x7c] sm:$0xf] %vm2630_vm12, %v3042_v34  ;;  %v3014_v7 = vcombine.low %v2415_v5, %v2415_v5  ;;  %v3015_v44 = vcombine.high %v2415_v5, %v2415_v5  ;;  %v2439_v33 = vsel %vm4428_vm0, %v2327_v56, 0  ;;  %v3038_v26 = vcombine.low %v2423_v0, %v2423_v0 }
 0x1ad   : > { %2637 = vst.msk [vmem:[%s4316_s9 + $0x14] sm:$0x1] %vm2633_vm13, %v3016_v39  ;;  %v3039_v43 = vcombine.high %v2423_v0, %v2423_v0  ;;  %v3040_v49 = vcombine.low %v2439_v33, %v2439_v33 }
 0x1ae   : > { %2638 = vst.msk [vmem:[%s4316_s9 + $0x18] sm:$0xf] %vm2630_vm12, %v3017_v45  ;;  %2639 = vst.msk [vmem:[%s4316_s9 + $0x1c] sm:$0xf] %vm2630_vm12, %v3018_v12 }
 0x1af   : > { %2635 = vst.msk [vmem:[%s4316_s9 + $0xc] sm:$0xf] %vm2630_vm12, %v3014_v7  ;;  %2636 = vst.msk [vmem:[%s4316_s9 + $0x10] sm:$0xf] %vm2630_vm12, %v3015_v44 }
 0x1b0   : > { %2659 = vst.msk [vmem:[%s4316_s9 + $0x6c] sm:$0xf] %vm2630_vm12, %v3038_v26  ;;  %2660 = vst.msk [vmem:[%s4316_s9 + $0x70] sm:$0xf] %vm2630_vm12, %v3039_v43 }
 0x1b1   : > { %2661 = vst.msk [vmem:[%s4316_s9 + $0x74] sm:$0x1] %vm2633_vm13, %v3040_v49 }
 0x1da   : > { %v3111_v36 = vpop.f32.mrb[4].mxu1 }
 0x1db   : > { %v3095_v54 = vpop.f32.mrb[4].mxu0  ;;  %v2182_v1 = vadd.f32 %v3111_v36, %v4417_v2  ;;  %v2173_v63 = vpop.f32.mrb[5].mxu1 }
 0x1dc   : > { %v2118_v6 = vadd.f32 %v3095_v54, %v4417_v2  ;;  %v2109_v46 = vpop.f32.mrb[5].mxu0  ;;  %v2174_v50 = vadd.f32 %v4417_v2, %v2173_v63  ;;  %v3112_v13 = vpop.f32.mrb[6].mxu1 }
 0x1dd   : > { %v2110_v27 = vadd.f32 %v4417_v2, %v2109_v46  ;;  %v3096_v62 = vpop.f32.mrb[6].mxu0  ;;  %v2185_v14 = vadd.f32 %v3112_v13, %v4417_v2  ;;  %v2176_v21 = vpop.f32.mrb[7].mxu1  ;;  %v2242_v58 = vmax.f32 %v2182_v1, 0.0 }
 0x1de   : > { %v2121_v15 = vadd.f32 %v3096_v62, %v4417_v2  ;;  %v2112_v52 = vpop.f32.mrb[7].mxu0  ;;  %v2177_v48 = vadd.f32 %v4417_v2, %v2176_v21  ;;  %v2226_v59 = vmax.f32 %v2118_v6, 0.0  ;;  %v2240_v10 = vmax.f32 %v2174_v50, 0.0 }
 0x1df   : > { %v2243_v18 = vmax.f32 %v2185_v14, 0.0  ;;  %v2113_v41 = vadd.f32 %v4417_v2, %v2112_v52  ;;  %v2224_v16 = vmax.f32 %v2110_v27, 0.0 }
 0x1e0   : > { %v2227_v30 = vmax.f32 %v2121_v15, 0.0  ;;  %v2241_v31 = vmax.f32 %v2177_v48, 0.0 }
 0x1e1   : > { %v2263_v60 = vpack.c.bf16 %v2243_v18, %v2242_v58  ;;  %v2225_v23 = vmax.f32 %v2113_v41, 0.0 }
 0x1e2   : > { %v2255_v40 = vpack.c.bf16 %v2227_v30, %v2226_v59  ;;  %v2262_v57 = vpack.c.bf16 %v2241_v31, %v2240_v10 }
 0x1e3   : > { %v2346_v24 = vshrl.u32 %v2263_v60, 16  ;;  %v2254_v25 = vpack.c.bf16 %v2225_v23, %v2224_v16  ;;  %v2349_v47 = vshll.u32 %v2263_v60, 16 }
 0x1e4   : > { %v2290_v4 = vshrl.u32 %v2255_v40, 16  ;;  %v2339_v9 = vshrl.u32 %v2262_v57, 16  ;;  %v2293_v8 = vshll.u32 %v2255_v40, 16  ;;  %v2342_v53 = vshll.u32 %v2262_v57, 16 }
 0x1e5   : > { %v2348_v3 = vrot.slane %v2346_v24, 7  ;;  %v2283_v20 = vshrl.u32 %v2254_v25, 16  ;;  %v2286_v32 = vshll.u32 %v2254_v25, 16 }
 0x1e6   : > { %v2292_v56 = vrot.slane %v2290_v4, 7  ;;  %v2341_v37 = vrot.slane %v2339_v9, 7 }
 0x1e7   : > { %v2351_v19 = vor.u32 %v2349_v47, %v2348_v3  ;;  %v2442_v11 = vsel %vm4428_vm0, %v2348_v3, 0  ;;  %v2285_v17 = vrot.slane %v2283_v20, 7 }
 0x1e8   : > { %v2295_v51 = vor.u32 %v2293_v8, %v2292_v56  ;;  %v2434_v29 = vsel %vm4428_vm0, %v2292_v56, 0  ;;  %v3049_v61 = vcombine.low %v2442_v11, %v2442_v11  ;;  %v2344_v38 = vor.u32 %v2342_v53, %v2341_v37 }
 0x1e9   : > { %v3025_v42 = vcombine.low %v2434_v29, %v2434_v29  ;;  %v2426_v35 = vsel %vm4428_vm0, 0, %v2351_v19  ;;  %v2288_v28 = vor.u32 %v2286_v32, %v2285_v17  ;;  %v2433_v22 = vsel %vm4428_vm0, %v2285_v17, 0 }
 0x1ea   : > { %v2418_v34 = vsel %vm4428_vm0, 0, %v2295_v51  ;;  %v3047_v39 = vcombine.low %v2426_v35, %v2426_v35  ;;  %v3048_v45 = vcombine.high %v2426_v35, %v2426_v35  ;;  %2670 = vst.msk [vmem:[%s4316_s9 + $0x98] sm:$0x1] %vm2633_vm13, %v3049_v61  ;;  %v3022_v12 = vcombine.low %v2433_v22, %v2433_v22 }
 0x1eb   : > { %v3023_v5 = vcombine.low %v2418_v34, %v2418_v34  ;;  %v3024_v0 = vcombine.high %v2418_v34, %v2418_v34  ;;  %2646 = vst.msk [vmem:[%s4316_s9 + $0x38] sm:$0x1] %vm2633_vm13, %v3025_v42  ;;  %v2417_v7 = vsel %vm4428_vm0, 0, %v2288_v28  ;;  %v2425_v44 = vsel %vm4428_vm0, 0, %v2344_v38 }
 0x1ec   : > { %2668 = vst.msk [vmem:[%s4316_s9 + $0x90] sm:$0xf] %vm2630_vm12, %v3047_v39  ;;  %2669 = vst.msk [vmem:[%s4316_s9 + $0x94] sm:$0xf] %vm2630_vm12, %v3048_v45  ;;  %v3020_v33 = vcombine.low %v2417_v7, %v2417_v7  ;;  %v3021_v26 = vcombine.high %v2417_v7, %v2417_v7  ;;  %v2441_v43 = vsel %vm4428_vm0, %v2341_v37, 0  ;;  %v3044_v49 = vcombine.low %v2425_v44, %v2425_v44 }
 0x1ed   : > { %2643 = vst.msk [vmem:[%s4316_s9 + $0x2c] sm:$0x1] %vm2633_vm13, %v3022_v12  ;;  %v3045_v36 = vcombine.high %v2425_v44, %v2425_v44  ;;  %v3046_v54 = vcombine.low %v2441_v43, %v2441_v43 }
 0x1ee   : > { %2644 = vst.msk [vmem:[%s4316_s9 + $0x30] sm:$0xf] %vm2630_vm12, %v3023_v5  ;;  %2645 = vst.msk [vmem:[%s4316_s9 + $0x34] sm:$0xf] %vm2630_vm12, %v3024_v0 }
 0x1ef   : > { %2641 = vst.msk [vmem:[%s4316_s9 + $0x24] sm:$0xf] %vm2630_vm12, %v3020_v33  ;;  %2642 = vst.msk [vmem:[%s4316_s9 + $0x28] sm:$0xf] %vm2630_vm12, %v3021_v26 }
 0x1f0   : > { %2665 = vst.msk [vmem:[%s4316_s9 + $0x84] sm:$0xf] %vm2630_vm12, %v3044_v49  ;;  %2666 = vst.msk [vmem:[%s4316_s9 + $0x88] sm:$0xf] %vm2630_vm12, %v3045_v36 }
 0x1f1   : > { %2667 = vst.msk [vmem:[%s4316_s9 + $0x8c] sm:$0x1] %vm2633_vm13, %v3046_v54 }
 0x21a   : > { %v3115_v1 = vpop.f32.mrb[8].mxu1 }
 0x21b   : > { %v3099_v63 = vpop.f32.mrb[8].mxu0  ;;  %v2198_v6 = vadd.f32 %v3115_v1, %v4417_v2  ;;  %v2189_v46 = vpop.f32.mrb[9].mxu1 }
 0x21c   : > { %v2134_v50 = vadd.f32 %v3099_v63, %v4417_v2  ;;  %v2125_v13 = vpop.f32.mrb[9].mxu0  ;;  %v2190_v27 = vadd.f32 %v4417_v2, %v2189_v46  ;;  %v3116_v62 = vpop.f32.mrb[10].mxu1 }
 0x21d   : > { %v2126_v14 = vadd.f32 %v4417_v2, %v2125_v13  ;;  %v3100_v21 = vpop.f32.mrb[10].mxu0  ;;  %v2201_v15 = vadd.f32 %v3116_v62, %v4417_v2  ;;  %v2192_v52 = vpop.f32.mrb[11].mxu1  ;;  %v2246_v41 = vmax.f32 %v2198_v6, 0.0 }
 0x21e   : > { %v2137_v48 = vadd.f32 %v3100_v21, %v4417_v2  ;;  %v2128_v58 = vpop.f32.mrb[11].mxu0  ;;  %v2193_v18 = vadd.f32 %v4417_v2, %v2192_v52  ;;  %v2230_v30 = vmax.f32 %v2134_v50, 0.0  ;;  %v2244_v31 = vmax.f32 %v2190_v27, 0.0 }
 0x21f   : > { %v2247_v59 = vmax.f32 %v2201_v15, 0.0  ;;  %v2129_v10 = vadd.f32 %v4417_v2, %v2128_v58  ;;  %v2228_v23 = vmax.f32 %v2126_v14, 0.0 }
 0x220   : > { %v2231_v16 = vmax.f32 %v2137_v48, 0.0  ;;  %v2245_v60 = vmax.f32 %v2193_v18, 0.0 }
 0x221   : > { %v2265_v40 = vpack.c.bf16 %v2247_v59, %v2246_v41  ;;  %v2229_v57 = vmax.f32 %v2129_v10, 0.0 }
 0x222   : > { %v2257_v24 = vpack.c.bf16 %v2231_v16, %v2230_v30  ;;  %v2264_v25 = vpack.c.bf16 %v2245_v60, %v2244_v31 }
 0x223   : > { %v2360_v4 = vshrl.u32 %v2265_v40, 16  ;;  %v2256_v9 = vpack.c.bf16 %v2229_v57, %v2228_v23  ;;  %v2363_v56 = vshll.u32 %v2265_v40, 16 }
 0x224   : > { %v2304_v3 = vshrl.u32 %v2257_v24, 16  ;;  %v2353_v47 = vshrl.u32 %v2264_v25, 16  ;;  %v2307_v53 = vshll.u32 %v2257_v24, 16  ;;  %v2356_v11 = vshll.u32 %v2264_v25, 16 }
 0x225   : > { %v2362_v20 = vrot.slane %v2360_v4, 7  ;;  %v2297_v8 = vshrl.u32 %v2256_v9, 16  ;;  %v2300_v29 = vshll.u32 %v2256_v9, 16 }
 0x226   : > { %v2306_v37 = vrot.slane %v2304_v3, 7  ;;  %v2355_v19 = vrot.slane %v2353_v47, 7 }
 0x227   : > { %v2365_v17 = vor.u32 %v2363_v56, %v2362_v20  ;;  %v2444_v32 = vsel %vm4428_vm0, %v2362_v20, 0  ;;  %v2299_v51 = vrot.slane %v2297_v8, 7 }
 0x228   : > { %v2309_v61 = vor.u32 %v2307_v53, %v2306_v37  ;;  %v2436_v38 = vsel %vm4428_vm0, %v2306_v37, 0  ;;  %v3055_v42 = vcombine.low %v2444_v32, %v2444_v32  ;;  %v2358_v35 = vor.u32 %v2356_v11, %v2355_v19 }
 0x229   : > { %v3031_v28 = vcombine.low %v2436_v38, %v2436_v38  ;;  %v2428_v22 = vsel %vm4428_vm0, 0, %v2365_v17  ;;  %v2302_v34 = vor.u32 %v2300_v29, %v2299_v51  ;;  %v2435_v39 = vsel %vm4428_vm0, %v2299_v51, 0 }
 0x22a   : > { %v2420_v45 = vsel %vm4428_vm0, 0, %v2309_v61  ;;  %v3053_v12 = vcombine.low %v2428_v22, %v2428_v22  ;;  %v3054_v5 = vcombine.high %v2428_v22, %v2428_v22  ;;  %2676 = vst.msk [vmem:[%s4316_s9 + $0xb0] sm:$0x1] %vm2633_vm13, %v3055_v42  ;;  %v3028_v0 = vcombine.low %v2435_v39, %v2435_v39 }
 0x22b   : > { %v3029_v7 = vcombine.low %v2420_v45, %v2420_v45  ;;  %v3030_v44 = vcombine.high %v2420_v45, %v2420_v45  ;;  %2652 = vst.msk [vmem:[%s4316_s9 + $0x50] sm:$0x1] %vm2633_vm13, %v3031_v28  ;;  %v2419_v33 = vsel %vm4428_vm0, 0, %v2302_v34  ;;  %v2427_v26 = vsel %vm4428_vm0, 0, %v2358_v35 }
 0x22c   : > { %2674 = vst.msk [vmem:[%s4316_s9 + $0xa8] sm:$0xf] %vm2630_vm12, %v3053_v12  ;;  %2675 = vst.msk [vmem:[%s4316_s9 + $0xac] sm:$0xf] %vm2630_vm12, %v3054_v5  ;;  %v3026_v43 = vcombine.low %v2419_v33, %v2419_v33  ;;  %v3027_v49 = vcombine.high %v2419_v33, %v2419_v33  ;;  %v2443_v36 = vsel %vm4428_vm0, %v2355_v19, 0  ;;  %v3050_v54 = vcombine.low %v2427_v26, %v2427_v26 }
 0x22d   : > { %2649 = vst.msk [vmem:[%s4316_s9 + $0x44] sm:$0x1] %vm2633_vm13, %v3028_v0  ;;  %v3051_v1 = vcombine.high %v2427_v26, %v2427_v26  ;;  %v3052_v63 = vcombine.low %v2443_v36, %v2443_v36 }
 0x22e   : > { %2650 = vst.msk [vmem:[%s4316_s9 + $0x48] sm:$0xf] %vm2630_vm12, %v3029_v7  ;;  %2651 = vst.msk [vmem:[%s4316_s9 + $0x4c] sm:$0xf] %vm2630_vm12, %v3030_v44 }
 0x22f   : > { %2647 = vst.msk [vmem:[%s4316_s9 + $0x3c] sm:$0xf] %vm2630_vm12, %v3026_v43  ;;  %2648 = vst.msk [vmem:[%s4316_s9 + $0x40] sm:$0xf] %vm2630_vm12, %v3027_v49 }
 0x230   : > { %2671 = vst.msk [vmem:[%s4316_s9 + $0x9c] sm:$0xf] %vm2630_vm12, %v3050_v54  ;;  %2672 = vst.msk [vmem:[%s4316_s9 + $0xa0] sm:$0xf] %vm2630_vm12, %v3051_v1 }
 0x231   : > { %2673 = vst.msk [vmem:[%s4316_s9 + $0xa4] sm:$0x1] %vm2633_vm13, %v3052_v63 }
 0x256   : > { %v3119_v6 = vpop.f32.mrb[12].mxu1 }
 0x257   : > { %v3103_v46 = vpop.f32.mrb[12].mxu0  ;;  %v2214_v50 = vadd.f32 %v3119_v6, %v4417_v2  ;;  %v2205_v13 = vpop.f32.mrb[13].mxu1 }
 0x258   : > { %v2150_v27 = vadd.f32 %v3103_v46, %v4417_v2  ;;  %v2141_v62 = vpop.f32.mrb[13].mxu0  ;;  %v2206_v14 = vadd.f32 %v4417_v2, %v2205_v13  ;;  %v3120_v21 = vpop.f32.mrb[14].mxu1 }
 0x259   : > { %v2142_v15 = vadd.f32 %v4417_v2, %v2141_v62  ;;  %v3104_v52 = vpop.f32.mrb[14].mxu0  ;;  %v2217_v48 = vadd.f32 %v3120_v21, %v4417_v2  ;;  %v2208_v58 = vpop.f32.mrb[15].mxu1  ;;  %v2250_v10 = vmax.f32 %v2214_v50, 0.0 }
 0x25a   : > { %v2153_v18 = vadd.f32 %v3104_v52, %v4417_v2  ;;  %v2144_v41 = vpop.f32.mrb[15].mxu0  ;;  %v2209_v59 = vadd.f32 %v4417_v2, %v2208_v58  ;;  %v2234_v16 = vmax.f32 %v2150_v27, 0.0  ;;  %v2248_v60 = vmax.f32 %v2206_v14, 0.0 }
 0x25b   : > { %v2251_v30 = vmax.f32 %v2217_v48, 0.0  ;;  %v2145_v31 = vadd.f32 %v4417_v2, %v2144_v41  ;;  %v2232_v57 = vmax.f32 %v2142_v15, 0.0 }
 0x25c   : > { %v2235_v23 = vmax.f32 %v2153_v18, 0.0  ;;  %v2249_v40 = vmax.f32 %v2209_v59, 0.0 }
 0x25d   : > { %v2267_v24 = vpack.c.bf16 %v2251_v30, %v2250_v10  ;;  %v2233_v25 = vmax.f32 %v2145_v31, 0.0 }
 0x25e   : > { %v2259_v4 = vpack.c.bf16 %v2235_v23, %v2234_v16  ;;  %v2266_v9 = vpack.c.bf16 %v2249_v40, %v2248_v60 }
 0x25f   : > { %v2374_v3 = vshrl.u32 %v2267_v24, 16  ;;  %v2258_v47 = vpack.c.bf16 %v2233_v25, %v2232_v57  ;;  %v2377_v37 = vshll.u32 %v2267_v24, 16 }
 0x260   : > { %v2318_v20 = vshrl.u32 %v2259_v4, 16  ;;  %v2367_v56 = vshrl.u32 %v2266_v9, 16  ;;  %v2321_v11 = vshll.u32 %v2259_v4, 16  ;;  %v2370_v2 = vshll.u32 %v2266_v9, 16 }
 0x261   : > { %v2376_v8 = vrot.slane %v2374_v3, 7  ;;  %v2311_v53 = vshrl.u32 %v2258_v47, 16  ;;  %v2314_v61 = vshll.u32 %v2258_v47, 16 }
 0x262   : > { %v2320_v19 = vrot.slane %v2318_v20, 7  ;;  %v2369_v17 = vrot.slane %v2367_v56, 7 }
 0x263   : > { %v2379_v32 = vor.u32 %v2377_v37, %v2376_v8  ;;  %v2446_v51 = vsel %vm4428_vm0, %v2376_v8, 0  ;;  %v2313_v29 = vrot.slane %v2311_v53, 7 }
 0x264   : > { %v2323_v38 = vor.u32 %v2321_v11, %v2320_v19  ;;  %v2438_v42 = vsel %vm4428_vm0, %v2320_v19, 0  ;;  %v3061_v35 = vcombine.low %v2446_v51, %v2446_v51  ;;  %v2372_v28 = vor.u32 %v2370_v2, %v2369_v17 }
 0x265   : > { %v3037_v22 = vcombine.low %v2438_v42, %v2438_v42  ;;  %v2430_v34 = vsel %vm4428_vm0, 0, %v2379_v32  ;;  %v2316_v39 = vor.u32 %v2314_v61, %v2313_v29  ;;  %v2437_v45 = vsel %vm4428_vm0, %v2313_v29, 0 }
 0x266   : > { %v2422_v12 = vsel %vm4428_vm0, 0, %v2323_v38  ;;  %v3059_v5 = vcombine.low %v2430_v34, %v2430_v34  ;;  %v3060_v0 = vcombine.high %v2430_v34, %v2430_v34  ;;  %2682 = vst.msk [vmem:[%s4316_s9 + $0xc8] sm:$0x1] %vm2633_vm13, %v3061_v35  ;;  %v3034_v7 = vcombine.low %v2437_v45, %v2437_v45 }
 0x267   : > { %v3035_v44 = vcombine.low %v2422_v12, %v2422_v12  ;;  %v3036_v33 = vcombine.high %v2422_v12, %v2422_v12  ;;  %2658 = vst.msk [vmem:[%s4316_s9 + $0x68] sm:$0x1] %vm2633_vm13, %v3037_v22  ;;  %v2421_v26 = vsel %vm4428_vm0, 0, %v2316_v39  ;;  %v2429_v43 = vsel %vm4428_vm0, 0, %v2372_v28 }
 0x268   : > { %2680 = vst.msk [vmem:[%s4316_s9 + $0xc0] sm:$0xf] %vm2630_vm12, %v3059_v5  ;;  %2681 = vst.msk [vmem:[%s4316_s9 + $0xc4] sm:$0xf] %vm2630_vm12, %v3060_v0  ;;  %v3032_v49 = vcombine.low %v2421_v26, %v2421_v26  ;;  %v3033_v36 = vcombine.high %v2421_v26, %v2421_v26  ;;  %v2445_v54 = vsel %vm4428_vm0, %v2369_v17, 0  ;;  %v3056_v1 = vcombine.low %v2429_v43, %v2429_v43 }
 0x269   : > { %2655 = vst.msk [vmem:[%s4316_s9 + $0x5c] sm:$0x1] %vm2633_vm13, %v3034_v7  ;;  %v3057_v63 = vcombine.high %v2429_v43, %v2429_v43  ;;  %v3058_v6 = vcombine.low %v2445_v54, %v2445_v54 }
 0x26a   : > { %2656 = vst.msk [vmem:[%s4316_s9 + $0x60] sm:$0xf] %vm2630_vm12, %v3035_v44  ;;  %2657 = vst.msk [vmem:[%s4316_s9 + $0x64] sm:$0xf] %vm2630_vm12, %v3036_v33 }
 0x26b   : > { %2653 = vst.msk [vmem:[%s4316_s9 + $0x54] sm:$0xf] %vm2630_vm12, %v3032_v49  ;;  %2654 = vst.msk [vmem:[%s4316_s9 + $0x58] sm:$0xf] %vm2630_vm12, %v3033_v36 }
 0x26c   : > { %2677 = vst.msk [vmem:[%s4316_s9 + $0xb4] sm:$0xf] %vm2630_vm12, %v3056_v1  ;;  %2678 = vst.msk [vmem:[%s4316_s9 + $0xb8] sm:$0xf] %vm2630_vm12, %v3057_v63 }
 0x26d   : > { %2679 = vst.msk [vmem:[%s4316_s9 + $0xbc] sm:$0x1] %vm2633_vm13, %v3058_v6 }
 0x26e PF: > { %s13_s14 = sadd.s32 1, %s3296_s14   ;;  %s4631_s12 = smov %s3292_s13 }
 0x26f   : > { %p10_p5 = scmp.ge.s32.totalorder %s13_s14, 4   ;;  %s4632_s13 = smov %s4634_s15 }
 0x271   :  { %12 = sbr.rel (!%p10_p5) target bundleno = 2 (0x2), region = 70 }

</bundles_post_ra>
